<compile_context>
chip_gen: v7x
topology: tpu7x:2x2x1
jax: 0.10.0
libtpu: 0.0.40
codegen_flags: <defaults>
</compile_context>

<pallas_src>
import functools

import jax
import jax.numpy as jnp
from jax import lax
from jax.experimental import pallas as pl
from jax.experimental.pallas import tpu as pltpu


def _attn_kernel(xq_ref, pair_ref, kv_ref, w_qg_ref, b_qg_ref,
                 o_ref,
                 q_scratch, gate_scratch, m_scratch, l_scratch, acc_scratch,
                 *, qkv_dim: int):
    """grid = (q_tile, head, k_tile); one program = one (q, head, k) tile."""
    d = qkv_dim
    ki = pl.program_id(2)

    @pl.when(ki == 0)
    def _init():
        # Fused Q|gate projection (softmax scale + q bias folded into the
        # packed weights/bias).  Done once per (q-tile, head).
        qg = jnp.dot(xq_ref[...], w_qg_ref[0],
                     preferred_element_type=jnp.float32) + b_qg_ref[0]
        q_scratch[...] = qg[:, :d].astype(jnp.bfloat16)      # pre-scaled q
        gate_scratch[...] = jax.nn.sigmoid(qg[:, d:])         # sigmoid(gate)
        m_scratch[...] = jnp.full(m_scratch.shape, -jnp.inf, dtype=jnp.float32)
        l_scratch[...] = jnp.zeros(l_scratch.shape, dtype=jnp.float32)
        acc_scratch[...] = jnp.zeros(acc_scratch.shape, dtype=jnp.float32)

    # Pre-projected K|V tile (bf16, packed along lanes).
    kv = kv_ref[0]                      # (tk, 2d) bf16
    k = kv[:, :d]
    v = kv[:, d:]

    # logits = q . k^T + (pair bias with key-mask folded in).
    logits = lax.dot_general(q_scratch[...], k, (((1,), (1,)), ((), ())),
                             preferred_element_type=jnp.float32)   # (tq, tk)
    logits = logits + pair_ref[0].astype(jnp.float32)

    # Online (flash) softmax update in f32.
    m_prev = m_scratch[...]
    m_new = jnp.maximum(m_prev, jnp.max(logits, axis=-1, keepdims=True))
    alpha = jnp.exp(m_prev - m_new)
    p = jnp.exp(logits - m_new)
    l_scratch[...] = alpha * l_scratch[...] + jnp.sum(p, axis=-1, keepdims=True)
    acc_scratch[...] = alpha * acc_scratch[...] + jnp.dot(
        p.astype(jnp.bfloat16), v, preferred_element_type=jnp.float32)
    m_scratch[...] = m_new

    @pl.when(ki == pl.num_programs(2) - 1)
    def _finalize():
        inv_l = pl.reciprocal(l_scratch[...], approx=True)
        o_ref[...] = (acc_scratch[...] * inv_l
                      * gate_scratch[...]).astype(o_ref.dtype)


def _pack_params(params, num_head: int, qkv_dim: int):
    """Pack per-head weight slabs: (H, C, 2d) bf16 for Q|G and K|V."""
    c = params["wq"].shape[0]
    d = qkv_dim
    scale = d ** -0.5

    def per_head(w):                      # (C, H*d) -> (H, C, d)
        return jnp.transpose(w.reshape(c, num_head, d), (1, 0, 2))

    wq = per_head(params["wq"]) * scale   # fold softmax scale into W_q / b_q
    wg = per_head(params["wg"])
    wk = per_head(params["wk"])
    wv = per_head(params["wv"])
    bq = (params["bq"] * scale).reshape(num_head, 1, d)

    w_qg = jnp.concatenate([wq, wg], axis=-1).astype(jnp.bfloat16)      # (H, C, 2d)
    b_qg = jnp.concatenate([bq, jnp.zeros_like(bq)], axis=-1).astype(jnp.float32)
    w_kv = jnp.concatenate([wk, wv], axis=-1).astype(jnp.bfloat16)      # (H, C, 2d)
    return w_qg, b_qg, w_kv


def attention_mix(x, mask, pair_logits, params, *, num_head: int,
                  tq: int = 256, tk: int = 256, pair_buffers=None):
    """x: (N, C) f32, mask: (N,) {0,1}, pair_logits: (H, N, N) f32.

    tq/tk default to 256 (fills the 2x256^2 MXU on v6e/v7x); sweep tk=512 on
    v6e if VMEM allows.  pair_buffers (e.g. 3) enables deeper pair-tile
    pipelining for bandwidth-limited v5e.
    """
    n, c = x.shape
    assert c % num_head == 0
    d = c // num_head
    # TODO(synk): head-group packing for d < 128 (typical AF3 qkv_dim 16-48)
    # so weight/output blocks stay (8,128)-tileable and stores stay lane-dense.
    assert d % 128 == 0, "qkv_dim must be a multiple of 128 (head grouping TODO)"
    tq = min(tq, n)
    tk = min(tk, n)
    assert n % tq == 0 and n % tk == 0, "num_tokens must divide the tile sizes"
    nq, nk = n // tq, n // tk

    w_qg, b_qg, w_kv = _pack_params(params, num_head, d)

    # bf16 x stream (kernel computes with bf16 MXU operands anyway).
    x_bf16 = x.astype(jnp.bfloat16)

    # Hoisted K|V projection: computed once (XLA), streamed as bf16 tiles.
    kv_packed = jnp.einsum("nc,hcf->hnf", x_bf16, w_kv,
                           preferred_element_type=jnp.float32
                           ).astype(jnp.bfloat16)               # (H, N, 2d)

    # Fold the additive key mask into the pair bias (one bf16 stream).
    mask_bias = jnp.where(mask > 0, 0.0, -1e9).astype(jnp.float32)
    pair_bf16 = (pair_logits + mask_bias[None, None, :]).astype(jnp.bfloat16)

    kernel = functools.partial(_attn_kernel, qkv_dim=d)

    # Exact per-step VMEM accounting (double-buffered tiles + scratch).
    out_itemsize = jnp.dtype(x.dtype).itemsize
    dbuf_bytes = 2 * (tq * c * 2            # x query tile (bf16)
                      + tq * tk * 2         # pair tile (bf16)
                      + tk * 2 * d * 2      # kv tile (bf16)
                      + c * 2 * d * 2       # W_[q|g] slab (bf16)
                      + 2 * d * 4           # b_[q|g]
                      + tq * d * out_itemsize)                  # output tile
    scratch_bytes = (tq * d * 2             # q (bf16)
                     + tq * d * 4           # sigmoid(gate)
                     + 2 * tq * 128 * 4     # m, l (lane-padded)
                     + tq * d * 4)          # acc
    vmem_limit = int(min(max(2 * (dbuf_bytes + scratch_bytes), 16 << 20),
                         40 << 20))         # <= ~40 MiB: fits v7x's 64 MiB TC

    # Cost of the pallas_call itself (KV projection now lives in XLA).
    flops = int(4 * n * c * c               # fused Q|G projection
                + 4 * num_head * n * n * d) # QK^T + PV
    transcendentals = int(num_head * n * n + n * c)
    bytes_accessed = int(num_head * n * n * 2                   # pair (bf16)
                         + nq * num_head * n * 2 * d * 2        # kv re-stream
                         + n * c * 2                            # x (bf16)
                         + nq * num_head * (c * 2 * d * 2 + 2 * d * 4)
                         + n * c * out_itemsize)                # output

    pair_kwargs = {}
    if pair_buffers is not None:            # v5e: hide exposed pair DMA
        pair_kwargs["pipeline_mode"] = pl.Buffered(pair_buffers)

    grid_spec = pltpu.PrefetchScalarGridSpec(
        num_scalar_prefetch=0,
        grid=(nq, num_head, nk),
        in_specs=[
            pl.BlockSpec((tq, c), lambda qi, h, ki: (qi, 0)),           # x (query side, bf16)
            pl.BlockSpec((1, tq, tk), lambda qi, h, ki: (h, qi, ki),
                         **pair_kwargs),                                # pair + mask bias
            pl.BlockSpec((1, tk, 2 * d), lambda qi, h, ki: (h, ki, 0)), # packed K|V
            pl.BlockSpec((1, c, 2 * d), lambda qi, h, ki: (h, 0, 0)),   # W_[q|g]
            pl.BlockSpec((1, 1, 2 * d), lambda qi, h, ki: (h, 0, 0)),   # b_[q|g]
        ],
        out_specs=pl.BlockSpec((tq, d), lambda qi, h, ki: (qi, h)),     # out[:, h*d:(h+1)*d]
        scratch_shapes=[
            pltpu.VMEM((tq, d), jnp.bfloat16),   # q (pre-scaled, pre-cast)
            pltpu.VMEM((tq, d), jnp.float32),    # sigmoid(gate)
            pltpu.VMEM((tq, 1), jnp.float32),    # m (running max)
            pltpu.VMEM((tq, 1), jnp.float32),    # l (running denom)
            pltpu.VMEM((tq, d), jnp.float32),    # acc
        ],
    )

    return pl.pallas_call(
        kernel,
        out_shape=jax.ShapeDtypeStruct((n, c), x.dtype),
        grid_spec=grid_spec,
        compiler_params=pltpu.CompilerParams(
            dimension_semantics=("parallel", "parallel", "arbitrary"),
            vmem_limit_bytes=vmem_limit),
        cost_estimate=pl.CostEstimate(flops=flops,
                                      transcendentals=transcendentals,
                                      bytes_accessed=bytes_accessed),
    )(x_bf16, pair_bf16, kv_packed, w_qg, b_qg)


def attention_mix_ref(x, mask, pair_logits, params, *, num_head: int):
    """Pure-JAX (f32) reference reproducing the PyTorch forward semantics."""
    n, c = x.shape
    d = c // num_head
    q = x @ params["wq"] + params["bq"]
    k = x @ params["wk"]
    v = x @ params["wv"]
    g = x @ params["wg"]
    q = q.reshape(n, num_head, d).transpose(1, 0, 2) * d ** -0.5
    k = k.reshape(n, num_head, d).transpose(1, 0, 2)
    v = v.reshape(n, num_head, d).transpose(1, 0, 2)
    logits = jnp.einsum("hqc,hkc->hqk", q, k) + pair_logits
    logits = logits + jnp.where(mask > 0, 0.0, -1e9)[None, None, :]
    probs = jax.nn.softmax(logits, axis=-1)
    wa = jnp.einsum("hqk,hkc->hqc", probs, v)          # h q c
    wa = wa.transpose(1, 0, 2).reshape(n, c)           # q (h c)
    return wa * jax.nn.sigmoid(g)


if __name__ == "__main__":
    # Small shapes consistent with the module: N tokens divisible by the tile
    # size, c_x divisible by num_head, qkv_dim = 128.  Grid = (1, 2, 1).
    N, C, H = 256, 256, 2

    key = jax.random.PRNGKey(0)
    kx, kp, kq, kb, kk, kv, kg, km = jax.random.split(key, 8)

    x = jax.random.normal(kx, (N, C), dtype=jnp.float32)
    pair_logits = 0.1 * jax.random.normal(kp, (H, N, N), dtype=jnp.float32)
    mask = (jax.random.uniform(km, (N,)) > 0.2).astype(jnp.float32)

    scale = C ** -0.5
    params = {
        "wq": scale * jax.random.normal(kq, (C, C), dtype=jnp.float32),
        "bq": 0.1 * jax.random.normal(kb, (C,), dtype=jnp.float32),
        "wk": scale * jax.random.normal(kk, (C, C), dtype=jnp.float32),
        "wv": scale * jax.random.normal(kv, (C, C), dtype=jnp.float32),
        "wg": scale * jax.random.normal(kg, (C, C), dtype=jnp.float32),
    }

    out = attention_mix(x, mask, pair_logits, params, num_head=H)
    out = jax.block_until_ready(out)

    ref = attention_mix_ref(x, mask, pair_logits, params, num_head=H)
    assert out.shape == (N, C), out.shape
    max_err = float(jnp.max(jnp.abs(out - ref)))
    # bf16 MXU path + bf16 pair/KV streams + approx reciprocal => tolerance
    # looser than the pure-f32 reference.
    assert jnp.allclose(out, ref, atol=3e-2, rtol=3e-2), max_err
    print("KERNEL_OK")
</pallas_src>

<mosaic_0001>
module attributes {stable_mosaic.version = 11 : i64} {
  func.func @_attn_kernel(%arg0: i32, %arg1: i32, %arg2: i32, %arg3: memref<256x256xbf16, #tpu.memory_space<vmem>>, %arg4: memref<1x256x256xbf16, #tpu.memory_space<vmem>>, %arg5: memref<1x256x256xbf16, #tpu.memory_space<vmem>>, %arg6: memref<1x256x256xbf16, #tpu.memory_space<vmem>>, %arg7: memref<1x1x256xf32, #tpu.memory_space<vmem>>, %arg8: memref<256x128xf32, #tpu.memory_space<vmem>>, %arg9: memref<256x128xbf16, #tpu.memory_space<vmem>>, %arg10: memref<256x128xf32, #tpu.memory_space<vmem>>, %arg11: memref<256x1xf32, #tpu.memory_space<vmem>>, %arg12: memref<256x1xf32, #tpu.memory_space<vmem>>, %arg13: memref<256x128xf32, #tpu.memory_space<vmem>>) attributes {dimension_semantics = [#tpu.dimension_semantics<parallel>, #tpu.dimension_semantics<parallel>, #tpu.dimension_semantics<arbitrary>], iteration_bounds = array<i64: 1, 2, 1>, scalar_prefetch = 0 : i64, scratch_operands = 5 : i64, tpu.core_type = #tpu.core_type<tc>, window_params = [{transform_indices = @transform_0, window_bounds = array<i64: 256, 256>}, {transform_indices = @transform_1, window_bounds = array<i64: 1, 256, 256>}, {transform_indices = @transform_2, window_bounds = array<i64: 1, 256, 256>}, {transform_indices = @transform_3, window_bounds = array<i64: 1, 256, 256>}, {transform_indices = @transform_4, window_bounds = array<i64: 1, 1, 256>}, {transform_indices = @transform_5, window_bounds = array<i64: 256, 128>}]} {
    %c0_i32 = arith.constant 0 : i32
    %0 = arith.cmpi eq, %arg2, %c0_i32 : i32
    %1 = arith.extui %0 : i1 to i32
    %c0_i32_0 = arith.constant 0 : i32
    %2 = arith.cmpi ne, %1, %c0_i32_0 : i32
    scf.if %2 {
      %c0_25 = arith.constant 0 : index
      %c0_26 = arith.constant 0 : index
      %39 = vector.load %arg3[%c0_25, %c0_26] : memref<256x256xbf16, #tpu.memory_space<vmem>>, vector<256x256xbf16>
      %c0_27 = arith.constant 0 : index
      %c0_28 = arith.constant 0 : index
      %c0_29 = arith.constant 0 : index
      %40 = vector.load %arg6[%c0_27, %c0_28, %c0_29] : memref<1x256x256xbf16, #tpu.memory_space<vmem>>, vector<1x256x256xbf16>
      %41 = vector.shape_cast %40 : vector<1x256x256xbf16> to vector<256x256xbf16>
      %cst_30 = arith.constant dense<0.000000e+00> : vector<256x256xf32>
      %42 = tpu.matmul %39, %41, %cst_30 {dimension_numbers = #tpu.dot_dimension_numbers<[1], [0], [0], [1], [0, 0, 1, 1], [], []>} : vector<256x256xbf16>, vector<256x256xbf16>, vector<256x256xf32> -> vector<256x256xf32>
      %c0_31 = arith.constant 0 : index
      %c0_32 = arith.constant 0 : index
      %c0_33 = arith.constant 0 : index
      %43 = vector.load %arg7[%c0_31, %c0_32, %c0_33] : memref<1x1x256xf32, #tpu.memory_space<vmem>>, vector<1x1x256xf32>
      %44 = vector.shape_cast %43 : vector<1x1x256xf32> to vector<1x256xf32>
      %45 = vector.broadcast %44 : vector<1x256xf32> to vector<256x256xf32>
      %46 = arith.addf %42, %45 : vector<256x256xf32>
      %47 = vector.extract_strided_slice %46 {offsets = [0, 0], sizes = [256, 128], strides = [1, 1]} : vector<256x256xf32> to vector<256x128xf32>
      %48 = arith.truncf %47 : vector<256x128xf32> to vector<256x128xbf16>
      %c0_34 = arith.constant 0 : index
      %c0_35 = arith.constant 0 : index
      %49 = vector.load %arg9[%c0_34, %c0_35] : memref<256x128xbf16, #tpu.memory_space<vmem>>, vector<256x128xbf16>
      tpu.vector_store %arg9[%c0_34, %c0_35], %48 {strides = array<i32>} : memref<256x128xbf16, #tpu.memory_space<vmem>>, vector<256x128xbf16>,
      %50 = vector.extract_strided_slice %46 {offsets = [0, 128], sizes = [256, 128], strides = [1, 1]} : vector<256x256xf32> to vector<256x128xf32>
      %51 = arith.negf %50 : vector<256x128xf32>
      %52 = math.exp %51 : vector<256x128xf32>
      %cst_36 = arith.constant 1.000000e+00 : f32
      %53 = vector.broadcast %cst_36 : f32 to vector<256x128xf32>
      %54 = arith.addf %53, %52 : vector<256x128xf32>
      %55 = arith.divf %53, %54 : vector<256x128xf32>
      %c0_37 = arith.constant 0 : index
      %c0_38 = arith.constant 0 : index
      %56 = vector.load %arg10[%c0_37, %c0_38] : memref<256x128xf32, #tpu.memory_space<vmem>>, vector<256x128xf32>
      tpu.vector_store %arg10[%c0_37, %c0_38], %55 {strides = array<i32>} : memref<256x128xf32, #tpu.memory_space<vmem>>, vector<256x128xf32>,
      %cst_39 = arith.constant 0xFF800000 : f32
      %57 = vector.broadcast %cst_39 : f32 to vector<256x1xf32>
      %c0_40 = arith.constant 0 : index
      %c0_41 = arith.constant 0 : index
      %58 = vector.load %arg11[%c0_40, %c0_41] : memref<256x1xf32, #tpu.memory_space<vmem>>, vector<256x1xf32>
      tpu.vector_store %arg11[%c0_40, %c0_41], %57 {strides = array<i32>} : memref<256x1xf32, #tpu.memory_space<vmem>>, vector<256x1xf32>,
      %cst_42 = arith.constant 0.000000e+00 : f32
      %59 = vector.broadcast %cst_42 : f32 to vector<256x1xf32>
      %c0_43 = arith.constant 0 : index
      %c0_44 = arith.constant 0 : index
      %60 = vector.load %arg12[%c0_43, %c0_44] : memref<256x1xf32, #tpu.memory_space<vmem>>, vector<256x1xf32>
      tpu.vector_store %arg12[%c0_43, %c0_44], %59 {strides = array<i32>} : memref<256x1xf32, #tpu.memory_space<vmem>>, vector<256x1xf32>,
      %cst_45 = arith.constant 0.000000e+00 : f32
      %61 = vector.broadcast %cst_45 : f32 to vector<256x128xf32>
      %c0_46 = arith.constant 0 : index
      %c0_47 = arith.constant 0 : index
      %62 = vector.load %arg13[%c0_46, %c0_47] : memref<256x128xf32, #tpu.memory_space<vmem>>, vector<256x128xf32>
      tpu.vector_store %arg13[%c0_46, %c0_47], %61 {strides = array<i32>} : memref<256x128xf32, #tpu.memory_space<vmem>>, vector<256x128xf32>,
    } else {
    }
    %c0 = arith.constant 0 : index
    %c0_1 = arith.constant 0 : index
    %c0_2 = arith.constant 0 : index
    %3 = vector.load %arg5[%c0, %c0_1, %c0_2] : memref<1x256x256xbf16, #tpu.memory_space<vmem>>, vector<1x256x256xbf16>
    %4 = vector.shape_cast %3 : vector<1x256x256xbf16> to vector<256x256xbf16>
    %5 = vector.extract_strided_slice %4 {offsets = [0, 0], sizes = [256, 128], strides = [1, 1]} : vector<256x256xbf16> to vector<256x128xbf16>
    %6 = vector.extract_strided_slice %4 {offsets = [0, 128], sizes = [256, 128], strides = [1, 1]} : vector<256x256xbf16> to vector<256x128xbf16>
    %c0_3 = arith.constant 0 : index
    %c0_4 = arith.constant 0 : index
    %7 = vector.load %arg9[%c0_3, %c0_4] : memref<256x128xbf16, #tpu.memory_space<vmem>>, vector<256x128xbf16>
    %cst = arith.constant dense<0.000000e+00> : vector<256x256xf32>
    %8 = tpu.matmul %7, %5, %cst {dimension_numbers = #tpu.dot_dimension_numbers<[1], [1], [0], [0], [0, 0, 1, 0], [], []>} : vector<256x128xbf16>, vector<256x128xbf16>, vector<256x256xf32> -> vector<256x256xf32>
    %c0_5 = arith.constant 0 : index
    %c0_6 = arith.constant 0 : index
    %c0_7 = arith.constant 0 : index
    %9 = vector.load %arg4[%c0_5, %c0_6, %c0_7] : memref<1x256x256xbf16, #tpu.memory_space<vmem>>, vector<1x256x256xbf16>
    %10 = vector.shape_cast %9 : vector<1x256x256xbf16> to vector<256x256xbf16>
    %11 = arith.extf %10 : vector<256x256xbf16> to vector<256x256xf32>
    %12 = arith.addf %8, %11 : vector<256x256xf32>
    %c0_8 = arith.constant 0 : index
    %c0_9 = arith.constant 0 : index
    %13 = vector.load %arg11[%c0_8, %c0_9] : memref<256x1xf32, #tpu.memory_space<vmem>>, vector<256x1xf32>
    %cst_10 = arith.constant dense<0xFF800000> : vector<256xf32>
    %14 = vector.multi_reduction <maximumf>, %12, %cst_10 [1] : vector<256x256xf32> to vector<256xf32>
    %15 = vector.shape_cast %14 : vector<256xf32> to vector<256x1xf32>
    %16 = arith.maximumf %13, %15 : vector<256x1xf32>
    %17 = arith.subf %13, %16 : vector<256x1xf32>
    %18 = math.exp %17 : vector<256x1xf32>
    %19 = vector.broadcast %16 : vector<256x1xf32> to vector<256x256xf32>
    %20 = arith.subf %12, %19 : vector<256x256xf32>
    %21 = math.exp %20 : vector<256x256xf32>
    %c0_11 = arith.constant 0 : index
    %c0_12 = arith.constant 0 : index
    %22 = vector.load %arg12[%c0_11, %c0_12] : memref<256x1xf32, #tpu.memory_space<vmem>>, vector<256x1xf32>
    %23 = arith.mulf %18, %22 : vector<256x1xf32>
    %cst_13 = arith.constant dense<0.000000e+00> : vector<256xf32>
    %24 = vector.multi_reduction <add>, %21, %cst_13 [1] : vector<256x256xf32> to vector<256xf32>
    %25 = vector.shape_cast %24 : vector<256xf32> to vector<256x1xf32>
    %26 = arith.addf %23, %25 : vector<256x1xf32>
    %c0_14 = arith.constant 0 : index
    %c0_15 = arith.constant 0 : index
    %27 = vector.load %arg12[%c0_14, %c0_15] : memref<256x1xf32, #tpu.memory_space<vmem>>, vector<256x1xf32>
    tpu.vector_store %arg12[%c0_14, %c0_15], %26 {strides = array<i32>} : memref<256x1xf32, #tpu.memory_space<vmem>>, vector<256x1xf32>,
    %c0_16 = arith.constant 0 : index
    %c0_17 = arith.constant 0 : index
    %28 = vector.load %arg13[%c0_16, %c0_17] : memref<256x128xf32, #tpu.memory_space<vmem>>, vector<256x128xf32>
    %29 = vector.broadcast %18 : vector<256x1xf32> to vector<256x128xf32>
    %30 = arith.mulf %29, %28 : vector<256x128xf32>
    %31 = arith.truncf %21 : vector<256x256xf32> to vector<256x256xbf16>
    %cst_18 = arith.constant dense<0.000000e+00> : vector<256x128xf32>
    %32 = tpu.matmul %31, %6, %cst_18 {dimension_numbers = #tpu.dot_dimension_numbers<[1], [0], [0], [1], [0, 0, 1, 1], [], []>} : vector<256x256xbf16>, vector<256x128xbf16>, vector<256x128xf32> -> vector<256x128xf32>
    %33 = arith.addf %30, %32 : vector<256x128xf32>
    %c0_19 = arith.constant 0 : index
    %c0_20 = arith.constant 0 : index
    %34 = vector.load %arg13[%c0_19, %c0_20] : memref<256x128xf32, #tpu.memory_space<vmem>>, vector<256x128xf32>
    tpu.vector_store %arg13[%c0_19, %c0_20], %33 {strides = array<i32>} : memref<256x128xf32, #tpu.memory_space<vmem>>, vector<256x128xf32>,
    %c0_21 = arith.constant 0 : index
    %c0_22 = arith.constant 0 : index
    %35 = vector.load %arg11[%c0_21, %c0_22] : memref<256x1xf32, #tpu.memory_space<vmem>>, vector<256x1xf32>
    tpu.vector_store %arg11[%c0_21, %c0_22], %16 {strides = array<i32>} : memref<256x1xf32, #tpu.memory_space<vmem>>, vector<256x1xf32>,
    %c0_i32_23 = arith.constant 0 : i32
    %36 = arith.cmpi eq, %arg2, %c0_i32_23 : i32
    %37 = arith.extui %36 : i1 to i32
    %c0_i32_24 = arith.constant 0 : i32
    %38 = arith.cmpi ne, %37, %c0_i32_24 : i32
    scf.if %38 {
      %c0_25 = arith.constant 0 : index
      %c0_26 = arith.constant 0 : index
      %39 = vector.load %arg12[%c0_25, %c0_26] : memref<256x1xf32, #tpu.memory_space<vmem>>, vector<256x1xf32>
      %40 = tpu.reciprocal %39 {approx = true} : vector<256x1xf32> -> vector<256x1xf32>
      %c0_27 = arith.constant 0 : index
      %c0_28 = arith.constant 0 : index
      %41 = vector.load %arg13[%c0_27, %c0_28] : memref<256x128xf32, #tpu.memory_space<vmem>>, vector<256x128xf32>
      %42 = vector.broadcast %40 : vector<256x1xf32> to vector<256x128xf32>
      %43 = arith.mulf %41, %42 : vector<256x128xf32>
      %c0_29 = arith.constant 0 : index
      %c0_30 = arith.constant 0 : index
      %44 = vector.load %arg10[%c0_29, %c0_30] : memref<256x128xf32, #tpu.memory_space<vmem>>, vector<256x128xf32>
      %45 = arith.mulf %43, %44 : vector<256x128xf32>
      %c0_31 = arith.constant 0 : index
      %c0_32 = arith.constant 0 : index
      %46 = vector.load %arg8[%c0_31, %c0_32] : memref<256x128xf32, #tpu.memory_space<vmem>>, vector<256x128xf32>
      tpu.vector_store %arg8[%c0_31, %c0_32], %45 {strides = array<i32>} : memref<256x128xf32, #tpu.memory_space<vmem>>, vector<256x128xf32>,
    } else {
    }
    return
  }
  func.func @transform_0(%arg0: i32, %arg1: i32, %arg2: i32) -> (i32, i32) {
    %c0_i32 = arith.constant 0 : i32
    %c0_i32_0 = arith.constant 0 : i32
    return %arg0, %c0_i32 : i32, i32
  }
  func.func @transform_1(%arg0: i32, %arg1: i32, %arg2: i32) -> (i32, i32, i32) {
    %c0_i32 = arith.constant 0 : i32
    return %arg1, %arg0, %arg2 : i32, i32, i32
  }
  func.func @transform_2(%arg0: i32, %arg1: i32, %arg2: i32) -> (i32, i32, i32) {
    %c0_i32 = arith.constant 0 : i32
    %c0_i32_0 = arith.constant 0 : i32
    return %arg1, %arg2, %c0_i32 : i32, i32, i32
  }
  func.func @transform_3(%arg0: i32, %arg1: i32, %arg2: i32) -> (i32, i32, i32) {
    %c0_i32 = arith.constant 0 : i32
    %c0_i32_0 = arith.constant 0 : i32
    %c0_i32_1 = arith.constant 0 : i32
    return %arg1, %c0_i32, %c0_i32_0 : i32, i32, i32
  }
  func.func @transform_4(%arg0: i32, %arg1: i32, %arg2: i32) -> (i32, i32, i32) {
    %c0_i32 = arith.constant 0 : i32
    %c0_i32_0 = arith.constant 0 : i32
    %c0_i32_1 = arith.constant 0 : i32
    return %arg1, %c0_i32, %c0_i32_0 : i32, i32, i32
  }
  func.func @transform_5(%arg0: i32, %arg1: i32, %arg2: i32) -> (i32, i32) {
    %c0_i32 = arith.constant 0 : i32
    return %arg0, %arg1 : i32, i32
  }
}

</mosaic_0001>

<bundles_post_ra>
// kernel: tpu_custom_call.1
= control target key start
LH: loop header
LB: loop body
LE: loop exit
PB: predicated region body
PF: predicated region fallthrough
CT: control target
= control target key end

     0   :  { %s6878_s0 = inlined_call_operand.hbm [shape: bf16[256,256], index: 0, kind: input, shape index: {}]   ;;  %s6879_s1 = inlined_call_operand.hbm [shape: bf16[2,256,256], index: 1, kind: input, shape index: {}]   ;;  %s6880_s2 = inlined_call_operand.hbm [shape: bf16[2,256,256], index: 2, kind: input, shape index: {}]   ;;  %s6881_s3 = inlined_call_operand.hbm [shape: bf16[2,256,256], index: 3, kind: input, shape index: {}]   ;;  %s6882_s4 = inlined_call_operand.vmem [shape: f32[2,1,256], index: 4, kind: input, shape index: {}]   ;;  %s6883_s5 = inlined_call_operand.hbm [shape: f32[256,256], index: 5, kind: output, shape index: {}]  }
   0x1   :  { %6985 = sst [smem:[#allocation123_spill]] %s6879_s1 }
   0x2   :  { %6986 = sst [smem:[#allocation124_spill]] %s6880_s2 }
   0x3   :  { %10 = vsyncpa [#allocation8], 0 }
   0x4   :  { %11 = vsyncpa [#allocation11], 0 }
   0x5   :  { %13 = vsyncpa [#allocation11 + $0x1], 0 }
   0x6   :  { %14 = vsyncpa [#allocation14], 0 }
   0x7   :  { %16 = vsyncpa [#allocation14 + $0x1], 0 }
   0x8   :  { %17 = vsyncpa [#allocation9], 0 }
   0x9   :  { %19 = vsyncpa [#allocation9 + $0x1], 0  ;;  %s4963_s18 = smov 0   ;;  %s4965_s19 = smov 0  }
   0xa   :  { %s4967_s20 = smov 0   ;;  %s4969_s21 = smov 0  }
   0xb   :  { %s4971_s22 = smov 0   ;;  %s4973_s23 = smov 0  }
   0xc LB: > { %6987 = sst [smem:[#allocation20_spill]] %s4914_s22  ;;  %s40_s24 = sadd.s32 1, %s4914_s22  ;;  %s4918_s23 = sphi %s4973_s23, %s25_s23   ;;  %s4914_s22 = sphi %s4971_s22, %s7271_s22   ;;  %s4910_s21 = sphi %s4969_s21, %s7270_s21   ;;  %s4906_s20 = sphi %s4967_s20, %s7274_s20   ;;  %s4902_s19 = sphi %s4965_s19, %s7273_s19   ;;  %s4898_s18 = sphi %s4963_s18, %s7272_s18  }
   0xd   : > { %6988 = sst [smem:[#allocation21_spill]] %s4918_s23  ;;  %s81_s25 = sadd.s32 1, %s4906_s20 }
   0xe   : > { %p42_p0 = scmp.ge.s32.totalorder %s40_s24, 2  ;;  %p6884_p1 = scmp.ne.s32.totalorder %s4906_s20, %s4902_s19 }
   0xf   : > { %p89_p2 = scmp.eq.s32.totalorder %s4918_s23, 0  ;;  %p4136_p6 = scmp.lt.s32.totalorder %s4918_s23, 2 }
  0x10   : > { %s7276_s24 = smov (%p42_p0, %s40_s24), 0  ;;  %s243_s28 = sand.u32 1, %s4918_s23  }
  0x11   : > { %6989 = sst [smem:[#allocation22_spill]] %s7276_s24  ;;  %p5003_p3 = por %p89_p2, %p6884_p1 }
  0x12   : > { %s74_s27 = ssub.s32 %s4914_s22, %s7276_s24  ;;  %s6885_s29 = sand.u32 1, %s4906_s20  }
  0x13   : > { %p79_p5 = scmp.eq.s32.totalorder %s74_s27, 0  ;;  %s5018_s6 = sshll.u32 %s6885_s29, 8 }
  0x14   : > { %s5021_s7 = sshll.u32 %s4914_s22, 12  ;;  %s6992_s1 = sld [smem:[#allocation123_spill]] }
  0x15   : > { %s5014_s30 = scalar_select %p79_p5, %s4906_s20, %s81_s25  }
  0x16   : > { %s247_s11 = scalar_lea.vmem [#allocation10], %s5018_s6  ;;  %p5034_p7 = pnand %p4136_p6, %p5003_p3 }
  0x17   : > { %6991 = sst [smem:[#allocation23_spill]] %s5014_s30  ;;  %s259_s12 = sshll.u32 %s247_s11, 4  ;;  %s5030_s12 = int_to_ptr.vmem [resolvable:$true] %s259_s12 }
  0x18   : > { %s6993_s13 = scalar_select %p5034_p7, 1, 0 }
  0x19   : > { %s5038_s14 = scalar_lea.sflag [#allocation11], %s243_s28  ;;  %p5044_p9 = pneg %p5034_p7 }
  0x1a   : > { %s5027_s10 = scalar_lea.hbm %s6992_s1, %s5021_s7  ;;  %s4715_s26 = scalar_lea.hbm %s6992_s1, 8192 }
  0x1b   : > { %s4710_s15 = scalar_lea.hbm %s5027_s10, 4096  ;;  %p4716_p12 = scmp.lt.u32.totalorder %s5027_s10, %s6992_s1 }
  0x1c   : > { %p4711_p8 = scmp.ne.s32.totalorder %s5027_s10, %s4710_s15  ;;  %p4717_p13 = scmp.lt.u32.totalorder %s4715_s26, %s4710_s15 }
  0x1d   : > { %s6994_s16 = scalar_select %p5044_p9, 1, 0 }
  0x1e   : > { %p4713_p10 = pnand %p5044_p9, %p4711_p8  ;;  %p4718_p0 = por %p4717_p13, %p4716_p12 }
  0x1f   : > { %p4719_p2 = scmp.lt.u32.totalorder %s4710_s15, %s5027_s10 }
  0x20   : > { %p4714_p11 = pneg %p4713_p10 }
  0x21   : > { %p4720_p3 = por %p4719_p2, %p4718_p0 }
  0x23   : > { %p4721_p5 = pnand %p4720_p3, %p4714_p11 }
  0x25   : > { %4724 = shalt.err (!%p4721_p5)
}
  0x26   : > { %s4725_s28 = scalar_lea.vmem %s5030_s12, 4096  ;;  %s4920_s9 = smov [#allocation10]  }
  0x27   : > { %p4726_p6 = scmp.ne.s32.totalorder %s5030_s12, %s4725_s28  ;;  %s4730_s11 = sshll.u32 %s4920_s9, 4  ;;  %s4731_s11 = int_to_ptr.vmem [resolvable:$false] %s4730_s11 }
  0x28   : > { %s4732_s17 = scalar_lea.vmem %s4731_s11, 8192  ;;  %p4733_p4 = scmp.lt.s32.totalorder %s5030_s12, %s4731_s11 }
  0x29   : > { %p4728_p8 = pnand %p4726_p6, %p5044_p9  ;;  %p4734_p1 = scmp.lt.s32.totalorder %s4732_s17, %s4725_s28 }
  0x2b   : > { %p4729_p10 = pneg %p4728_p8  ;;  %p4735_p12 = por %p4734_p1, %p4733_p4 }
  0x2d   : > { %p4736_p13 = pnand %p4735_p12, %p4729_p10 }
  0x2f   : > { %4739 = shalt.err (!%p4736_p13)
}
  0x30   : > { %s6886_s15 = smov 128   ;;  %s6888_s25 = smov 8  }
  0x31   : > { %4124 = dma.hbm_to_vmem [thread:$0]  (!%p5034_p7), %s5027_s10, 4096, %s5030_s12, %s5038_s14, %s6886_s15, %s6886_s15, %s6888_s25  }
  0x32   : > { %s5072_s26 = sadd.s32 4294967295, %s4918_s23   ;;  %s3758_s27 = sadd.s32 4294967294, %s4918_s23  }
  0x33   : > { %p94_p1 = scmp.ne.s32.totalorder %s4902_s19, %s4898_s18  ;;  %p6892_p4 = scmp.eq.s32.totalorder %s5072_s26, 0 }
  0x34   : > { %p200_p11 = scmp.eq.s32.totalorder %s5072_s26, 1  ;;  %p206_p0 = scmp.eq.s32.totalorder %s3758_s27, 1 }
  0x35   : > { %p3759_p2 = scmp.ge.s32.totalorder %s4918_s23, 1  ;;  %p5082_p3 = por %p6892_p4, %p94_p1 }
  0x36   : > { %p6996_p5 = scmp.ne.s32.totalorder %s4906_s20, %s4902_s19  ;;  %p5093_p8 = por %p206_p0, %p94_p1 }
  0x37   : > { %s6995_s8 = scalar_select %p5082_p3, 1, 0 }
  0x38   : > { %p5089_p6 = por %p200_p11, %p6996_p5  ;;  %p213_p10 = scmp.lt.s32.totalorder %s4918_s23, 3 }
  0x39   : > { %s6998_s12 = scalar_select %p5093_p8, 1, 0 }
  0x3a   : > { %s6997_s10 = scalar_select %p5089_p6, 1, 0 }
  0x3b   : > { %p5098_p12 = pnand %p3759_p2, %p213_p10  ;;  %s4923_s9 = smov [#allocation7]  }
  0x3c   : > { %s229_s11 = sshll.u32 %s4923_s9, 4  ;;  %s7000_s2 = sld [smem:[#allocation124_spill]]  ;;  %s5102_s11 = int_to_ptr.vmem [resolvable:$true] %s229_s11 }
  0x3d   : > { %s6999_s28 = scalar_select %p5098_p12, 1, 0 }
  0x3e   : > { %p4117_p13 = pneg %p5098_p12  ;;  %s273_s15 = scalar_lea.vmem [#allocation12], %s5018_s6 }
  0x3f   : > { %s283_s25 = sshll.u32 %s273_s15, 4  ;;  %s5119_s25 = int_to_ptr.vmem [resolvable:$true] %s283_s25 }
  0x40   : > { %p5115_p1 = pnand %p4117_p13, %p6892_p4 }
  0x42   : > { %s5110_s29 = scalar_lea.hbm %s7000_s2, %s5021_s7  ;;  %s4745_s24 = scalar_lea.hbm %s7000_s2, 8192 }
  0x43   : > { %s7001_s1 = scalar_select %p5115_p1, 1, 0 }
  0x44   : > { %s4740_s9 = scalar_lea.hbm %s5110_s29, 4096  ;;  %p4746_p5 = scmp.lt.u32.totalorder %s5110_s29, %s7000_s2 }
  0x45   : > { %p4741_p11 = scmp.ne.s32.totalorder %s5110_s29, %s4740_s9  ;;  %p4747_p10 = scmp.lt.u32.totalorder %s4745_s24, %s4740_s9 }
  0x46   : > { %p4749_p4 = scmp.lt.u32.totalorder %s4740_s9, %s5110_s29 }
  0x47   : > { %p4743_p0 = pnand %p4741_p11, %p5044_p9  ;;  %p4748_p13 = por %p4747_p10, %p4746_p5 }
  0x49   : > { %p4744_p2 = pneg %p4743_p0  ;;  %p4750_p8 = por %p4749_p4, %p4748_p13 }
  0x4b   : > { %p4751_p6 = pnand %p4750_p8, %p4744_p2 }
  0x4d   : > { %4754 = shalt.err (!%p4751_p6)
}
  0x4e   : > { %s4755_s15 = scalar_lea.vmem %s5119_s25, 4096  ;;  %s4924_s17 = smov [#allocation12]  }
  0x4f   : > { %p4756_p11 = scmp.ne.s32.totalorder %s5119_s25, %s4755_s15  ;;  %s4760_s27 = sshll.u32 %s4924_s17, 4  ;;  %s4761_s27 = int_to_ptr.vmem [resolvable:$false] %s4760_s27 }
  0x50   : > { %s4762_s22 = scalar_lea.vmem %s4761_s27, 8192  ;;  %p4763_p12 = scmp.lt.s32.totalorder %s5119_s25, %s4761_s27 }
  0x51   : > { %p4758_p0 = pnand %p4756_p11, %p5044_p9  ;;  %p4764_p1 = scmp.lt.s32.totalorder %s4762_s22, %s4755_s15 }
  0x53   : > { %p4759_p3 = pneg %p4758_p0  ;;  %p4765_p5 = por %p4764_p1, %p4763_p12 }
  0x55   : > { %p4766_p10 = pnand %p4765_p5, %p4759_p3 }
  0x57   : > { %4769 = shalt.err (!%p4766_p10)
}
  0x58   : > { %s7002_s24 = smov 8   ;;  %s7003_s30 = smov 128  }
  0x59   : > { %4127 = dma.hbm_to_vmem [thread:$0]  (!%p5034_p7), %s5110_s29, 4096, %s5119_s25, %s5038_s14, %s7003_s30, %s7003_s30, %s7002_s24  }
  0x5a   : > { %s4770_s17 = scalar_lea.hbm %s6878_s0, 4096  ;;  %p7004_p3 = scmp.ne.s32.totalorder %s7001_s1, 0 }
  0x5b   : > { %p4771_p4 = scmp.ne.s32.totalorder %s6878_s0, %s4770_s17  ;;  %p4777_p1 = scmp.lt.u32.totalorder %s4770_s17, %s6878_s0 }
  0x5c   : > { %p4772_p6 = pneg %p7004_p3 }
  0x5e   : > { %p4773_p8 = pnand %p4772_p6, %p4771_p4 }
  0x60   : > { %p4774_p12 = pneg %p4773_p8 }
  0x62   : > { %p4779_p2 = pnand %p4777_p1, %p4774_p12 }
  0x64   : > { %4782 = shalt.err (!%p4779_p2)
}
  0x65   : > { %s4783_s29 = scalar_lea.vmem %s5102_s11, 4096  ;;  %p4791_p5 = scmp.lt.s32.totalorder %s5102_s11, %s5102_s11 }
  0x66   : > { %p4784_p13 = scmp.ne.s32.totalorder %s5102_s11, %s4783_s29  ;;  %p4792_p10 = scmp.lt.s32.totalorder %s4783_s29, %s4783_s29 }
  0x68   : > { %p4786_p11 = pnand %p4784_p13, %p4772_p6  ;;  %p4793_p7 = por %p4792_p10, %p4791_p5 }
  0x6a   : > { %p4787_p0 = pneg %p4786_p11 }
  0x6c   : > { %p4794_p9 = pnand %p4793_p7, %p4787_p0 }
  0x6e   : > { %4797 = shalt.err (!%p4794_p9)
}
  0x6f   : > { %4120 = dma.hbm_to_vmem [thread:$0]  (!%p7004_p3), %s6878_s0, 4096, %s5102_s11, [#allocation8], %s7003_s30, %s7003_s30, %s7002_s24  }
  0x70   : > { %s5174_s9 = scalar_lea.hbm %s6881_s3, %s5021_s7  ;;  %s297_s1 = scalar_lea.vmem [#allocation13], %s5018_s6 }
  0x71   : > { %s304_s17 = sshll.u32 %s297_s1, 4  ;;  %s7005_s27 = sand.u32 1, %s4906_s20   ;;  %s5177_s17 = int_to_ptr.vmem [resolvable:$true] %s304_s17 }
  0x72   : > { %s5181_s15 = scalar_lea.sflag [#allocation14], %s7005_s27  ;;  %s4798_s22 = scalar_lea.hbm %s5174_s9, 4096 }
  0x73   : > { %p4799_p7 = scmp.ne.s32.totalorder %s5174_s9, %s4798_s22  ;;  %p7006_p9 = scmp.ne.s32.totalorder %s6994_s16, 0 }
  0x74   : > { %s4803_s7 = scalar_lea.hbm %s6881_s3, 8192  ;;  %p4804_p6 = scmp.lt.u32.totalorder %s5174_s9, %s6881_s3 }
  0x75   : > { %p4801_p4 = pnand %p4799_p7, %p7006_p9  ;;  %p4805_p8 = scmp.lt.u32.totalorder %s4803_s7, %s4798_s22 }
  0x76   : > { %p4807_p1 = scmp.lt.u32.totalorder %s4798_s22, %s5174_s9 }
  0x77   : > { %p4802_p3 = pneg %p4801_p4  ;;  %p4806_p12 = por %p4805_p8, %p4804_p6 }
  0x79   : > { %p4808_p2 = por %p4807_p1, %p4806_p12 }
  0x7b   : > { %p4809_p13 = pnand %p4808_p2, %p4802_p3 }
  0x7d   : > { %4812 = shalt.err (!%p4809_p13)
}
  0x7e   : > { %s4813_s6 = scalar_lea.vmem %s5177_s17, 4096  ;;  %s4925_s14 = smov [#allocation13]  }
  0x7f   : > { %p4814_p11 = scmp.ne.s32.totalorder %s5177_s17, %s4813_s6  ;;  %s4818_s25 = sshll.u32 %s4925_s14, 4  ;;  %s4819_s25 = int_to_ptr.vmem [resolvable:$false] %s4818_s25 }
  0x80   : > { %s4820_s1 = scalar_lea.vmem %s4819_s25, 8192  ;;  %p4821_p10 = scmp.lt.s32.totalorder %s5177_s17, %s4819_s25 }
  0x81   : > { %p4816_p0 = pnand %p4814_p11, %p7006_p9  ;;  %p4822_p7 = scmp.lt.s32.totalorder %s4820_s1, %s4813_s6 }
  0x83   : > { %p4817_p5 = pneg %p4816_p0  ;;  %p4823_p4 = por %p4822_p7, %p4821_p10 }
  0x85   : > { %p4824_p6 = pnand %p4823_p4, %p4817_p5 }
  0x87   : > { %4827 = shalt.err (!%p4824_p6)
}
  0x88   : > { %p7007_p3 = scmp.ne.s32.totalorder %s6993_s13, 0  ;;  %p7008_p9 = scmp.ne.s32.totalorder %s6999_s28, 0 }
  0x8a   : > { %4130 = dma.hbm_to_vmem [thread:$0]  (!%p7007_p3), %s5174_s9, 4096, %s5177_s17, %s5181_s15, %s7003_s30, %s7003_s30, %s7002_s24  }
  0x8b   : > { %323 = sbr.rel (%p7008_p9) target bundleno = 1394 (0x572), region = 40 }
  0x92   : > { %p7009_p8 = scmp.eq.s32.totalorder %s5072_s26, 0 }
  0x94   : > { %4881 = dma.done.wait (%p7009_p8), [#allocation8], 4096   ;;  %p7010_p12 = pmov %p7009_p8 }
  0x95   : > { %s329_s13 = sand.u32 1, %s5072_s26   ;;  %s5216_s16 = sand.u32 1, %s4902_s19  }
  0x96   : > { %4883 = vsyncadd (%p7010_p12), [#allocation8], 4294963200  ;;  %s5219_s27 = sshll.u32 %s5216_s16, 8  ;;  %s330_s24 = scalar_lea.sflag [#allocation11], %s329_s13 }
  0x97   : > { %s5222_s30 = scalar_lea.vmem [#allocation10], %s5219_s27  ;;  %p7011_p1 = scmp.ne.s32.totalorder %s6995_s8, 0 }
  0x99   : > { %4885 = dma.done.wait (%p7011_p1), %s330_s24, 8192  }
  0x9a   : > { %4887 = vsyncadd (%p7011_p1), %s330_s24, 4294959104  ;;  %s5229_s28 = scalar_lea.vmem [#allocation12], %s5219_s27  ;;  %s348_s26 = scalar_lea.sflag [#allocation14], %s5216_s16 }
  0x9b   : > { %s5233_s9 = scalar_lea.vmem [#allocation13], %s5219_s27 }
  0x9c   : > { %4889 = dma.done.wait (%p7011_p1), %s348_s26, 4096  }
  0x9d   : > { %4891 = vsyncadd (%p7011_p1), %s348_s26, 4294963200  ;;  %v4198_v0 = vld [vmem:[%s5233_s9 + $0x4] ss:$8 sps:$4 sm:$0xff]   ;;  %v4200_v1 = vld [vmem:[%s5233_s9] ss:$8 sps:$4 sm:$0xff]   ;;  %p396_p2 = scmp.lt.s32.totalorder %s4910_s21, 1 }
  0x9e   : > { %802 = vmatprep.subr.bf16.mxu0 %v4198_v0  ;;  %v4201_v2 = vld [vmem:[%s5233_s9 + $0x14] ss:$8 sps:$4 sm:$0xff]   ;;  %4073 = vmatprep.subr.bf16.mxu1 %v4198_v0  ;;  %v4203_v3 = vld [vmem:[%s5233_s9 + $0x10] ss:$8 sps:$4 sm:$0xff]   ;;  %v4204_v4 = vld [vmem:[%s5233_s9 + $0x24] ss:$8 sps:$4 sm:$0xff]  }
  0x9f   : > { %803 = vmatpush1.bf16.msra.mxu0 %v4200_v1  ;;  %4089 = vmatpush1.bf16.msra.mxu1 %v4200_v1  ;;  %v4206_v5 = vld [vmem:[%s5233_s9 + $0x20] ss:$8 sps:$4 sm:$0xff]   ;;  %v4207_v6 = vld [vmem:[%s5233_s9 + $0x34] ss:$8 sps:$4 sm:$0xff]   ;;  %v4209_v7 = vld [vmem:[%s5233_s9 + $0x30] ss:$8 sps:$4 sm:$0xff]  }
  0xa0   : > { %804 = vmatprep.subr.bf16.mxu0 %v4201_v2  ;;  %4074 = vmatprep.subr.bf16.mxu1 %v4201_v2  ;;  %v4210_v8 = vld [vmem:[%s5233_s9 + $0x44] ss:$8 sps:$4 sm:$0xff]   ;;  %v4212_v9 = vld [vmem:[%s5233_s9 + $0x40] ss:$8 sps:$4 sm:$0xff]   ;;  %v4213_v10 = vld [vmem:[%s5233_s9 + $0x54] ss:$8 sps:$4 sm:$0xff]  }
  0xa1   : > { %v4215_v11 = vld [vmem:[%s5233_s9 + $0x50] ss:$8 sps:$4 sm:$0xff]   ;;  %v4216_v12 = vld [vmem:[%s5233_s9 + $0x64] ss:$8 sps:$4 sm:$0xff]   ;;  %v4218_v14 = vld [vmem:[%s5233_s9 + $0x60] ss:$8 sps:$4 sm:$0xff]  }
  0xa2   : > { %v4248_v13 = vld [vmem:[#allocation7 + $0x4] ss:$8 sps:$4 sm:$0xff]   ;;  %v4219_v15 = vld [vmem:[%s5233_s9 + $0x74] ss:$8 sps:$4 sm:$0xff]   ;;  %v4221_v16 = vld [vmem:[%s5233_s9 + $0x70] ss:$8 sps:$4 sm:$0xff]  }
  0xa3   : > { %805 = vmatpush1.bf16.msra.mxu0 %v4203_v3  ;;  %4090 = vmatpush1.bf16.msra.mxu1 %v4203_v3  ;;  %v4222_v17 = vld [vmem:[%s5233_s9 + $0x84] ss:$8 sps:$4 sm:$0xff]   ;;  %v4224_v18 = vld [vmem:[%s5233_s9 + $0x80] ss:$8 sps:$4 sm:$0xff]   ;;  %v4225_v19 = vld [vmem:[%s5233_s9 + $0x94] ss:$8 sps:$4 sm:$0xff]  }
  0xa4   : > { %806 = vmatprep.subr.bf16.mxu0 %v4204_v4  ;;  %4075 = vmatprep.subr.bf16.mxu1 %v4204_v4  ;;  %v4272_v20 = vld [vmem:[#allocation7 + $0x84] ss:$8 sps:$4 sm:$0xff]   ;;  %v4227_v21 = vld [vmem:[%s5233_s9 + $0x90] ss:$8 sps:$4 sm:$0xff]   ;;  %v4230_v23 = vld [vmem:[%s5233_s9 + $0xa0] ss:$8 sps:$4 sm:$0xff]  }
  0xa5   : > { %834 = vmatprep.mubr.bf16.mxu0 %v4248_v13  ;;  %v4228_v22 = vld [vmem:[%s5233_s9 + $0xa4] ss:$8 sps:$4 sm:$0xff]   ;;  %914 = vmatprep.mubr.bf16.mxu1 %v4272_v20  ;;  %v4231_v24 = vld [vmem:[%s5233_s9 + $0xb4] ss:$8 sps:$4 sm:$0xff]   ;;  %v4233_v25 = vld [vmem:[%s5233_s9 + $0xb0] ss:$8 sps:$4 sm:$0xff]  }
  0xa6   : > { %v4234_v26 = vld [vmem:[%s5233_s9 + $0xc4] ss:$8 sps:$4 sm:$0xff]   ;;  %v4236_v27 = vld [vmem:[%s5233_s9 + $0xc0] ss:$8 sps:$4 sm:$0xff]   ;;  %v4237_v28 = vld [vmem:[%s5233_s9 + $0xd4] ss:$8 sps:$4 sm:$0xff]  }
  0xa7   : > { %807 = vmatpush1.bf16.msra.mxu0 %v4206_v5  ;;  %4091 = vmatpush1.bf16.msra.mxu1 %v4206_v5  ;;  %v4239_v29 = vld [vmem:[%s5233_s9 + $0xd0] ss:$8 sps:$4 sm:$0xff]   ;;  %v4240_v30 = vld [vmem:[%s5233_s9 + $0xe4] ss:$8 sps:$4 sm:$0xff]   ;;  %v4242_v31 = vld [vmem:[%s5233_s9 + $0xe0] ss:$8 sps:$4 sm:$0xff]  }
  0xa8   : > { %808 = vmatprep.subr.bf16.mxu0 %v4207_v6  ;;  %4076 = vmatprep.subr.bf16.mxu1 %v4207_v6  ;;  %v4243_v32 = vld [vmem:[%s5233_s9 + $0xf4] ss:$8 sps:$4 sm:$0xff]   ;;  %v4245_v33 = vld [vmem:[%s5233_s9 + $0xf0] ss:$8 sps:$4 sm:$0xff]   ;;  %v4294_v34 = vld [vmem:[%s5229_s28 + $0x80] ss:$8 sps:$4 sm:$0xff]  }
  0xa9   : > { %v4246_v35 = vld [vmem:[#allocation7] ss:$8 sps:$4 sm:$0xff]   ;;  %v4249_v37 = vld [vmem:[#allocation7 + $0x14] ss:$8 sps:$4 sm:$0xff]   ;;  %v4298_v40 = vld [vmem:[%s5229_s28 + $0x90] ss:$8 sps:$4 sm:$0xff]  }
  0xaa   : > { %v4270_v36 = vld [vmem:[#allocation7 + $0x80] ss:$8 sps:$4 sm:$0xff]   ;;  %v4273_v38 = vld [vmem:[#allocation7 + $0x94] ss:$8 sps:$4 sm:$0xff]   ;;  %v4251_v41 = vld [vmem:[#allocation7 + $0x10] ss:$8 sps:$4 sm:$0xff]  }
  0xab   : > { %809 = vmatpush1.bf16.msra.mxu0 %v4209_v7  ;;  %4092 = vmatpush1.bf16.msra.mxu1 %v4209_v7  ;;  %v4296_v39 = vld [vmem:[%s5229_s28] ss:$8 sps:$4 sm:$0xff]   ;;  %v4275_v42 = vld [vmem:[#allocation7 + $0x90] ss:$8 sps:$4 sm:$0xff]   ;;  %v4252_v43 = vld [vmem:[#allocation7 + $0x24] ss:$8 sps:$4 sm:$0xff]  }
  0xac   : > { %810 = vmatprep.subr.bf16.mxu0 %v4210_v8  ;;  %4077 = vmatprep.subr.bf16.mxu1 %v4210_v8  ;;  %v4276_v44 = vld [vmem:[#allocation7 + $0xa4] ss:$8 sps:$4 sm:$0xff]   ;;  %v4300_v45 = vld [vmem:[%s5229_s28 + $0x10] ss:$8 sps:$4 sm:$0xff]   ;;  %v4302_v46 = vld [vmem:[%s5229_s28 + $0xa0] ss:$8 sps:$4 sm:$0xff]  }
  0xad   : > { %v4254_v47 = vld [vmem:[#allocation7 + $0x20] ss:$8 sps:$4 sm:$0xff]   ;;  %v4255_v49 = vld [vmem:[#allocation7 + $0x34] ss:$8 sps:$4 sm:$0xff]   ;;  %v4306_v52 = vld [vmem:[%s5229_s28 + $0xb0] ss:$8 sps:$4 sm:$0xff]  }
  0xae   : > { %v4278_v48 = vld [vmem:[#allocation7 + $0xa0] ss:$8 sps:$4 sm:$0xff]   ;;  %v4279_v50 = vld [vmem:[#allocation7 + $0xb4] ss:$8 sps:$4 sm:$0xff]   ;;  %v4257_v53 = vld [vmem:[#allocation7 + $0x30] ss:$8 sps:$4 sm:$0xff]  }
  0xaf   : > { %811 = vmatpush1.bf16.msra.mxu0 %v4212_v9  ;;  %4093 = vmatpush1.bf16.msra.mxu1 %v4212_v9  ;;  %v4304_v51 = vld [vmem:[%s5229_s28 + $0x20] ss:$8 sps:$4 sm:$0xff]   ;;  %v4281_v54 = vld [vmem:[#allocation7 + $0xb0] ss:$8 sps:$4 sm:$0xff]   ;;  %v4258_v55 = vld [vmem:[#allocation7 + $0x44] ss:$8 sps:$4 sm:$0xff]  }
  0xb0   : > { %812 = vmatprep.subr.bf16.mxu0 %v4213_v10  ;;  %4078 = vmatprep.subr.bf16.mxu1 %v4213_v10  ;;  %v4282_v56 = vld [vmem:[#allocation7 + $0xc4] ss:$8 sps:$4 sm:$0xff]   ;;  %v4308_v57 = vld [vmem:[%s5229_s28 + $0x30] ss:$8 sps:$4 sm:$0xff]   ;;  %v4310_v58 = vld [vmem:[%s5229_s28 + $0xc0] ss:$8 sps:$4 sm:$0xff]  }
  0xb1   : > { %v4260_v59 = vld [vmem:[#allocation7 + $0x40] ss:$8 sps:$4 sm:$0xff]   ;;  %v4261_v61 = vld [vmem:[#allocation7 + $0x54] ss:$8 sps:$4 sm:$0xff]   ;;  %v4314_v0 = vld [vmem:[%s5229_s28 + $0xd0] ss:$8 sps:$4 sm:$0xff]  }
  0xb2   : > { %v4284_v60 = vld [vmem:[#allocation7 + $0xc0] ss:$8 sps:$4 sm:$0xff]   ;;  %v4285_v62 = vld [vmem:[#allocation7 + $0xd4] ss:$8 sps:$4 sm:$0xff]   ;;  %v4263_v1 = vld [vmem:[#allocation7 + $0x50] ss:$8 sps:$4 sm:$0xff]  }
  0xb3   : > { %813 = vmatpush1.bf16.msra.mxu0 %v4215_v11  ;;  %4094 = vmatpush1.bf16.msra.mxu1 %v4215_v11  ;;  %v4312_v63 = vld [vmem:[%s5229_s28 + $0x40] ss:$8 sps:$4 sm:$0xff]   ;;  %v4287_v2 = vld [vmem:[#allocation7 + $0xd0] ss:$8 sps:$4 sm:$0xff]   ;;  %v4264_v3 = vld [vmem:[#allocation7 + $0x64] ss:$8 sps:$4 sm:$0xff]  }
  0xb4   : > { %814 = vmatprep.subr.bf16.mxu0 %v4216_v12  ;;  %4079 = vmatprep.subr.bf16.mxu1 %v4216_v12  ;;  %v4288_v4 = vld [vmem:[#allocation7 + $0xe4] ss:$8 sps:$4 sm:$0xff]   ;;  %v4316_v5 = vld [vmem:[%s5229_s28 + $0x50] ss:$8 sps:$4 sm:$0xff]   ;;  %v4318_v6 = vld [vmem:[%s5229_s28 + $0xe0] ss:$8 sps:$4 sm:$0xff]  }
  0xb5   : > { %v4266_v7 = vld [vmem:[#allocation7 + $0x60] ss:$8 sps:$4 sm:$0xff]   ;;  %v4267_v9 = vld [vmem:[#allocation7 + $0x74] ss:$8 sps:$4 sm:$0xff]   ;;  %v4322_v12 = vld [vmem:[%s5229_s28 + $0xf0] ss:$8 sps:$4 sm:$0xff]  }
  0xb6   : > { %v4290_v8 = vld [vmem:[#allocation7 + $0xe0] ss:$8 sps:$4 sm:$0xff]   ;;  %v4291_v10 = vld [vmem:[#allocation7 + $0xf4] ss:$8 sps:$4 sm:$0xff]   ;;  %v4269_v13 = vld [vmem:[#allocation7 + $0x70] ss:$8 sps:$4 sm:$0xff]  }
  0xb7   : > { %815 = vmatpush1.bf16.msra.mxu0 %v4218_v14  ;;  %4095 = vmatpush1.bf16.msra.mxu1 %v4218_v14  ;;  %v4320_v11 = vld [vmem:[%s5229_s28 + $0x60] ss:$8 sps:$4 sm:$0xff]   ;;  %v4293_v14 = vld [vmem:[#allocation7 + $0xf0] ss:$8 sps:$4 sm:$0xff]   ;;  %s397_s8 = scalar_select %p396_p2, %s4910_s21, 1  ;;  %vm1251_vm0 = vcmask 7168  }
  0xb8   : > { %816 = vmatprep.subr.bf16.mxu0 %v4219_v15  ;;  %4080 = vmatprep.subr.bf16.mxu1 %v4219_v15  ;;  %v4324_v15 = vld [vmem:[%s5229_s28 + $0x70] ss:$8 sps:$4 sm:$0xff]   ;;  %s6731_s29 = scalar_lea.vmem [#allocation15], %s5219_s27  ;;  %s3907_s7 = sshll.u32 %s4910_s21, 7 }
  0xb9   : > { %s3777_s17 = sshll.u32 %s397_s8, 1  ;;  %s3594_s2 = sshll.u32 %s6731_s29, 4  ;;  %s6827_s2 = int_to_ptr.vmem [resolvable:$true] %s3594_s2 }
  0xba   : > { %s399_s11 = scalar_lea.vmem %s6882_s4, %s3777_s17  ;;  %s6825_s21 = scalar_lea.hbm %s6883_s5, %s3907_s7 }
  0xbb   : > { %817 = vmatpush1.bf16.msra.mxu0 %v4221_v16  ;;  %4096 = vmatpush1.bf16.msra.mxu1 %v4221_v16  ;;  %v472_v16 = vlaneseq  ;;  %s3579_s14 = scalar_lea.sflag [#allocation9], %s5216_s16  ;;  %s4828_s25 = scalar_lea.vmem %s6827_s2, 4096 }
  0xbc   : > { %818 = vmatprep.subr.bf16.mxu0 %v4222_v17  ;;  %4081 = vmatprep.subr.bf16.mxu1 %v4222_v17  ;;  %p4829_p13 = scmp.ne.s32.totalorder %s6827_s2, %s4828_s25  ;;  %p7265_p11 = scmp.ne.s32.totalorder %s6997_s10, 0 }
  0xbd   : > { %v5289_v17 = vshrl.u32 %v472_v16, 7  ;;  %s4929_s1 = smov [#allocation15]  }
  0xbe   : > { %p4830_p0 = pnand %p4829_p13, %p7265_p11  ;;  %s4832_s13 = sshll.u32 %s4929_s1, 4  ;;  %s4833_s13 = int_to_ptr.vmem [resolvable:$false] %s4832_s13 }
  0xbf   : > { %819 = vmatpush1.bf16.msra.mxu0 %v4224_v18  ;;  %4097 = vmatpush1.bf16.msra.mxu1 %v4224_v18  ;;  %v474_v18 = vsub.s32 0, %v5289_v17  ;;  %s4834_s27 = scalar_lea.vmem %s4833_s13, 8192  ;;  %p4835_p10 = scmp.lt.s32.totalorder %s6827_s2, %s4833_s13 }
  0xc0   : > { %820 = vmatprep.subr.bf16.mxu0 %v4225_v19  ;;  %4082 = vmatprep.subr.bf16.mxu1 %v4225_v19  ;;  %v5295_v19 = vld [vmem:[%s399_s11] sm:$0x3]  ;;  %p4831_p5 = pneg %p4830_p0  ;;  %p4836_p7 = scmp.lt.s32.totalorder %s4834_s27, %s4828_s25 }
  0xc1   : > { %v5298_v20 = vrot.slane %v5295_v19, %v474_v18 }
  0xc2   : > { %p4837_p4 = por %p4836_p7, %p4835_p10 }
  0xc3   : > { %821 = vmatpush1.bf16.msra.mxu0 %v4227_v21  ;;  %4098 = vmatpush1.bf16.msra.mxu1 %v4227_v21 }
  0xc4   : > { %822 = vmatprep.subr.bf16.mxu0 %v4228_v22  ;;  %4083 = vmatprep.subr.bf16.mxu1 %v4228_v22  ;;  %p4838_p6 = pnand %p4837_p4, %p4831_p5 }
  0xc7   : > { %823 = vmatpush1.bf16.msra.mxu0 %v4230_v23  ;;  %4099 = vmatpush1.bf16.msra.mxu1 %v4230_v23 }
  0xc8   : > { %824 = vmatprep.subr.bf16.mxu0 %v4231_v24  ;;  %4084 = vmatprep.subr.bf16.mxu1 %v4231_v24 }
  0xcb   : > { %825 = vmatpush1.bf16.msra.mxu0 %v4233_v25  ;;  %4100 = vmatpush1.bf16.msra.mxu1 %v4233_v25 }
  0xcc   : > { %826 = vmatprep.subr.bf16.mxu0 %v4234_v26  ;;  %4085 = vmatprep.subr.bf16.mxu1 %v4234_v26 }
  0xcf   : > { %827 = vmatpush1.bf16.msra.mxu0 %v4236_v27  ;;  %4101 = vmatpush1.bf16.msra.mxu1 %v4236_v27 }
  0xd0   : > { %828 = vmatprep.subr.bf16.mxu0 %v4237_v28  ;;  %4086 = vmatprep.subr.bf16.mxu1 %v4237_v28 }
  0xd3   : > { %829 = vmatpush1.bf16.msra.mxu0 %v4239_v29  ;;  %4102 = vmatpush1.bf16.msra.mxu1 %v4239_v29 }
  0xd4   : > { %830 = vmatprep.subr.bf16.mxu0 %v4240_v30  ;;  %4087 = vmatprep.subr.bf16.mxu1 %v4240_v30 }
  0xd7   : > { %831 = vmatpush1.bf16.msra.mxu0 %v4242_v31  ;;  %4103 = vmatpush1.bf16.msra.mxu1 %v4242_v31 }
  0xd8   : > { %832 = vmatprep.subr.bf16.mxu0 %v4243_v32  ;;  %4088 = vmatprep.subr.bf16.mxu1 %v4243_v32 }
  0xdb   : > { %833 = vmatpush1.bf16.msra.mxu0 %v4245_v33  ;;  %4104 = vmatpush1.bf16.msra.mxu1 %v4245_v33 }
  0xdc   : > { %3913 = vmatprep.subr.bf16.mxu1 %v4294_v34 }
  0xde   : > { %835 = vmatmul.mubr.bf16.vlgmr.msra.gmra.mrb[0].mxu0 %v4246_v35  ;;  %915 = vmatmul.mubr.bf16.vlgmr.msra.gmra.mrb[0].mxu1 %v4270_v36 }
  0xdf   : > { %844 = vmatprep.mubr.bf16.mxu0 %v4249_v37  ;;  %924 = vmatprep.mubr.bf16.mxu1 %v4273_v38 }
  0xe4   : > { %3914 = vmatpush3.bf16.xpose.msra.mxu1 %v4296_v39 }
  0xe5   : > { %3915 = vmatprep.subr.bf16.mxu1 %v4298_v40 }
  0xe6   : > { %845 = vmatmul.mubr.bf16.gmra.mrb[4].mxu0 %v4251_v41  ;;  %925 = vmatmul.mubr.bf16.gmra.mrb[4].mxu1 %v4275_v42 }
  0xe7   : > { %854 = vmatprep.mubr.bf16.mxu0 %v4252_v43  ;;  %934 = vmatprep.mubr.bf16.mxu1 %v4276_v44 }
  0xec   : > { %3916 = vmatpush3.bf16.xpose.msra.mxu1 %v4300_v45 }
  0xed   : > { %3917 = vmatprep.subr.bf16.mxu1 %v4302_v46 }
  0xee   : > { %855 = vmatmul.mubr.bf16.gmra.mrb[8].mxu0 %v4254_v47  ;;  %935 = vmatmul.mubr.bf16.gmra.mrb[8].mxu1 %v4278_v48 }
  0xef   : > { %864 = vmatprep.mubr.bf16.mxu0 %v4255_v49  ;;  %944 = vmatprep.mubr.bf16.mxu1 %v4279_v50 }
  0xf4   : > { %3918 = vmatpush3.bf16.xpose.msra.mxu1 %v4304_v51 }
  0xf5   : > { %3919 = vmatprep.subr.bf16.mxu1 %v4306_v52 }
  0xf6   : > { %865 = vmatmul.mubr.bf16.gmra.mrb[12].mxu0 %v4257_v53  ;;  %945 = vmatmul.mubr.bf16.gmra.mrb[12].mxu1 %v4281_v54 }
  0xf7   : > { %874 = vmatprep.mubr.bf16.mxu0 %v4258_v55  ;;  %954 = vmatprep.mubr.bf16.mxu1 %v4282_v56 }
  0xfc   : > { %3920 = vmatpush3.bf16.xpose.msra.mxu1 %v4308_v57 }
  0xfd   : > { %3921 = vmatprep.subr.bf16.mxu1 %v4310_v58 }
  0xfe   : > { %875 = vmatmul.mubr.bf16.gmra.mrb[16].mxu0 %v4260_v59  ;;  %955 = vmatmul.mubr.bf16.gmra.mrb[16].mxu1 %v4284_v60 }
  0xff   : > { %884 = vmatprep.mubr.bf16.mxu0 %v4261_v61  ;;  %964 = vmatprep.mubr.bf16.mxu1 %v4285_v62 }
 0x104   : > { %3922 = vmatpush3.bf16.xpose.msra.mxu1 %v4312_v63 }
 0x105   : > { %3923 = vmatprep.subr.bf16.mxu1 %v4314_v0 }
 0x106   : > { %885 = vmatmul.mubr.bf16.gmra.mrb[20].mxu0 %v4263_v1  ;;  %965 = vmatmul.mubr.bf16.gmra.mrb[20].mxu1 %v4287_v2 }
 0x107   : > { %894 = vmatprep.mubr.bf16.mxu0 %v4264_v3  ;;  %974 = vmatprep.mubr.bf16.mxu1 %v4288_v4 }
 0x10c   : > { %3924 = vmatpush3.bf16.xpose.msra.mxu1 %v4316_v5 }
 0x10d   : > { %3925 = vmatprep.subr.bf16.mxu1 %v4318_v6 }
 0x10e   : > { %895 = vmatmul.mubr.bf16.gmra.mrb[24].mxu0 %v4266_v7  ;;  %975 = vmatmul.mubr.bf16.gmra.mrb[24].mxu1 %v4290_v8 }
 0x10f   : > { %904 = vmatprep.mubr.bf16.mxu0 %v4267_v9  ;;  %984 = vmatprep.mubr.bf16.mxu1 %v4291_v10 }
 0x114   : > { %3926 = vmatpush3.bf16.xpose.msra.mxu1 %v4320_v11 }
 0x115   : > { %3927 = vmatprep.subr.bf16.mxu1 %v4322_v12 }
 0x116   : > { %905 = vmatmul.mubr.bf16.gmra.mrb[28].mxu0 %v4269_v13  ;;  %985 = vmatmul.mubr.bf16.gmra.mrb[28].mxu1 %v4293_v14 }
 0x11c   : > { %3928 = vmatpush3.bf16.xpose.msra.mxu1 %v4324_v15 }
 0x1b1   : > { %v836_v21 = vpop.f32.mrb[0].mxu0  ;;  %v916_v22 = vpop.f32.mrb[0].mxu1 }
 0x1b2   : > { %v5300_v23 = vpop.f32.mrb[1].mxu0  ;;  %v917_v24 = vadd.f32 %v916_v22, %v5298_v20  ;;  %v5303_v25 = vpop.f32.mrb[1].mxu1  ;;  %v837_v28 = vadd.f32 %v836_v21, %v5298_v20 }
 0x1b3   : > { %7012 = vst [vmem:[#allocation24_spill] sm:$0xff] %v5300_v23  ;;  %7013 = vst [vmem:[#allocation25_spill] sm:$0xff] %v5303_v25  ;;  %v840_v26 = vpop.f32.mrb[2].mxu0  ;;  %v920_v27 = vpop.f32.mrb[2].mxu1 }
 0x1b4   : > { %v841_v29 = vadd.f32 %v840_v26, %v5298_v20  ;;  %v5307_v30 = vpop.f32.mrb[3].mxu0  ;;  %v921_v31 = vadd.f32 %v920_v27, %v5298_v20  ;;  %v5310_v32 = vpop.f32.mrb[3].mxu1 }
 0x1b5   : > { %7014 = vst [vmem:[#allocation26_spill] sm:$0xff] %v5307_v30  ;;  %7015 = vst [vmem:[#allocation27_spill] sm:$0xff] %v5310_v32 }
 0x1b6   : > { %v995_v33 = vpack.c.bf16 %v841_v29, %v837_v28  ;;  %v5312_v34 = vpack.c.bf16 %v921_v31, %v917_v24 }
 0x1b8   : > { %3929 = vmatprep.mubr.bf16.mxu1 %v995_v33 }
 0x1b9   : > { %v846_v35 = vpop.f32.mrb[4].mxu0  ;;  %3930 = vmatmul.mubr.bf16.vlgmr.msra.gmra.mrb[32].mxu1 %v995_v33  ;;  %v926_v36 = vpop.f32.mrb[4].mxu1 }
 0x1ba   : > { %v5314_v37 = vpop.f32.mrb[5].mxu0  ;;  %v927_v38 = vadd.f32 %v926_v36, %v5298_v20  ;;  %v5317_v39 = vpop.f32.mrb[5].mxu1  ;;  %v847_v42 = vadd.f32 %v846_v35, %v5298_v20 }
 0x1bb   : > { %7016 = vst [vmem:[#allocation28_spill] sm:$0xff] %v5314_v37  ;;  %7017 = vst [vmem:[#allocation29_spill] sm:$0xff] %v5317_v39  ;;  %v850_v40 = vpop.f32.mrb[6].mxu0  ;;  %v930_v41 = vpop.f32.mrb[6].mxu1  ;;  %v1413_v39 = vld [vmem:[%s5222_s30 + $0x88] sm:$0xff] }
 0x1bc   : > { %v851_v43 = vadd.f32 %v850_v40, %v5298_v20  ;;  %v5321_v44 = vpop.f32.mrb[7].mxu0  ;;  %v931_v45 = vadd.f32 %v930_v41, %v5298_v20  ;;  %v5324_v46 = vpop.f32.mrb[7].mxu1  ;;  %v1421_v37 = vld [vmem:[%s5222_s30 + $0xc8] sm:$0xff] }
 0x1bd   : > { %7018 = vst [vmem:[#allocation30_spill] sm:$0xff] %v5321_v44  ;;  %7019 = vst [vmem:[#allocation31_spill] sm:$0xff] %v5324_v46 }
 0x1be   : > { %v996_v47 = vpack.c.bf16 %v851_v43, %v847_v42  ;;  %v5326_v48 = vpack.c.bf16 %v931_v45, %v927_v38 }
 0x1c0   : > { %3931 = vmatprep.mubr.bf16.mxu1 %v996_v47 }
 0x1c1   : > { %v856_v49 = vpop.f32.mrb[8].mxu0  ;;  %3932 = vmatmul.mubr.bf16.gmra.mrb[36].mxu1 %v996_v47  ;;  %v936_v50 = vpop.f32.mrb[8].mxu1 }
 0x1c2   : > { %v5328_v51 = vpop.f32.mrb[9].mxu0  ;;  %v937_v52 = vadd.f32 %v936_v50, %v5298_v20  ;;  %v5331_v53 = vpop.f32.mrb[9].mxu1  ;;  %v857_v56 = vadd.f32 %v856_v49, %v5298_v20 }
 0x1c3   : > { %7020 = vst [vmem:[#allocation32_spill] sm:$0xff] %v5328_v51  ;;  %7021 = vst [vmem:[#allocation33_spill] sm:$0xff] %v5331_v53  ;;  %v860_v54 = vpop.f32.mrb[10].mxu0  ;;  %v940_v55 = vpop.f32.mrb[10].mxu1 }
 0x1c4   : > { %v861_v57 = vadd.f32 %v860_v54, %v5298_v20  ;;  %v5335_v58 = vpop.f32.mrb[11].mxu0  ;;  %v941_v59 = vadd.f32 %v940_v55, %v5298_v20  ;;  %v5338_v60 = vpop.f32.mrb[11].mxu1  ;;  %v478_v54 = vsub.s32 1, %v5289_v17 }
 0x1c5   : > { %7022 = vst [vmem:[#allocation34_spill] sm:$0xff] %v5335_v58  ;;  %7023 = vst [vmem:[#allocation35_spill] sm:$0xff] %v5338_v60 }
 0x1c6   : > { %v997_v61 = vpack.c.bf16 %v861_v57, %v857_v56  ;;  %v5340_v62 = vpack.c.bf16 %v941_v59, %v937_v52  ;;  %v5384_v57 = vrot.slane %v5295_v19, %v478_v54 }
 0x1c8   : > { %3933 = vmatprep.mubr.bf16.mxu1 %v997_v61  ;;  %7036 = vst [vmem:[#allocation48_spill] sm:$0xff] %v5384_v57 }
 0x1c9   : > { %v866_v63 = vpop.f32.mrb[12].mxu0  ;;  %3934 = vmatmul.mubr.bf16.gmra.mrb[40].mxu1 %v997_v61  ;;  %v946_v0 = vpop.f32.mrb[12].mxu1 }
 0x1ca   : > { %v5342_v1 = vpop.f32.mrb[13].mxu0  ;;  %v947_v2 = vadd.f32 %v946_v0, %v5298_v20  ;;  %v5345_v3 = vpop.f32.mrb[13].mxu1  ;;  %v867_v6 = vadd.f32 %v866_v63, %v5298_v20 }
 0x1cb   : > { %7024 = vst [vmem:[#allocation36_spill] sm:$0xff] %v5342_v1  ;;  %7025 = vst [vmem:[#allocation37_spill] sm:$0xff] %v5345_v3  ;;  %v870_v4 = vpop.f32.mrb[14].mxu0  ;;  %v950_v5 = vpop.f32.mrb[14].mxu1  ;;  %v1411_v3 = vld [vmem:[%s5222_s30 + $0x78] sm:$0xff] }
 0x1cc   : > { %v871_v7 = vadd.f32 %v870_v4, %v5298_v20  ;;  %v5349_v8 = vpop.f32.mrb[15].mxu0  ;;  %v951_v9 = vadd.f32 %v950_v5, %v5298_v20  ;;  %v5352_v10 = vpop.f32.mrb[15].mxu1  ;;  %v1419_v1 = vld [vmem:[%s5222_s30 + $0xb8] sm:$0xff] }
 0x1cd   : > { %7026 = vst [vmem:[#allocation38_spill] sm:$0xff] %v5349_v8  ;;  %7027 = vst [vmem:[#allocation39_spill] sm:$0xff] %v5352_v10 }
 0x1ce   : > { %v998_v11 = vpack.c.bf16 %v871_v7, %v867_v6  ;;  %v5354_v12 = vpack.c.bf16 %v951_v9, %v947_v2 }
 0x1d0   : > { %3935 = vmatprep.mubr.bf16.mxu1 %v998_v11 }
 0x1d1   : > { %v876_v13 = vpop.f32.mrb[16].mxu0  ;;  %3936 = vmatmul.mubr.bf16.gmra.mrb[44].mxu1 %v998_v11  ;;  %v956_v14 = vpop.f32.mrb[16].mxu1 }
 0x1d2   : > { %v5356_v15 = vpop.f32.mrb[17].mxu0  ;;  %v957_v16 = vadd.f32 %v956_v14, %v5298_v20  ;;  %v5359_v18 = vpop.f32.mrb[17].mxu1  ;;  %v877_v24 = vadd.f32 %v876_v13, %v5298_v20 }
 0x1d3   : > { %7028 = vst [vmem:[#allocation40_spill] sm:$0xff] %v5356_v15  ;;  %7029 = vst [vmem:[#allocation41_spill] sm:$0xff] %v5359_v18  ;;  %v880_v21 = vpop.f32.mrb[18].mxu0  ;;  %v960_v22 = vpop.f32.mrb[18].mxu1  ;;  %v1417_v15 = vld [vmem:[%s5222_s30 + $0xa8] sm:$0xff] }
 0x1d4   : > { %v881_v26 = vadd.f32 %v880_v21, %v5298_v20  ;;  %v5363_v27 = vpop.f32.mrb[19].mxu0  ;;  %v961_v28 = vadd.f32 %v960_v22, %v5298_v20  ;;  %v5366_v29 = vpop.f32.mrb[19].mxu1 }
 0x1d5   : > { %7030 = vst [vmem:[#allocation42_spill] sm:$0xff] %v5363_v27  ;;  %7031 = vst [vmem:[#allocation43_spill] sm:$0xff] %v5366_v29 }
 0x1d6   : > { %v999_v31 = vpack.c.bf16 %v881_v26, %v877_v24  ;;  %v5368_v33 = vpack.c.bf16 %v961_v28, %v957_v16 }
 0x1d8   : > { %3937 = vmatprep.mubr.bf16.mxu1 %v999_v31 }
 0x1d9   : > { %v886_v35 = vpop.f32.mrb[20].mxu0  ;;  %3938 = vmatmul.mubr.bf16.gmra.mrb[48].mxu1 %v999_v31  ;;  %v966_v36 = vpop.f32.mrb[20].mxu1 }
 0x1da   : > { %v5370_v38 = vpop.f32.mrb[21].mxu0  ;;  %v967_v40 = vadd.f32 %v966_v36, %v5298_v20  ;;  %v5373_v41 = vpop.f32.mrb[21].mxu1  ;;  %v887_v45 = vadd.f32 %v886_v35, %v5298_v20 }
 0x1db   : > { %7032 = vst [vmem:[#allocation44_spill] sm:$0xff] %v5370_v38  ;;  %7033 = vst [vmem:[#allocation45_spill] sm:$0xff] %v5373_v41  ;;  %v890_v42 = vpop.f32.mrb[22].mxu0  ;;  %v970_v43 = vpop.f32.mrb[22].mxu1  ;;  %v1409_v41 = vld [vmem:[%s5222_s30 + $0x68] sm:$0xff] }
 0x1dc   : > { %v891_v47 = vadd.f32 %v890_v42, %v5298_v20  ;;  %v5377_v49 = vpop.f32.mrb[23].mxu0  ;;  %v971_v50 = vadd.f32 %v970_v43, %v5298_v20  ;;  %v5380_v52 = vpop.f32.mrb[23].mxu1 }
 0x1dd   : > { %7034 = vst [vmem:[#allocation46_spill] sm:$0xff] %v5377_v49  ;;  %7035 = vst [vmem:[#allocation47_spill] sm:$0xff] %v5380_v52 }
 0x1de   : > { %v1000_v55 = vpack.c.bf16 %v891_v47, %v887_v45  ;;  %v1008_v56 = vpack.c.bf16 %v971_v50, %v967_v40 }
 0x1e0   : > { %3939 = vmatprep.mubr.bf16.mxu1 %v1000_v55 }
 0x1e1   : > { %v896_v59 = vpop.f32.mrb[24].mxu0  ;;  %3940 = vmatmul.mubr.bf16.gmra.mrb[52].mxu1 %v1000_v55  ;;  %v976_v61 = vpop.f32.mrb[24].mxu1 }
 0x1e2   : > { %v5386_v63 = vpop.f32.mrb[25].mxu0  ;;  %v977_v0 = vadd.f32 %v976_v61, %v5298_v20  ;;  %v978_v2 = vpop.f32.mrb[25].mxu1  ;;  %v897_v17 = vadd.f32 %v896_v59, %v5298_v20 }
 0x1e3   : > { %7037 = vst [vmem:[#allocation49_spill] sm:$0xff] %v5386_v63  ;;  %v900_v4 = vpop.f32.mrb[26].mxu0  ;;  %v5390_v5 = vadd.f32 %v978_v2, %v5384_v57  ;;  %v980_v6 = vpop.f32.mrb[26].mxu1  ;;  %v1415_v63 = vld [vmem:[%s5222_s30 + $0x98] sm:$0xff] }
 0x1e4   : > { %v901_v7 = vadd.f32 %v900_v4, %v5298_v20  ;;  %v5394_v9 = vpop.f32.mrb[27].mxu0  ;;  %v981_v19 = vadd.f32 %v980_v6, %v5298_v20  ;;  %v982_v11 = vpop.f32.mrb[27].mxu1  ;;  %v4926_v4 = vmov -inf   ;;  %v1398_v6 = vld [vmem:[%s5222_s30 + $0x10] sm:$0xff] }
 0x1e5   : > { %7038 = vst [vmem:[#allocation50_spill] sm:$0xff] %v5390_v5  ;;  %7039 = vst [vmem:[#allocation51_spill] sm:$0xff] %v5394_v9  ;;  %v5398_v16 = vadd.f32 %v982_v11, %v5384_v57 }
 0x1e6   : > { %v1001_v13 = vpack.c.bf16 %v901_v7, %v897_v17  ;;  %v1009_v14 = vpack.c.bf16 %v981_v19, %v977_v0  ;;  %1252 = vst.msk [vmem:[#allocation4] sm:$0xff] %vm1251_vm0, %v4926_v4  ;;  %1253 = vst.msk [vmem:[#allocation4 + $0x8] sm:$0xff] %vm1251_vm0, %v4926_v4 }
 0x1e7   : > { %7040 = vst [vmem:[#allocation52_spill] sm:$0xff] %v5398_v16  ;;  %1254 = vst.msk [vmem:[#allocation4 + $0x10] sm:$0xff] %vm1251_vm0, %v4926_v4 }
 0x1e8   : > { %3941 = vmatprep.mubr.bf16.mxu1 %v1001_v13  ;;  %1255 = vst.msk [vmem:[#allocation4 + $0x18] sm:$0xff] %vm1251_vm0, %v4926_v4  ;;  %1256 = vst.msk [vmem:[#allocation4 + $0x20] sm:$0xff] %vm1251_vm0, %v4926_v4 }
 0x1e9   : > { %v906_v21 = vpop.f32.mrb[28].mxu0  ;;  %3942 = vmatmul.mubr.bf16.gmra.mrb[56].mxu1 %v1001_v13  ;;  %v986_v22 = vpop.f32.mrb[28].mxu1  ;;  %1257 = vst.msk [vmem:[#allocation4 + $0x28] sm:$0xff] %vm1251_vm0, %v4926_v4  ;;  %1258 = vst.msk [vmem:[#allocation4 + $0x30] sm:$0xff] %vm1251_vm0, %v4926_v4  ;;  %v1432_v13 = vunpack.c.l.bf16 %v1398_v6 }
 0x1ea   : > { %v5400_v24 = vpop.f32.mrb[29].mxu0  ;;  %v987_v26 = vadd.f32 %v986_v22, %v5298_v20  ;;  %v988_v28 = vpop.f32.mrb[29].mxu1  ;;  %v907_v40 = vadd.f32 %v906_v21, %v5298_v20  ;;  %1259 = vst.msk [vmem:[#allocation4 + $0x38] sm:$0xff] %vm1251_vm0, %v4926_v4  ;;  %1260 = vst.msk [vmem:[#allocation4 + $0x40] sm:$0xff] %vm1251_vm0, %v4926_v4  ;;  %v1433_v21 = vunpack.c.h.bf16 %v1398_v6 }
 0x1eb   : > { %7041 = vst [vmem:[#allocation53_spill] sm:$0xff] %v5400_v24  ;;  %v910_v31 = vpop.f32.mrb[30].mxu0  ;;  %v5404_v35 = vadd.f32 %v988_v28, %v5384_v57  ;;  %v990_v36 = vpop.f32.mrb[30].mxu1  ;;  %1261 = vst.msk [vmem:[#allocation4 + $0x48] sm:$0xff] %vm1251_vm0, %v4926_v4 }
 0x1ec   : > { %v911_v42 = vadd.f32 %v910_v31, %v5298_v20  ;;  %v5408_v43 = vpop.f32.mrb[31].mxu0  ;;  %v991_v45 = vadd.f32 %v990_v36, %v5298_v20  ;;  %v992_v47 = vpop.f32.mrb[31].mxu1  ;;  %v1396_v20 = vld [vmem:[%s5222_s30] sm:$0xff]  ;;  %1262 = vst.msk [vmem:[#allocation4 + $0x50] sm:$0xff] %vm1251_vm0, %v4926_v4  ;;  %1263 = vst.msk [vmem:[#allocation4 + $0x58] sm:$0xff] %vm1251_vm0, %v4926_v4 }
 0x1ed   : > { %7042 = vst [vmem:[#allocation54_spill] sm:$0xff] %v5404_v35  ;;  %7043 = vst [vmem:[#allocation55_spill] sm:$0xff] %v5408_v43  ;;  %v5412_v55 = vadd.f32 %v992_v47, %v5384_v57  ;;  %v1429_v59 = vunpack.c.h.bf16 %v1396_v20  ;;  %v1400_v47 = vld [vmem:[%s5222_s30 + $0x20] sm:$0xff] }
 0x1ee   : > { %v1002_v50 = vpack.c.bf16 %v911_v42, %v907_v40  ;;  %v1010_v54 = vpack.c.bf16 %v991_v45, %v987_v26  ;;  %1264 = vst.msk [vmem:[#allocation4 + $0x60] sm:$0xff] %vm1251_vm0, %v4926_v4  ;;  %1265 = vst.msk [vmem:[#allocation4 + $0x68] sm:$0xff] %vm1251_vm0, %v4926_v4 }
 0x1ef   : > { %7044 = vst [vmem:[#allocation56_spill] sm:$0xff] %v5412_v55  ;;  %1266 = vst.msk [vmem:[#allocation4 + $0x70] sm:$0xff] %vm1251_vm0, %v4926_v4 }
 0x1f0   : > { %3943 = vmatprep.mubr.bf16.mxu1 %v1002_v50  ;;  %1267 = vst.msk [vmem:[#allocation4 + $0x78] sm:$0xff] %vm1251_vm0, %v4926_v4  ;;  %1268 = vst.msk [vmem:[#allocation4 + $0x80] sm:$0xff] %vm1251_vm0, %v4926_v4 }
 0x1f1   : > { %3944 = vmatmul.mubr.bf16.gmra.mrb[60].mxu1 %v1002_v50  ;;  %1269 = vst.msk [vmem:[#allocation4 + $0x88] sm:$0xff] %vm1251_vm0, %v4926_v4  ;;  %1270 = vst.msk [vmem:[#allocation4 + $0x90] sm:$0xff] %vm1251_vm0, %v4926_v4 }
 0x1f2   : > { %3945 = vmatprep.mubr.bf16.mxu1 %v5312_v34  ;;  %1271 = vst.msk [vmem:[#allocation4 + $0x98] sm:$0xff] %vm1251_vm0, %v4926_v4  ;;  %1272 = vst.msk [vmem:[#allocation4 + $0xa0] sm:$0xff] %vm1251_vm0, %v4926_v4 }
 0x1f3   : > { %1273 = vst.msk [vmem:[#allocation4 + $0xa8] sm:$0xff] %vm1251_vm0, %v4926_v4  ;;  %1274 = vst.msk [vmem:[#allocation4 + $0xb0] sm:$0xff] %vm1251_vm0, %v4926_v4 }
 0x1f4   : > { %1275 = vst.msk [vmem:[#allocation4 + $0xb8] sm:$0xff] %vm1251_vm0, %v4926_v4  ;;  %1276 = vst.msk [vmem:[#allocation4 + $0xc0] sm:$0xff] %vm1251_vm0, %v4926_v4 }
 0x1f5   : > { %1277 = vst.msk [vmem:[#allocation4 + $0xc8] sm:$0xff] %vm1251_vm0, %v4926_v4  ;;  %1278 = vst.msk [vmem:[#allocation4 + $0xd0] sm:$0xff] %vm1251_vm0, %v4926_v4 }
 0x1f6   : > { %1279 = vst.msk [vmem:[#allocation4 + $0xd8] sm:$0xff] %vm1251_vm0, %v4926_v4  ;;  %1280 = vst.msk [vmem:[#allocation4 + $0xe0] sm:$0xff] %vm1251_vm0, %v4926_v4 }
 0x1f7   : > { %1281 = vst.msk [vmem:[#allocation4 + $0xe8] sm:$0xff] %vm1251_vm0, %v4926_v4  ;;  %1282 = vst.msk [vmem:[#allocation4 + $0xf0] sm:$0xff] %vm1251_vm0, %v4926_v4 }
 0x1f8   : > { %1283 = vst.msk [vmem:[#allocation4 + $0xf8] sm:$0xff] %vm1251_vm0, %v4926_v4 }
 0x1f9   : > { %3946 = vmatmul.mubr.bf16.gmra.mrb[64].mxu1 %v5312_v34  ;;  %v1428_v34 = vunpack.c.l.bf16 %v1396_v20 }
 0x1fa   : > { %3947 = vmatprep.mubr.bf16.mxu1 %v5326_v48 }
 0x201   : > { %3948 = vmatmul.mubr.bf16.gmra.mrb[68].mxu1 %v5326_v48  ;;  %v1397_v48 = vld [vmem:[%s5222_s30 + $0x8] sm:$0xff] }
 0x202   : > { %3949 = vmatprep.mubr.bf16.mxu1 %v5340_v62  ;;  %v1431_v0 = vunpack.c.h.bf16 %v1397_v48 }
 0x209   : > { %3950 = vmatmul.mubr.bf16.gmra.mrb[72].mxu1 %v5340_v62  ;;  %v1430_v62 = vunpack.c.l.bf16 %v1397_v48  ;;  %v1401_v48 = vld [vmem:[%s5222_s30 + $0x28] sm:$0xff] }
 0x20a   : > { %3951 = vmatprep.mubr.bf16.mxu1 %v5354_v12  ;;  %v1439_v4 = vunpack.c.h.bf16 %v1401_v48 }
 0x211   : > { %3952 = vmatmul.mubr.bf16.gmra.mrb[76].mxu1 %v5354_v12 }
 0x212   : > { %3953 = vmatprep.mubr.bf16.mxu1 %v5368_v33 }
 0x219   : > { %3954 = vmatmul.mubr.bf16.gmra.mrb[80].mxu1 %v5368_v33 }
 0x21a   : > { %3955 = vmatprep.mubr.bf16.mxu1 %v1008_v56 }
 0x221   : > { %3956 = vmatmul.mubr.bf16.gmra.mrb[84].mxu1 %v1008_v56 }
 0x222   : > { %3957 = vmatprep.mubr.bf16.mxu1 %v1009_v14 }
 0x229   : > { %3958 = vmatmul.mubr.bf16.gmra.mrb[88].mxu1 %v1009_v14  ;;  %v1399_v14 = vld [vmem:[%s5222_s30 + $0x18] sm:$0xff] }
 0x22a   : > { %3959 = vmatprep.mubr.bf16.mxu1 %v1010_v54  ;;  %v1434_v26 = vunpack.c.l.bf16 %v1399_v14  ;;  %v1435_v31 = vunpack.c.h.bf16 %v1399_v14 }
 0x231   : > { %3960 = vmatmul.mubr.bf16.gmra.mrb[92].mxu1 %v1010_v54 }
 0x28c   : > { %v1622_v61 = vpop.f32.mrb[32].mxu1 }
 0x28d   : > { %v5426_v2 = vadd.f32 %v1622_v61, %v1428_v34  ;;  %v1624_v12 = vpop.f32.mrb[33].mxu1  ;;  %v1437_v61 = vunpack.c.h.bf16 %v1400_v47 }
 0x28e   : > { %v5460_v33 = vadd.f32 %v1624_v12, %v1429_v59  ;;  %v1626_v56 = vpop.f32.mrb[34].mxu1  ;;  %v1436_v59 = vunpack.c.l.bf16 %v1400_v47 }
 0x28f   : > { %v1628_v17 = vpop.f32.mrb[35].mxu1  ;;  %v5463_v7 = vadd.f32 %v1626_v56, %v1430_v62  ;;  %v1438_v62 = vunpack.c.l.bf16 %v1401_v48 }
 0x290   : > { %v5465_v19 = vadd.f32 %v1628_v17, %v1431_v0  ;;  %v1813_v11 = vmax.f32 %v5426_v2, %v5460_v33 }
 0x292   : > { %1814 = vmax.xlane.f32.xlu0 %v1813_v11  ;;  %v1816_v28 = vmax.f32 %v5463_v7, %v5465_v19 }
 0x294   : > { %v1632_v22 = vpop.f32.mrb[36].mxu1 }
 0x295   : > { %v5472_v36 = vadd.f32 %v1632_v22, %v1432_v13  ;;  %v1634_v40 = vpop.f32.mrb[37].mxu1  ;;  %v1402_v13 = vld [vmem:[%s5222_s30 + $0x30] sm:$0xff] }
 0x296   : > { %v5474_v42 = vadd.f32 %v1634_v40, %v1433_v21  ;;  %v1636_v45 = vpop.f32.mrb[38].mxu1  ;;  %1817 = vmax.xlane.f32.xlu0 %v1816_v28  ;;  %v1403_v28 = vld [vmem:[%s5222_s30 + $0x38] sm:$0xff]  ;;  %v4927_v40 = vmov 0   ;;  %v1441_v47 = vunpack.c.h.bf16 %v1402_v13 }
 0x297   : > { %v1638_v50 = vpop.f32.mrb[39].mxu1  ;;  %v5477_v54 = vadd.f32 %v1636_v45, %v1434_v26  ;;  %4196 = vset.pattern.permute.xlu0 %v4927_v40  ;;  %4197 = vset.pattern.permute.xlu1 %v4927_v40  ;;  %v1443_v48 = vunpack.c.h.bf16 %v1403_v28 }
 0x298   : > { %v5479_v20 = vadd.f32 %v1638_v50, %v1435_v31  ;;  %v1819_v34 = vmax.f32 %v5472_v36, %v5474_v42  ;;  %v1440_v31 = vunpack.c.l.bf16 %v1402_v13  ;;  %v1442_v50 = vunpack.c.l.bf16 %v1403_v28  ;;  %v1405_v13 = vld [vmem:[%s5222_s30 + $0x48] sm:$0xff] }
 0x299   : > { %v1446_v40 = vunpack.c.l.bf16 %v1405_v13 }
 0x29a   : > { %1820 = vmax.xlane.f32.xlu1 %v1819_v34  ;;  %v1822_v12 = vmax.f32 %v5477_v54, %v5479_v20 }
 0x29c   : > { %v1642_v0 = vpop.f32.mrb[40].mxu1 }
 0x29d   : > { %v5486_v56 = vadd.f32 %v1642_v0, %v1436_v59  ;;  %v1644_v6 = vpop.f32.mrb[41].mxu1 }
 0x29e   : > { %v5488_v17 = vadd.f32 %v1644_v6, %v1437_v61  ;;  %v1646_v11 = vpop.f32.mrb[42].mxu1  ;;  %1823 = vmax.xlane.f32.xlu1 %v1822_v12  ;;  %v1404_v12 = vld [vmem:[%s5222_s30 + $0x40] sm:$0xff] }
 0x29f   : > { %v5491_v14 = vadd.f32 %v1646_v11, %v1438_v62  ;;  %v1648_v21 = vpop.f32.mrb[43].mxu1 }
 0x2a0   : > { %v5493_v22 = vadd.f32 %v1648_v21, %v1439_v4  ;;  %v1825_v26 = vmax.f32 %v5486_v56, %v5488_v17 }
 0x2a1   : > { %7045 = vst [vmem:[#allocation57_spill] sm:$0xff] %v5491_v14 }
 0x2a2   : > { %7046 = vst [vmem:[#allocation58_spill] sm:$0xff] %v5493_v22  ;;  %1826 = vmax.xlane.f32.xlu0 %v1825_v26  ;;  %v1828_v45 = vmax.f32 %v5491_v14, %v5493_v22  ;;  %v1444_v26 = vunpack.c.l.bf16 %v1404_v12 }
 0x2a4   : > { %v1652_v34 = vpop.f32.mrb[44].mxu1  ;;  %1829 = vmax.xlane.f32.xlu1 %v1828_v45  ;;  %v4928_v45 = vmov 0.0  }
 0x2a5   : > { %v5500_v59 = vadd.f32 %v1652_v34, %v1440_v31  ;;  %v1654_v61 = vpop.f32.mrb[45].mxu1  ;;  %v1445_v31 = vunpack.c.h.bf16 %v1404_v12  ;;  %1285 = vst.msk [vmem:[#allocation5 + $0x8] sm:$0xff] %vm1251_vm0, %v4928_v45  ;;  %1284 = vst.msk [vmem:[#allocation5] sm:$0xff] %vm1251_vm0, %v4928_v45  ;;  %v1406_v12 = vld [vmem:[%s5222_s30 + $0x50] sm:$0xff] }
 0x2a6   : > { %v5502_v62 = vadd.f32 %v1654_v61, %v1441_v47  ;;  %v1656_v0 = vpop.f32.mrb[46].mxu1  ;;  %1286 = vst.msk [vmem:[#allocation5 + $0x10] sm:$0xff] %vm1251_vm0, %v4928_v45  ;;  %1287 = vst.msk [vmem:[#allocation5 + $0x18] sm:$0xff] %vm1251_vm0, %v4928_v45  ;;  %v1448_v16 = vunpack.c.l.bf16 %v1406_v12 }
 0x2a7   : > { %7047 = vst [vmem:[#allocation59_spill] sm:$0xff] %v5500_v59  ;;  %v5505_v4 = vadd.f32 %v1656_v0, %v1442_v50  ;;  %v1658_v6 = vpop.f32.mrb[47].mxu1  ;;  %1288 = vst.msk [vmem:[#allocation5 + $0x20] sm:$0xff] %vm1251_vm0, %v4928_v45  ;;  %v1447_v50 = vunpack.c.h.bf16 %v1405_v13 }
 0x2a8   : > { %7048 = vst [vmem:[#allocation60_spill] sm:$0xff] %v5502_v62  ;;  %v5507_v11 = vadd.f32 %v1658_v6, %v1443_v48  ;;  %v1831_v21 = vmax.f32 %v5500_v59, %v5502_v62  ;;  %1289 = vst.msk [vmem:[#allocation5 + $0x28] sm:$0xff] %vm1251_vm0, %v4928_v45  ;;  %v5986_v62 = vld [vmem:[#allocation4 + $0xc8] sm:$0xff]  ;;  %v6000_v59 = vld [vmem:[#allocation4 + $0xd0] sm:$0xff] }
 0x2a9   : > { %7049 = vst [vmem:[#allocation61_spill] sm:$0xff] %v5505_v4  ;;  %1290 = vst.msk [vmem:[#allocation5 + $0x30] sm:$0xff] %vm1251_vm0, %v4928_v45 }
 0x2aa   : > { %7050 = vst [vmem:[#allocation62_spill] sm:$0xff] %v5507_v11  ;;  %1832 = vmax.xlane.f32.xlu0 %v1831_v21  ;;  %v1834_v28 = vmax.f32 %v5505_v4, %v5507_v11  ;;  %1291 = vst.msk [vmem:[#allocation5 + $0x38] sm:$0xff] %vm1251_vm0, %v4928_v45 }
 0x2ab   : > { %1292 = vst.msk [vmem:[#allocation5 + $0x40] sm:$0xff] %vm1251_vm0, %v4928_v45  ;;  %1293 = vst.msk [vmem:[#allocation5 + $0x48] sm:$0xff] %vm1251_vm0, %v4928_v45 }
 0x2ac   : > { %1294 = vst.msk [vmem:[#allocation5 + $0x50] sm:$0xff] %vm1251_vm0, %v4928_v45  ;;  %1295 = vst.msk [vmem:[#allocation5 + $0x58] sm:$0xff] %vm1251_vm0, %v4928_v45  ;;  %v1662_v47 = vpop.f32.mrb[48].mxu1  ;;  %1835 = vmax.xlane.f32.xlu1 %v1834_v28 }
 0x2ad   : > { %1296 = vst.msk [vmem:[#allocation5 + $0x60] sm:$0xff] %vm1251_vm0, %v4928_v45  ;;  %1297 = vst.msk [vmem:[#allocation5 + $0x68] sm:$0xff] %vm1251_vm0, %v4928_v45  ;;  %v5546_v34 = vadd.f32 %v1662_v47, %v1444_v26  ;;  %v1664_v48 = vpop.f32.mrb[49].mxu1  ;;  %v1449_v26 = vunpack.c.h.bf16 %v1406_v12 }
 0x2ae   : > { %1298 = vst.msk [vmem:[#allocation5 + $0x70] sm:$0xff] %vm1251_vm0, %v4928_v45  ;;  %1299 = vst.msk [vmem:[#allocation5 + $0x78] sm:$0xff] %vm1251_vm0, %v4928_v45  ;;  %v5548_v61 = vadd.f32 %v1664_v48, %v1445_v31  ;;  %v1666_v0 = vpop.f32.mrb[50].mxu1 }
 0x2af   : > { %1300 = vst.msk [vmem:[#allocation5 + $0x80] sm:$0xff] %vm1251_vm0, %v4928_v45  ;;  %1301 = vst.msk [vmem:[#allocation5 + $0x88] sm:$0xff] %vm1251_vm0, %v4928_v45  ;;  %v5551_v6 = vadd.f32 %v1666_v0, %v1446_v40  ;;  %v1668_v21 = vpop.f32.mrb[51].mxu1 }
 0x2b0   : > { %1302 = vst.msk [vmem:[#allocation5 + $0x90] sm:$0xff] %vm1251_vm0, %v4928_v45  ;;  %1303 = vst.msk [vmem:[#allocation5 + $0x98] sm:$0xff] %vm1251_vm0, %v4928_v45  ;;  %v5553_v55 = vadd.f32 %v1668_v21, %v1447_v50  ;;  %v1837_v35 = vmax.f32 %v5546_v34, %v5548_v61  ;;  %v1408_v21 = vld [vmem:[%s5222_s30 + $0x60] sm:$0xff] }
 0x2b1   : > { %1304 = vst.msk [vmem:[#allocation5 + $0xa0] sm:$0xff] %vm1251_vm0, %v4928_v45  ;;  %1305 = vst.msk [vmem:[#allocation5 + $0xa8] sm:$0xff] %vm1251_vm0, %v4928_v45  ;;  %v1452_v29 = vunpack.c.l.bf16 %v1408_v21 }
 0x2b2   : > { %1306 = vst.msk [vmem:[#allocation5 + $0xb0] sm:$0xff] %vm1251_vm0, %v4928_v45  ;;  %1307 = vst.msk [vmem:[#allocation5 + $0xb8] sm:$0xff] %vm1251_vm0, %v4928_v45  ;;  %1838 = vmax.xlane.f32.xlu0 %v1837_v35  ;;  %v1840_v13 = vmax.f32 %v5551_v6, %v5553_v55 }
 0x2b3   : > { %1308 = vst.msk [vmem:[#allocation5 + $0xc0] sm:$0xff] %vm1251_vm0, %v4928_v45  ;;  %1309 = vst.msk [vmem:[#allocation5 + $0xc8] sm:$0xff] %vm1251_vm0, %v4928_v45 }
 0x2b4   : > { %1310 = vst.msk [vmem:[#allocation5 + $0xd0] sm:$0xff] %vm1251_vm0, %v4928_v45  ;;  %1311 = vst.msk [vmem:[#allocation5 + $0xd8] sm:$0xff] %vm1251_vm0, %v4928_v45  ;;  %v1672_v31 = vpop.f32.mrb[52].mxu1  ;;  %1841 = vmax.xlane.f32.xlu1 %v1840_v13  ;;  %v1454_v13 = vunpack.c.l.bf16 %v1409_v41 }
 0x2b5   : > { %1312 = vst.msk [vmem:[#allocation5 + $0xe0] sm:$0xff] %vm1251_vm0, %v4928_v45  ;;  %1313 = vst.msk [vmem:[#allocation5 + $0xe8] sm:$0xff] %vm1251_vm0, %v4928_v45  ;;  %v5560_v47 = vadd.f32 %v1672_v31, %v1448_v16  ;;  %v1674_v48 = vpop.f32.mrb[53].mxu1 }
 0x2b6   : > { %1314 = vst.msk [vmem:[#allocation5 + $0xf0] sm:$0xff] %vm1251_vm0, %v4928_v45  ;;  %1315 = vst.msk [vmem:[#allocation5 + $0xf8] sm:$0xff] %vm1251_vm0, %v4928_v45  ;;  %v1407_v45 = vld [vmem:[%s5222_s30 + $0x58] sm:$0xff]  ;;  %v5562_v50 = vadd.f32 %v1674_v48, %v1449_v26  ;;  %v1676_v0 = vpop.f32.mrb[54].mxu1 }
 0x2b7   : > { %7051 = vst [vmem:[#allocation63_spill] sm:$0xff] %v5546_v34  ;;  %7052 = vst [vmem:[#allocation64_spill] sm:$0xff] %v5548_v61  ;;  %v1450_v28 = vunpack.c.l.bf16 %v1407_v45  ;;  %v1451_v40 = vunpack.c.h.bf16 %v1407_v45  ;;  %v1678_v52 = vpop.f32.mrb[55].mxu1  ;;  %v1453_v45 = vunpack.c.h.bf16 %v1408_v21  ;;  %v5966_v34 = vld [vmem:[#allocation4 + $0xb8] sm:$0xff] }
 0x2b8   : > { %7053 = vst [vmem:[#allocation65_spill] sm:$0xff] %v5551_v6  ;;  %7054 = vst [vmem:[#allocation66_spill] sm:$0xff] %v5553_v55  ;;  %v1843_v12 = vmax.f32 %v5560_v47, %v5562_v50 }
 0x2b9   : > { %7055 = vst [vmem:[#allocation67_spill] sm:$0xff] %v5560_v47  ;;  %7056 = vst [vmem:[#allocation68_spill] sm:$0xff] %v5562_v50  ;;  %v5565_v5 = vadd.f32 %v1676_v0, %v1450_v28  ;;  %v5567_v35 = vadd.f32 %v1678_v52, %v1451_v40  ;;  %v1455_v28 = vunpack.c.h.bf16 %v1409_v41  ;;  %v1410_v0 = vld [vmem:[%s5222_s30 + $0x70] sm:$0xff]  ;;  %v5946_v47 = vld [vmem:[#allocation4 + $0xa8] sm:$0xff] }
 0x2ba   : > { %1844 = vmax.xlane.f32.xlu0 %v1843_v12  ;;  %v1456_v60 = vunpack.c.l.bf16 %v1410_v0  ;;  %v1457_v41 = vunpack.c.h.bf16 %v1410_v0  ;;  %7100 = vst [vmem:[#allocation112_spill] sm:$0xff] %v5966_v34  ;;  %7104 = vst [vmem:[#allocation116_spill] sm:$0xff] %v5986_v62 }
 0x2bb   : > { %7057 = vst [vmem:[#allocation69_spill] sm:$0xff] %v5565_v5  ;;  %7058 = vst [vmem:[#allocation70_spill] sm:$0xff] %v5567_v35  ;;  %v1846_v16 = vmax.f32 %v5565_v5, %v5567_v35 }
 0x2bc   : > { %v1682_v26 = vpop.f32.mrb[56].mxu1  ;;  %7107 = vst [vmem:[#allocation119_spill] sm:$0xff] %v6000_v59 }
 0x2bd   : > { %1847 = vmax.xlane.f32.xlu1 %v1846_v16  ;;  %v5574_v31 = vadd.f32 %v1682_v26, %v1452_v29  ;;  %v1684_v48 = vpop.f32.mrb[57].mxu1  ;;  %v1458_v16 = vunpack.c.l.bf16 %v1411_v3 }
 0x2be   : > { %v5576_v52 = vadd.f32 %v1684_v48, %v1453_v45  ;;  %v1686_v40 = vpop.f32.mrb[58].mxu1 }
 0x2bf   : > { %7059 = vst [vmem:[#allocation71_spill] sm:$0xff] %v5574_v31  ;;  %v5579_v18 = vadd.f32 %v1686_v40, %v1454_v13  ;;  %v1688_v10 = vpop.f32.mrb[59].mxu1  ;;  %v1459_v13 = vunpack.c.h.bf16 %v1411_v3  ;;  %v1412_v40 = vld [vmem:[%s5222_s30 + $0x80] sm:$0xff] }
 0x2c0   : > { %7060 = vst [vmem:[#allocation72_spill] sm:$0xff] %v5576_v52  ;;  %v5581_v12 = vadd.f32 %v1688_v10, %v1455_v28  ;;  %v1849_v21 = vmax.f32 %v5574_v31, %v5576_v52  ;;  %v1460_v43 = vunpack.c.l.bf16 %v1412_v40  ;;  %v1461_v3 = vunpack.c.h.bf16 %v1412_v40  ;;  %v5926_v31 = vld [vmem:[#allocation4 + $0x98] sm:$0xff] }
 0x2c1   : > { %7061 = vst [vmem:[#allocation73_spill] sm:$0xff] %v5579_v18 }
 0x2c2   : > { %7062 = vst [vmem:[#allocation74_spill] sm:$0xff] %v5581_v12  ;;  %1850 = vmax.xlane.f32.xlu0 %v1849_v21  ;;  %v1852_v29 = vmax.f32 %v5579_v18, %v5581_v12 }
 0x2c4   : > { %v1692_v45 = vpop.f32.mrb[60].mxu1  ;;  %1853 = vmax.xlane.f32.xlu1 %v1852_v29  ;;  %v1462_v29 = vunpack.c.l.bf16 %v1413_v39 }
 0x2c5   : > { %v5588_v26 = vadd.f32 %v1692_v45, %v1456_v60  ;;  %v1694_v48 = vpop.f32.mrb[61].mxu1 }
 0x2c6   : > { %v5590_v10 = vadd.f32 %v1694_v48, %v1457_v41  ;;  %v1696_v28 = vpop.f32.mrb[62].mxu1 }
 0x2c7   : > { %7063 = vst [vmem:[#allocation75_spill] sm:$0xff] %v5588_v26  ;;  %v5593_v53 = vadd.f32 %v1696_v28, %v1458_v16  ;;  %v1698_v46 = vpop.f32.mrb[63].mxu1  ;;  %v1463_v16 = vunpack.c.h.bf16 %v1413_v39  ;;  %v1414_v28 = vld [vmem:[%s5222_s30 + $0x90] sm:$0xff] }
 0x2c8   : > { %7064 = vst [vmem:[#allocation76_spill] sm:$0xff] %v5590_v10  ;;  %v5595_v21 = vadd.f32 %v1698_v46, %v1459_v13  ;;  %v1855_v0 = vmax.f32 %v5588_v26, %v5590_v10  ;;  %v1464_v49 = vunpack.c.l.bf16 %v1414_v28  ;;  %v5906_v26 = vld [vmem:[#allocation4 + $0x88] sm:$0xff] }
 0x2c9   : > { %7065 = vst [vmem:[#allocation77_spill] sm:$0xff] %v5593_v53 }
 0x2ca   : > { %7066 = vst [vmem:[#allocation78_spill] sm:$0xff] %v5595_v21  ;;  %1856 = vmax.xlane.f32.xlu0 %v1855_v0  ;;  %v1858_v60 = vmax.f32 %v5593_v53, %v5595_v21 }
 0x2cc   : > { %v1702_v41 = vpop.f32.mrb[64].mxu1  ;;  %1859 = vmax.xlane.f32.xlu1 %v1858_v60  ;;  %v1466_v60 = vunpack.c.l.bf16 %v1415_v63 }
 0x2cd   : > { %v5602_v45 = vadd.f32 %v1702_v41, %v1460_v43  ;;  %v1704_v48 = vpop.f32.mrb[65].mxu1  ;;  %v1465_v43 = vunpack.c.h.bf16 %v1414_v28 }
 0x2ce   : > { %v5604_v46 = vadd.f32 %v1704_v48, %v1461_v3  ;;  %v1706_v13 = vpop.f32.mrb[66].mxu1 }
 0x2cf   : > { %7067 = vst [vmem:[#allocation79_spill] sm:$0xff] %v5602_v45  ;;  %v5607_v24 = vadd.f32 %v1706_v13, %v1462_v29  ;;  %v1708_v9 = vpop.f32.mrb[67].mxu1  ;;  %v1467_v29 = vunpack.c.h.bf16 %v1415_v63  ;;  %v1416_v13 = vld [vmem:[%s5222_s30 + $0xa0] sm:$0xff] }
 0x2d0   : > { %7068 = vst [vmem:[#allocation80_spill] sm:$0xff] %v5604_v46  ;;  %v5609_v0 = vadd.f32 %v1708_v9, %v1463_v16  ;;  %v1861_v40 = vmax.f32 %v5602_v45, %v5604_v46  ;;  %v1468_v32 = vunpack.c.l.bf16 %v1416_v13  ;;  %v1469_v63 = vunpack.c.h.bf16 %v1416_v13  ;;  %v5886_v45 = vld [vmem:[#allocation4 + $0x78] sm:$0xff] }
 0x2d1   : > { %7069 = vst [vmem:[#allocation81_spill] sm:$0xff] %v5607_v24 }
 0x2d2   : > { %7070 = vst [vmem:[#allocation82_spill] sm:$0xff] %v5609_v0  ;;  %1862 = vmax.xlane.f32.xlu0 %v1861_v40  ;;  %v1864_v39 = vmax.f32 %v5607_v24, %v5609_v0 }
 0x2d4   : > { %v1712_v3 = vpop.f32.mrb[68].mxu1  ;;  %1865 = vmax.xlane.f32.xlu1 %v1864_v39  ;;  %v1470_v39 = vunpack.c.l.bf16 %v1417_v15 }
 0x2d5   : > { %v5616_v41 = vadd.f32 %v1712_v3, %v1464_v49  ;;  %v1714_v48 = vpop.f32.mrb[69].mxu1 }
 0x2d6   : > { %v5618_v9 = vadd.f32 %v1714_v48, %v1465_v43  ;;  %v1716_v16 = vpop.f32.mrb[70].mxu1 }
 0x2d7   : > { %7071 = vst [vmem:[#allocation83_spill] sm:$0xff] %v5616_v41  ;;  %v5621_v38 = vadd.f32 %v1716_v16, %v1466_v60  ;;  %v1718_v27 = vpop.f32.mrb[71].mxu1  ;;  %v1471_v60 = vunpack.c.h.bf16 %v1417_v15  ;;  %v1418_v16 = vld [vmem:[%s5222_s30 + $0xb0] sm:$0xff] }
 0x2d8   : > { %7072 = vst [vmem:[#allocation84_spill] sm:$0xff] %v5618_v9  ;;  %v5623_v40 = vadd.f32 %v1718_v27, %v1467_v29  ;;  %v1867_v28 = vmax.f32 %v5616_v41, %v5618_v9  ;;  %v1472_v58 = vunpack.c.l.bf16 %v1418_v16  ;;  %v1473_v15 = vunpack.c.h.bf16 %v1418_v16  ;;  %v5866_v41 = vld [vmem:[#allocation4 + $0x68] sm:$0xff] }
 0x2d9   : > { %7073 = vst [vmem:[#allocation85_spill] sm:$0xff] %v5621_v38 }
 0x2da   : > { %7074 = vst [vmem:[#allocation86_spill] sm:$0xff] %v5623_v40  ;;  %1868 = vmax.xlane.f32.xlu0 %v1867_v28  ;;  %v1870_v49 = vmax.f32 %v5621_v38, %v5623_v40 }
 0x2dc   : > { %v1722_v43 = vpop.f32.mrb[72].mxu1  ;;  %1871 = vmax.xlane.f32.xlu1 %v1870_v49  ;;  %v1474_v49 = vunpack.c.l.bf16 %v1419_v1 }
 0x2dd   : > { %v5630_v3 = vadd.f32 %v1722_v43, %v1468_v32  ;;  %v1724_v48 = vpop.f32.mrb[73].mxu1 }
 0x2de   : > { %v5632_v27 = vadd.f32 %v1724_v48, %v1469_v63  ;;  %v1726_v29 = vpop.f32.mrb[74].mxu1 }
 0x2df   : > { %7075 = vst [vmem:[#allocation87_spill] sm:$0xff] %v5630_v3  ;;  %v5635_v25 = vadd.f32 %v1726_v29, %v1470_v39  ;;  %v1728_v8 = vpop.f32.mrb[75].mxu1  ;;  %v1475_v39 = vunpack.c.h.bf16 %v1419_v1  ;;  %v1420_v29 = vld [vmem:[%s5222_s30 + $0xc0] sm:$0xff] }
 0x2e0   : > { %7076 = vst [vmem:[#allocation88_spill] sm:$0xff] %v5632_v27  ;;  %v5637_v28 = vadd.f32 %v1728_v8, %v1471_v60  ;;  %v1873_v13 = vmax.f32 %v5630_v3, %v5632_v27  ;;  %v1476_v23 = vunpack.c.l.bf16 %v1420_v29  ;;  %v1477_v1 = vunpack.c.h.bf16 %v1420_v29  ;;  %v1363_v27 = vld [vmem:[%s5229_s28 + $0x78] sm:$0xff] }
 0x2e1   : > { %7077 = vst [vmem:[#allocation89_spill] sm:$0xff] %v5635_v25 }
 0x2e2   : > { %7078 = vst [vmem:[#allocation90_spill] sm:$0xff] %v5637_v28  ;;  %1874 = vmax.xlane.f32.xlu0 %v1873_v13  ;;  %v1876_v32 = vmax.f32 %v5635_v25, %v5637_v28  ;;  %v5775_v28 = vld [vmem:[#allocation4 + $0x20] sm:$0xff] }
 0x2e4   : > { %v1732_v63 = vpop.f32.mrb[76].mxu1  ;;  %1877 = vmax.xlane.f32.xlu1 %v1876_v32  ;;  %v1478_v32 = vunpack.c.l.bf16 %v1421_v37 }
 0x2e5   : > { %v5644_v43 = vadd.f32 %v1732_v63, %v1472_v58  ;;  %v1734_v48 = vpop.f32.mrb[77].mxu1 }
 0x2e6   : > { %v5646_v8 = vadd.f32 %v1734_v48, %v1473_v15  ;;  %v1736_v60 = vpop.f32.mrb[78].mxu1 }
 0x2e7   : > { %7079 = vst [vmem:[#allocation91_spill] sm:$0xff] %v5644_v43  ;;  %v5649_v51 = vadd.f32 %v1736_v60, %v1474_v49  ;;  %v1738_v44 = vpop.f32.mrb[79].mxu1  ;;  %v1479_v49 = vunpack.c.h.bf16 %v1421_v37  ;;  %v1422_v60 = vld [vmem:[%s5222_s30 + $0xd0] sm:$0xff] }
 0x2e8   : > { %7080 = vst [vmem:[#allocation92_spill] sm:$0xff] %v5646_v8  ;;  %v5651_v13 = vadd.f32 %v1738_v44, %v1475_v39  ;;  %v1879_v16 = vmax.f32 %v5644_v43, %v5646_v8  ;;  %v1481_v37 = vunpack.c.h.bf16 %v1422_v60  ;;  %v5761_v43 = vld [vmem:[#allocation4 + $0x18] sm:$0xff] }
 0x2e9   : > { %7081 = vst [vmem:[#allocation93_spill] sm:$0xff] %v5649_v51 }
 0x2ea   : > { %7082 = vst [vmem:[#allocation94_spill] sm:$0xff] %v5651_v13  ;;  %1880 = vmax.xlane.f32.xlu0 %v1879_v16  ;;  %v1882_v58 = vmax.f32 %v5649_v51, %v5651_v13  ;;  %v1423_v13 = vld [vmem:[%s5222_s30 + $0xd8] sm:$0xff]  ;;  %v1480_v51 = vunpack.c.l.bf16 %v1422_v60 }
 0x2ec   : > { %v1742_v15 = vpop.f32.mrb[80].mxu1  ;;  %1883 = vmax.xlane.f32.xlu1 %v1882_v58  ;;  %v1482_v58 = vunpack.c.l.bf16 %v1423_v13 }
 0x2ed   : > { %v5658_v63 = vadd.f32 %v1742_v15, %v1476_v23  ;;  %v1744_v48 = vpop.f32.mrb[81].mxu1 }
 0x2ee   : > { %v5660_v44 = vadd.f32 %v1744_v48, %v1477_v1  ;;  %v1746_v39 = vpop.f32.mrb[82].mxu1 }
 0x2ef   : > { %7083 = vst [vmem:[#allocation95_spill] sm:$0xff] %v5658_v63  ;;  %v5663_v30 = vadd.f32 %v1746_v39, %v1478_v32  ;;  %v1748_v57 = vpop.f32.mrb[83].mxu1  ;;  %v1483_v32 = vunpack.c.h.bf16 %v1423_v13  ;;  %v1424_v39 = vld [vmem:[%s5222_s30 + $0xe0] sm:$0xff] }
 0x2f0   : > { %7084 = vst [vmem:[#allocation96_spill] sm:$0xff] %v5660_v44  ;;  %v5665_v16 = vadd.f32 %v1748_v57, %v1479_v49  ;;  %v1885_v29 = vmax.f32 %v5658_v63, %v5660_v44  ;;  %v1485_v13 = vunpack.c.h.bf16 %v1424_v39 }
 0x2f1   : > { %7085 = vst [vmem:[#allocation97_spill] sm:$0xff] %v5663_v30 }
 0x2f2   : > { %7086 = vst [vmem:[#allocation98_spill] sm:$0xff] %v5665_v16  ;;  %1886 = vmax.xlane.f32.xlu0 %v1885_v29  ;;  %v1888_v23 = vmax.f32 %v5663_v30, %v5665_v16  ;;  %v1425_v16 = vld [vmem:[%s5222_s30 + $0xe8] sm:$0xff]  ;;  %v1484_v30 = vunpack.c.l.bf16 %v1424_v39  ;;  %v1427_v39 = vld [vmem:[%s5222_s30 + $0xf8] sm:$0xff] }
 0x2f4   : > { %v1752_v1 = vpop.f32.mrb[84].mxu1  ;;  %1889 = vmax.xlane.f32.xlu1 %v1888_v23  ;;  %v1486_v23 = vunpack.c.l.bf16 %v1425_v16 }
 0x2f5   : > { %v5672_v15 = vadd.f32 %v1752_v1, %v1480_v51  ;;  %v1754_v48 = vpop.f32.mrb[85].mxu1 }
 0x2f6   : > { %v5674_v57 = vadd.f32 %v1754_v48, %v1481_v37  ;;  %v1756_v49 = vpop.f32.mrb[86].mxu1 }
 0x2f7   : > { %7087 = vst [vmem:[#allocation99_spill] sm:$0xff] %v5672_v15  ;;  %v5677_v63 = vadd.f32 %v1756_v49, %v1482_v58  ;;  %v1758_v44 = vpop.f32.mrb[87].mxu1  ;;  %v1487_v58 = vunpack.c.h.bf16 %v1425_v16  ;;  %v1426_v49 = vld [vmem:[%s5222_s30 + $0xf0] sm:$0xff] }
 0x2f8   : > { %7088 = vst [vmem:[#allocation100_spill] sm:$0xff] %v5674_v57  ;;  %v5679_v29 = vadd.f32 %v1758_v44, %v1483_v32  ;;  %v1891_v60 = vmax.f32 %v5672_v15, %v5674_v57  ;;  %v1489_v16 = vunpack.c.h.bf16 %v1426_v49 }
 0x2f9   : > { %7089 = vst [vmem:[#allocation101_spill] sm:$0xff] %v5677_v63 }
 0x2fa   : > { %7090 = vst [vmem:[#allocation102_spill] sm:$0xff] %v5679_v29  ;;  %1892 = vmax.xlane.f32.xlu0 %v1891_v60  ;;  %v1894_v51 = vmax.f32 %v5677_v63, %v5679_v29  ;;  %v1488_v63 = vunpack.c.l.bf16 %v1426_v49 }
 0x2fc   : > { %v1762_v37 = vpop.f32.mrb[88].mxu1  ;;  %1895 = vmax.xlane.f32.xlu1 %v1894_v51  ;;  %v1490_v51 = vunpack.c.l.bf16 %v1427_v39 }
 0x2fd   : > { %v5686_v1 = vadd.f32 %v1762_v37, %v1484_v30  ;;  %v1764_v48 = vpop.f32.mrb[89].mxu1 }
 0x2fe   : > { %v5688_v44 = vadd.f32 %v1764_v48, %v1485_v13  ;;  %v1766_v32 = vpop.f32.mrb[90].mxu1 }
 0x2ff   : > { %7091 = vst [vmem:[#allocation103_spill] sm:$0xff] %v5686_v1  ;;  %v5691_v15 = vadd.f32 %v1766_v32, %v1486_v23  ;;  %v1768_v57 = vpop.f32.mrb[91].mxu1  ;;  %v1491_v23 = vunpack.c.h.bf16 %v1427_v39  ;;  %v1364_v39 = vld [vmem:[%s5229_s28 + $0x80] sm:$0xff] }
 0x300   : > { %7092 = vst [vmem:[#allocation104_spill] sm:$0xff] %v5688_v44  ;;  %v5693_v60 = vadd.f32 %v1768_v57, %v1487_v58  ;;  %v1897_v29 = vmax.f32 %v5686_v1, %v5688_v44  ;;  %v5724_v1 = vld [vmem:[#allocation4] sm:$0xff]  ;;  %v1358_v44 = vld [vmem:[%s5229_s28 + $0x50] sm:$0xff] }
 0x301   : > { %7093 = vst [vmem:[#allocation105_spill] sm:$0xff] %v5691_v15 }
 0x302   : > { %7094 = vst [vmem:[#allocation106_spill] sm:$0xff] %v5693_v60  ;;  %1898 = vmax.xlane.f32.xlu0 %v1897_v29  ;;  %v1900_v30 = vmax.f32 %v5691_v15, %v5693_v60  ;;  %v1350_v60 = vld [vmem:[%s5229_s28 + $0x10] sm:$0xff]  ;;  %v1353_v15 = vld [vmem:[%s5229_s28 + $0x28] sm:$0xff] }
 0x304   : > { %v1772_v13 = vpop.f32.mrb[92].mxu1  ;;  %1901 = vmax.xlane.f32.xlu1 %v1900_v30 }
 0x305   : > { %v5700_v57 = vadd.f32 %v1772_v13, %v1488_v63  ;;  %v1774_v37 = vpop.f32.mrb[93].mxu1  ;;  %v1349_v13 = vld [vmem:[%s5229_s28 + $0x8] sm:$0xff] }
 0x306   : > { %v5702_v58 = vadd.f32 %v1774_v37, %v1489_v16  ;;  %v1776_v29 = vpop.f32.mrb[94].mxu1  ;;  %v1365_v16 = vld [vmem:[%s5229_s28 + $0x88] sm:$0xff] }
 0x307   : > { %7095 = vst [vmem:[#allocation107_spill] sm:$0xff] %v5700_v57  ;;  %v5704_v48 = vadd.f32 %v1776_v29, %v1490_v51  ;;  %v1778_v32 = vpop.f32.mrb[95].mxu1  ;;  %v1348_v51 = vld [vmem:[%s5229_s28] sm:$0xff]  ;;  %v3898_v37 = vcombine.high %v1364_v39, %v1365_v16  ;;  %v1366_v29 = vld [vmem:[%s5229_s28 + $0x90] sm:$0xff] }
 0x308   : > { %7096 = vst [vmem:[#allocation108_spill] sm:$0xff] %v5702_v58  ;;  %v5706_v49 = vadd.f32 %v1778_v32, %v1491_v23  ;;  %v1903_v30 = vmax.f32 %v5700_v57, %v5702_v58  ;;  %v1367_v23 = vld [vmem:[%s5229_s28 + $0x98] sm:$0xff]  ;;  %v3890_v32 = vcombine.high %v1348_v51, %v1349_v13  ;;  %v1352_v58 = vld [vmem:[%s5229_s28 + $0x20] sm:$0xff]  ;;  %v1370_v13 = vld [vmem:[%s5229_s28 + $0xb0] sm:$0xff] }
 0x309   : > { %7097 = vst [vmem:[#allocation109_spill] sm:$0xff] %v5704_v48  ;;  %v1351_v57 = vld [vmem:[%s5229_s28 + $0x18] sm:$0xff]  ;;  %3961 = vmatprep.subr.bf16.mxu0 %v3898_v37  ;;  %v3892_v51 = vcombine.high %v1352_v58, %v1353_v15 }
 0x30a   : > { %7098 = vst [vmem:[#allocation110_spill] sm:$0xff] %v5706_v49  ;;  %1904 = vmax.xlane.f32.xlu0 %v1903_v30  ;;  %v1906_v63 = vmax.f32 %v5704_v48, %v5706_v49  ;;  %3962 = vmatpush3.bf16.msra.mxu0 %v3890_v32  ;;  %v3899_v30 = vcombine.high %v1366_v29, %v1367_v23  ;;  %v1368_v49 = vld [vmem:[%s5229_s28 + $0xa0] sm:$0xff]  ;;  %v1371_v37 = vld [vmem:[%s5229_s28 + $0xb8] sm:$0xff]  ;;  %v5733_v23 = vld [vmem:[#allocation4 + $0x8] sm:$0xff] }
 0x30b   : > { %v3891_v48 = vcombine.high %v1350_v60, %v1351_v57  ;;  %v1354_v60 = vld [vmem:[%s5229_s28 + $0x30] sm:$0xff]  ;;  %v1355_v57 = vld [vmem:[%s5229_s28 + $0x38] sm:$0xff]  ;;  %v3901_v58 = vcombine.high %v1370_v13, %v1371_v37  ;;  %v1373_v32 = vld [vmem:[%s5229_s28 + $0xc8] sm:$0xff] }
 0x30c   : > { %1907 = vmax.xlane.f32.xlu1 %v1906_v63  ;;  %v1369_v63 = vld [vmem:[%s5229_s28 + $0xa8] sm:$0xff]  ;;  %3963 = vmatprep.subr.bf16.mxu0 %v3899_v30 }
 0x30d   : > { %v3900_v39 = vcombine.high %v1368_v49, %v1369_v63  ;;  %v1372_v49 = vld [vmem:[%s5229_s28 + $0xc0] sm:$0xff]  ;;  %v3893_v63 = vcombine.high %v1354_v60, %v1355_v57  ;;  %v1374_v60 = vld [vmem:[%s5229_s28 + $0xd0] sm:$0xff]  ;;  %v1375_v57 = vld [vmem:[%s5229_s28 + $0xd8] sm:$0xff] }
 0x30e   : > { %3964 = vmatpush3.bf16.msra.mxu0 %v3891_v48  ;;  %v3902_v37 = vcombine.high %v1372_v49, %v1373_v32  ;;  %v1359_v48 = vld [vmem:[%s5229_s28 + $0x58] sm:$0xff]  ;;  %v3903_v32 = vcombine.high %v1374_v60, %v1375_v57  ;;  %v5782_v57 = vld [vmem:[#allocation4 + $0x28] sm:$0xff] }
 0x30f   : > { %3965 = vmatprep.subr.bf16.mxu0 %v3900_v39  ;;  %v1356_v39 = vld [vmem:[%s5229_s28 + $0x40] sm:$0xff]  ;;  %v3895_v8 = vcombine.high %v1358_v44, %v1359_v48  ;;  %v1378_v48 = vld [vmem:[%s5229_s28 + $0xf0] sm:$0xff] }
 0x312   : > { %3966 = vmatpush3.bf16.msra.mxu0 %v3892_v51  ;;  %v5747_v51 = vld [vmem:[#allocation4 + $0x10] sm:$0xff] }
 0x313   : > { %3967 = vmatprep.subr.bf16.mxu0 %v3901_v58 }
 0x316   : > { %3968 = vmatpush3.bf16.msra.mxu0 %v3893_v63  ;;  %v1361_v63 = vld [vmem:[%s5229_s28 + $0x68] sm:$0xff] }
 0x317   : > { %3969 = vmatprep.subr.bf16.mxu0 %v3902_v37  ;;  %v1360_v37 = vld [vmem:[%s5229_s28 + $0x60] sm:$0xff] }
 0x318   : > { %v3896_v3 = vcombine.high %v1360_v37, %v1361_v63  ;;  %v5803_v37 = vld [vmem:[#allocation4 + $0x30] sm:$0xff] }
 0x31f   : > { %v1815_v16 = vpop.xlane.xlu0 %1814 }
 0x320   : > { %v5729_v29 = vmax.f32 %v5724_v1, %v1815_v16  ;;  %v1357_v16 = vld [vmem:[%s5229_s28 + $0x48] sm:$0xff] }
 0x321   : > { %v3894_v58 = vcombine.high %v1356_v39, %v1357_v16  ;;  %v1377_v39 = vld [vmem:[%s5229_s28 + $0xe8] sm:$0xff] }
 0x322   : > { %3159 = vst.msk [vmem:[#allocation4] sm:$0xff] %vm1251_vm0, %v5729_v29  ;;  %2039 = vperm.xlu0 %4196, %v5729_v29  }
 0x323   : > { %v1818_v15 = vpop.xlane.xlu0 %1817  ;;  %3970 = vmatpush3.bf16.msra.mxu0 %v3894_v58 }
 0x324   : > { %v5743_v30 = vmax.f32 %v5733_v23, %v1818_v15  ;;  %3971 = vmatprep.subr.bf16.mxu0 %v3903_v32  ;;  %v1362_v32 = vld [vmem:[%s5229_s28 + $0x70] sm:$0xff] }
 0x326   : > { %3160 = vst.msk [vmem:[#allocation4 + $0x8] sm:$0xff] %vm1251_vm0, %v5743_v30  ;;  %2044 = vperm.xlu1 %4197, %v5743_v30  }
 0x327   : > { %v1821_v13 = vpop.xlane.xlu1 %1820  ;;  %3972 = vmatpush3.bf16.msra.mxu0 %v3895_v8 }
 0x328   : > { %v5757_v15 = vmax.f32 %v5747_v51, %v1821_v13  ;;  %v1376_v13 = vld [vmem:[%s5229_s28 + $0xe0] sm:$0xff] }
 0x329   : > { %v3904_v44 = vcombine.high %v1376_v13, %v1377_v39  ;;  %v3897_v39 = vcombine.high %v1362_v32, %v1363_v27  ;;  %v5823_v32 = vld [vmem:[#allocation4 + $0x40] sm:$0xff] }
 0x32a   : > { %3161 = vst.msk [vmem:[#allocation4 + $0x10] sm:$0xff] %vm1251_vm0, %v5757_v15  ;;  %2049 = vperm.xlu1 %4197, %v5757_v15  }
 0x32b   : > { %v1824_v49 = vpop.xlane.xlu1 %1823  ;;  %3973 = vmatprep.subr.bf16.mxu0 %v3904_v44 }
 0x32c   : > { %v5771_v16 = vmax.f32 %v5761_v43, %v1824_v49  ;;  %v1379_v49 = vld [vmem:[%s5229_s28 + $0xf8] sm:$0xff]  ;;  %3974 = vmatpush3.bf16.msra.mxu0 %v3896_v3 }
 0x32d   : > { %v3905_v13 = vcombine.high %v1378_v48, %v1379_v49  ;;  %v5846_v48 = vld [vmem:[#allocation4 + $0x58] sm:$0xff] }
 0x32e   : > { %3162 = vst.msk [vmem:[#allocation4 + $0x18] sm:$0xff] %vm1251_vm0, %v5771_v16  ;;  %2054 = vperm.xlu1 %4197, %v5771_v16  }
 0x32f   : > { %v1827_v60 = vpop.xlane.xlu0 %1826  ;;  %3975 = vmatprep.subr.bf16.mxu0 %v3905_v13 }
 0x330   : > { %v5787_v25 = vmax.f32 %v5775_v28, %v1827_v60  ;;  %3976 = vmatpush3.bf16.msra.mxu0 %v3897_v39  ;;  %v5826_v39 = vld [vmem:[#allocation4 + $0x48] sm:$0xff] }
 0x331   : > { %v1830_v40 = vpop.xlane.xlu1 %1829 }
 0x332   : > { %3163 = vst.msk [vmem:[#allocation4 + $0x20] sm:$0xff] %vm1251_vm0, %v5787_v25  ;;  %v5796_v8 = vmax.f32 %v5782_v57, %v1830_v40  ;;  %2059 = vperm.xlu1 %4197, %v5787_v25   ;;  %v5806_v40 = vld [vmem:[#allocation4 + $0x38] sm:$0xff] }
 0x334   : > { %3164 = vst.msk [vmem:[#allocation4 + $0x28] sm:$0xff] %vm1251_vm0, %v5796_v8 }
 0x336   : > { %2064 = vperm.xlu1 %4197, %v5796_v8  }
 0x337   : > { %v1833_v60 = vpop.xlane.xlu0 %1832 }
 0x338   : > { %v5809_v44 = vmax.f32 %v5803_v37, %v1833_v60 }
 0x339   : > { %v1836_v3 = vpop.xlane.xlu1 %1835 }
 0x33a   : > { %3165 = vst.msk [vmem:[#allocation4 + $0x30] sm:$0xff] %vm1251_vm0, %v5809_v44  ;;  %v5816_v27 = vmax.f32 %v5806_v40, %v1836_v3  ;;  %2069 = vperm.xlu1 %4197, %v5809_v44  }
 0x33c   : > { %3166 = vst.msk [vmem:[#allocation4 + $0x38] sm:$0xff] %vm1251_vm0, %v5816_v27 }
 0x33e   : > { %2074 = vperm.xlu1 %4197, %v5816_v27  }
 0x33f   : > { %v1839_v13 = vpop.xlane.xlu0 %1838 }
 0x340   : > { %v5829_v60 = vmax.f32 %v5823_v32, %v1839_v13  ;;  %v5844_v13 = vld [vmem:[#allocation4 + $0x50] sm:$0xff] }
 0x341   : > { %v1842_v3 = vpop.xlane.xlu1 %1841 }
 0x342   : > { %3167 = vst.msk [vmem:[#allocation4 + $0x40] sm:$0xff] %vm1251_vm0, %v5829_v60  ;;  %v5836_v49 = vmax.f32 %v5826_v39, %v1842_v3  ;;  %2079 = vperm.xlu1 %4197, %v5829_v60  }
 0x344   : > { %3168 = vst.msk [vmem:[#allocation4 + $0x48] sm:$0xff] %vm1251_vm0, %v5836_v49  ;;  %2084 = vperm.xlu0 %4196, %v5836_v49  }
 0x347   : > { %v1845_v58 = vpop.xlane.xlu0 %1844 }
 0x348   : > { %v5849_v38 = vmax.f32 %v5844_v13, %v1845_v58  ;;  %v5864_v58 = vld [vmem:[#allocation4 + $0x60] sm:$0xff] }
 0x34a   : > { %v1848_v3 = vpop.xlane.xlu1 %1847  ;;  %3169 = vst.msk [vmem:[#allocation4 + $0x50] sm:$0xff] %vm1251_vm0, %v5849_v38  ;;  %2089 = vperm.xlu1 %4197, %v5849_v38  }
 0x34b   : > { %v5856_v63 = vmax.f32 %v5846_v48, %v1848_v3 }
 0x34d   : > { %3170 = vst.msk [vmem:[#allocation4 + $0x58] sm:$0xff] %vm1251_vm0, %v5856_v63  ;;  %2094 = vperm.xlu0 %4196, %v5856_v63  }
 0x34f   : > { %v1851_v0 = vpop.xlane.xlu0 %1850 }
 0x350   : > { %v5869_v24 = vmax.f32 %v5864_v58, %v1851_v0  ;;  %v5884_v0 = vld [vmem:[#allocation4 + $0x70] sm:$0xff] }
 0x351   : > { %v1854_v3 = vpop.xlane.xlu1 %1853 }
 0x352   : > { %3171 = vst.msk [vmem:[#allocation4 + $0x60] sm:$0xff] %vm1251_vm0, %v5869_v24  ;;  %v5876_v9 = vmax.f32 %v5866_v41, %v1854_v3  ;;  %2099 = vperm.xlu1 %4197, %v5869_v24  }
 0x354   : > { %3172 = vst.msk [vmem:[#allocation4 + $0x68] sm:$0xff] %vm1251_vm0, %v5876_v9  ;;  %2104 = vperm.xlu0 %4196, %v5876_v9  }
 0x357   : > { %v1857_v21 = vpop.xlane.xlu0 %1856 }
 0x358   : > { %v5889_v53 = vmax.f32 %v5884_v0, %v1857_v21  ;;  %v5904_v21 = vld [vmem:[#allocation4 + $0x80] sm:$0xff] }
 0x359   : > { %v1860_v3 = vpop.xlane.xlu1 %1859 }
 0x35a   : > { %3173 = vst.msk [vmem:[#allocation4 + $0x70] sm:$0xff] %vm1251_vm0, %v5889_v53  ;;  %v5896_v46 = vmax.f32 %v5886_v45, %v1860_v3  ;;  %2109 = vperm.xlu1 %4197, %v5889_v53  }
 0x35c   : > { %3174 = vst.msk [vmem:[#allocation4 + $0x78] sm:$0xff] %vm1251_vm0, %v5896_v46  ;;  %2114 = vperm.xlu0 %4196, %v5896_v46  }
 0x35f   : > { %v1863_v12 = vpop.xlane.xlu0 %1862 }
 0x360   : > { %v5909_v18 = vmax.f32 %v5904_v21, %v1863_v12  ;;  %v5924_v12 = vld [vmem:[#allocation4 + $0x90] sm:$0xff] }
 0x361   : > { %v1866_v3 = vpop.xlane.xlu1 %1865 }
 0x362   : > { %3175 = vst.msk [vmem:[#allocation4 + $0x80] sm:$0xff] %vm1251_vm0, %v5909_v18  ;;  %v5916_v10 = vmax.f32 %v5906_v26, %v1866_v3  ;;  %2119 = vperm.xlu1 %4197, %v5909_v18  }
 0x364   : > { %3176 = vst.msk [vmem:[#allocation4 + $0x88] sm:$0xff] %vm1251_vm0, %v5916_v10  ;;  %2124 = vperm.xlu0 %4196, %v5916_v10  }
 0x367   : > { %v1869_v35 = vpop.xlane.xlu0 %1868 }
 0x368   : > { %v5929_v5 = vmax.f32 %v5924_v12, %v1869_v35  ;;  %v5944_v35 = vld [vmem:[#allocation4 + $0xa0] sm:$0xff] }
 0x369   : > { %v1872_v3 = vpop.xlane.xlu1 %1871 }
 0x36a   : > { %3177 = vst.msk [vmem:[#allocation4 + $0x90] sm:$0xff] %vm1251_vm0, %v5929_v5  ;;  %v5936_v52 = vmax.f32 %v5926_v31, %v1872_v3  ;;  %2129 = vperm.xlu1 %4197, %v5929_v5  }
 0x36c   : > { %3178 = vst.msk [vmem:[#allocation4 + $0x98] sm:$0xff] %vm1251_vm0, %v5936_v52  ;;  %2134 = vperm.xlu0 %4196, %v5936_v52  }
 0x36f   : > { %v1875_v55 = vpop.xlane.xlu0 %1874 }
 0x370   : > { %v5949_v6 = vmax.f32 %v5944_v35, %v1875_v55  ;;  %v5964_v55 = vld [vmem:[#allocation4 + $0xb0] sm:$0xff] }
 0x371   : > { %v1878_v3 = vpop.xlane.xlu1 %1877  ;;  %7099 = vst [vmem:[#allocation111_spill] sm:$0xff] %v5964_v55 }
 0x372   : > { %3179 = vst.msk [vmem:[#allocation4 + $0xa0] sm:$0xff] %vm1251_vm0, %v5949_v6  ;;  %v5956_v50 = vmax.f32 %v5946_v47, %v1878_v3  ;;  %2139 = vperm.xlu1 %4197, %v5949_v6  }
 0x374   : > { %3180 = vst.msk [vmem:[#allocation4 + $0xa8] sm:$0xff] %vm1251_vm0, %v5956_v50  ;;  %2144 = vperm.xlu0 %4196, %v5956_v50  }
 0x377   : > { %v1881_v11 = vpop.xlane.xlu0 %1880 }
 0x378   : > { %v5969_v4 = vmax.f32 %v5964_v55, %v1881_v11  ;;  %v5984_v11 = vld [vmem:[#allocation4 + $0xc0] sm:$0xff] }
 0x379   : > { %v1884_v3 = vpop.xlane.xlu1 %1883  ;;  %7103 = vst [vmem:[#allocation115_spill] sm:$0xff] %v5984_v11 }
 0x37a   : > { %7101 = vst [vmem:[#allocation113_spill] sm:$0xff] %v5969_v4  ;;  %3181 = vst.msk [vmem:[#allocation4 + $0xb0] sm:$0xff] %vm1251_vm0, %v5969_v4  ;;  %v5976_v61 = vmax.f32 %v5966_v34, %v1884_v3  ;;  %2149 = vperm.xlu1 %4197, %v5969_v4   ;;  %v6002_v34 = vld [vmem:[#allocation4 + $0xd8] sm:$0xff] }
 0x37b   : > { %7108 = vst [vmem:[#allocation120_spill] sm:$0xff] %v6002_v34 }
 0x37c   : > { %7102 = vst [vmem:[#allocation114_spill] sm:$0xff] %v5976_v61  ;;  %3182 = vst.msk [vmem:[#allocation4 + $0xb8] sm:$0xff] %vm1251_vm0, %v5976_v61  ;;  %2154 = vperm.xlu0 %4196, %v5976_v61  }
 0x37f   : > { %v1887_v22 = vpop.xlane.xlu0 %1886 }
 0x380   : > { %v5989_v55 = vmax.f32 %v5984_v11, %v1887_v22 }
 0x381   : > { %v1890_v3 = vpop.xlane.xlu1 %1889 }
 0x382   : > { %7105 = vst [vmem:[#allocation117_spill] sm:$0xff] %v5989_v55  ;;  %3183 = vst.msk [vmem:[#allocation4 + $0xc0] sm:$0xff] %vm1251_vm0, %v5989_v55  ;;  %v5994_v4 = vmax.f32 %v5986_v62, %v1890_v3  ;;  %2159 = vperm.xlu1 %4197, %v5989_v55   ;;  %v6016_v62 = vld [vmem:[#allocation4 + $0xe0] sm:$0xff]  ;;  %v6021_v55 = vld [vmem:[#allocation4 + $0xe8] sm:$0xff] }
 0x384   : > { %7106 = vst [vmem:[#allocation118_spill] sm:$0xff] %v5994_v4  ;;  %3184 = vst.msk [vmem:[#allocation4 + $0xc8] sm:$0xff] %vm1251_vm0, %v5994_v4  ;;  %2164 = vperm.xlu0 %4196, %v5994_v4  }
 0x387   : > { %v1893_v61 = vpop.xlane.xlu0 %1892 }
 0x388   : > { %v6005_v22 = vmax.f32 %v6000_v59, %v1893_v61  ;;  %v7111_v61 = vsub.f32 %v5733_v23, %v5743_v30  ;;  %v7113_v23 = vsub.f32 %v5747_v51, %v5757_v15  ;;  %v6049_v51 = vld [vmem:[#allocation4 + $0xf8] sm:$0xff] }
 0x389   : > { %v1896_v11 = vpop.xlane.xlu1 %1895 }
 0x38a   : > { %7109 = vst [vmem:[#allocation121_spill] sm:$0xff] %v6005_v22  ;;  %3185 = vst.msk [vmem:[#allocation4 + $0xd0] sm:$0xff] %vm1251_vm0, %v6005_v22  ;;  %v6010_v3 = vmax.f32 %v6002_v34, %v1896_v11  ;;  %2169 = vperm.xlu1 %4197, %v6005_v22   ;;  %v1975_v59 = vmul.f32 1.442695, %v7111_v61  ;;  %v7112_v11 = vsub.f32 %v5724_v1, %v5729_v29  ;;  %v1977_v30 = vmul.f32 1.442695, %v7113_v23 }
 0x38b   : > { %v6044_v29 = vld [vmem:[#allocation4 + $0xf0] sm:$0xff] }
 0x38c   : > { %7110 = vst [vmem:[#allocation122_spill] sm:$0xff] %v6010_v3  ;;  %3186 = vst.msk [vmem:[#allocation4 + $0xd8] sm:$0xff] %vm1251_vm0, %v6010_v3  ;;  %2174 = vperm.xlu0 %4196, %v6010_v3   ;;  %v1973_v34 = vmul.f32 1.442695, %v7112_v11  ;;  %4326 = vpow2.f32 %v1975_v59  ;;  %v7115_v59 = vsub.f32 %v5775_v28, %v5787_v25  ;;  %v7117_v25 = vsub.f32 %v5803_v37, %v5809_v44 }
 0x38e   : > { %4328 = vpow2.f32 %v1973_v34  ;;  %v7116_v34 = vsub.f32 %v5782_v57, %v5796_v8  ;;  %v1985_v28 = vmul.f32 1.442695, %v7117_v25  ;;  %v7118_v8 = vsub.f32 %v5806_v40, %v5816_v27 }
 0x38f   : > { %v1899_v4 = vpop.xlane.xlu0 %1898  ;;  %4330 = vpow2.f32 %v1977_v30  ;;  %v7122_v27 = vsub.f32 %v5846_v48, %v5856_v63 }
 0x390   : > { %v6024_v14 = vmax.f32 %v6016_v62, %v1899_v4  ;;  %v7114_v4 = vsub.f32 %v5761_v43, %v5771_v16  ;;  %v1983_v11 = vmul.f32 1.442695, %v7116_v34  ;;  %v1987_v30 = vmul.f32 1.442695, %v7118_v8 }
 0x391   : > { %v1902_v22 = vpop.xlane.xlu1 %1901 }
 0x392   : > { %3187 = vst.msk [vmem:[#allocation4 + $0xe0] sm:$0xff] %vm1251_vm0, %v6024_v14  ;;  %v6032_v3 = vmax.f32 %v6021_v55, %v1902_v22  ;;  %2179 = vperm.xlu1 %4197, %v6024_v14   ;;  %v1979_v1 = vmul.f32 1.442695, %v7114_v4  ;;  %v1981_v22 = vmul.f32 1.442695, %v7115_v59  ;;  %v7119_v4 = vsub.f32 %v5823_v32, %v5829_v60 }
 0x393   : > { %v1995_v32 = vmul.f32 1.442695, %v7122_v27 }
 0x394   : > { %3188 = vst.msk [vmem:[#allocation4 + $0xe8] sm:$0xff] %vm1251_vm0, %v6032_v3  ;;  %2184 = vperm.xlu0 %4196, %v6032_v3   ;;  %4332 = vpow2.f32 %v1979_v1  ;;  %v1989_v37 = vmul.f32 1.442695, %v7119_v4  ;;  %v7120_v1 = vsub.f32 %v5826_v39, %v5836_v49 }
 0x395   : > { %4334 = vpow2.f32 %v1981_v22  ;;  %v7121_v22 = vsub.f32 %v5844_v13, %v5849_v38  ;;  %v7123_v38 = vsub.f32 %v5864_v58, %v5869_v24  ;;  %v7125_v58 = vsub.f32 %v5884_v0, %v5889_v53 }
 0x396   : > { %v6071_v57 = vpop.eup %4326  ;;  %4336 = vpow2.f32 %v1983_v11  ;;  %v1991_v59 = vmul.f32 1.442695, %v7120_v1 }
 0x397   : > { %v1905_v61 = vpop.xlane.xlu0 %1904  ;;  %4338 = vpow2.f32 %v1985_v28  ;;  %v1997_v13 = vmul.f32 1.442695, %v7123_v38  ;;  %v2001_v8 = vmul.f32 1.442695, %v7125_v58 }
 0x398   : > { %v6052_v15 = vmax.f32 %v6044_v29, %v1905_v61  ;;  %v6080_v44 = vpop.eup %4328  ;;  %v1993_v61 = vmul.f32 1.442695, %v7121_v22  ;;  %4340 = vpow2.f32 %v1987_v30 }
 0x399   : > { %v1908_v43 = vpop.xlane.xlu1 %1907  ;;  %v6089_v40 = vpop.eup %4330  ;;  %4342 = vpow2.f32 %v1989_v37 }
 0x39a   : > { %3189 = vst.msk [vmem:[#allocation4 + $0xf0] sm:$0xff] %vm1251_vm0, %v6052_v15  ;;  %v6060_v16 = vmax.f32 %v6049_v51, %v1908_v43  ;;  %2189 = vperm.xlu1 %4197, %v6052_v15   ;;  %4344 = vpow2.f32 %v1991_v59  ;;  %v7127_v59 = vsub.f32 %v5904_v21, %v5909_v18 }
 0x39b   : > { %4346 = vpow2.f32 %v1993_v61 }
 0x39c   : > { %3190 = vst.msk [vmem:[#allocation4 + $0xf8] sm:$0xff] %vm1251_vm0, %v6060_v16  ;;  %2194 = vperm.xlu0 %4196, %v6060_v16   ;;  %4348 = vpow2.f32 %v1995_v32  ;;  %v2005_v22 = vmul.f32 1.442695, %v7127_v59  ;;  %v7137_v59 = vld [vmem:[#allocation115_spill] sm:$0xff] }
 0x39e   : > { %2653 = vperm.xlu1 %4197, %v6071_v57   ;;  %v6097_v39 = vpop.eup %4332 }
 0x39f   : > { %v6103_v63 = vpop.eup %4334 }
 0x3a0   : > { %2648 = vperm.xlu0 %4196, %v6080_v44   ;;  %v6111_v24 = vpop.eup %4336 }
 0x3a1   : > { %v2040_v60 = vpop.permute.xlu0 %2039 }
 0x3a2   : > { %v2197_v34 = vsub.f32 %v5426_v2, %v2040_v60  ;;  %v2198_v49 = vsub.f32 %v5460_v33, %v2040_v60  ;;  %2658 = vperm.xlu1 %4197, %v6089_v40   ;;  %v7124_v2 = vsub.f32 %v5866_v41, %v5876_v9  ;;  %v6117_v41 = vpop.eup %4338 }
 0x3a3   : > { %v6125_v53 = vpop.eup %4340 }
 0x3a4   : > { %v2261_v11 = vmul.f32 1.442695, %v2197_v34  ;;  %v2263_v43 = vmul.f32 1.442695, %v2198_v49  ;;  %2663 = vperm.xlu0 %4196, %v6097_v39   ;;  %v1999_v33 = vmul.f32 1.442695, %v7124_v2  ;;  %v6127_v0 = vpop.eup %4342  ;;  %v7129_v49 = vsub.f32 %v5924_v12, %v5929_v5 }
 0x3a5   : > { %v2045_v48 = vpop.permute.xlu1 %2044  ;;  %v6133_v61 = vpop.eup %4344 }
 0x3a6   : > { %4350 = vpow2.f32 %v2261_v11  ;;  %v2199_v25 = vsub.f32 %v5463_v7, %v2045_v48  ;;  %v2200_v28 = vsub.f32 %v5465_v19, %v2045_v48  ;;  %2668 = vperm.xlu1 %4197, %v6103_v63   ;;  %v7126_v7 = vsub.f32 %v5886_v45, %v5896_v46  ;;  %v6138_v32 = vpop.eup %4346 }
 0x3a7   : > { %4352 = vpow2.f32 %v2263_v43  ;;  %v6143_v21 = vpop.eup %4348 }
 0x3a8   : > { %4354 = vpow2.f32 %v1997_v13  ;;  %v2265_v30 = vmul.f32 1.442695, %v2199_v25  ;;  %v2267_v4 = vmul.f32 1.442695, %v2200_v28  ;;  %2673 = vperm.xlu0 %4196, %v6111_v24   ;;  %v2003_v19 = vmul.f32 1.442695, %v7126_v7 }
 0x3a9   : > { %4356 = vpow2.f32 %v1999_v33  ;;  %v2050_v9 = vpop.permute.xlu1 %2049  ;;  %v7133_v7 = vld [vmem:[#allocation57_spill] sm:$0xff] }
 0x3aa   : > { %4358 = vpow2.f32 %v2265_v30  ;;  %v2201_v37 = vsub.f32 %v5472_v36, %v2050_v9  ;;  %v2202_v1 = vsub.f32 %v5474_v42, %v2050_v9  ;;  %2678 = vperm.xlu1 %4197, %v6117_v41   ;;  %v7128_v36 = vsub.f32 %v5906_v26, %v5916_v10  ;;  %v7134_v9 = vld [vmem:[#allocation58_spill] sm:$0xff] }
 0x3ab   : > { %4360 = vpow2.f32 %v2267_v4  ;;  %v2009_v26 = vmul.f32 1.442695, %v7129_v49  ;;  %v7142_v49 = vld [vmem:[#allocation114_spill] sm:$0xff] }
 0x3ac   : > { %4362 = vpow2.f32 %v2001_v8  ;;  %v2269_v45 = vmul.f32 1.442695, %v2201_v37  ;;  %v2271_v46 = vmul.f32 1.442695, %v2202_v1  ;;  %2683 = vperm.xlu0 %4196, %v6125_v53   ;;  %v2007_v42 = vmul.f32 1.442695, %v7128_v36 }
 0x3ad   : > { %4364 = vpow2.f32 %v2003_v19  ;;  %v2055_v27 = vpop.permute.xlu1 %2054  ;;  %v7136_v1 = vld [vmem:[#allocation117_spill] sm:$0xff] }
 0x3ae   : > { %4366 = vpow2.f32 %v2269_v45  ;;  %v2203_v60 = vsub.f32 %v5477_v54, %v2055_v27  ;;  %v2204_v18 = vsub.f32 %v5479_v20, %v2055_v27  ;;  %2688 = vperm.xlu1 %4197, %v6127_v0   ;;  %v7130_v54 = vsub.f32 %v5926_v31, %v5936_v52  ;;  %v7138_v45 = vld [vmem:[#allocation111_spill] sm:$0xff] }
 0x3af   : > { %4368 = vpow2.f32 %v2271_v46  ;;  %v7131_v31 = vsub.f32 %v5944_v35, %v5949_v6  ;;  %v7139_v46 = vld [vmem:[#allocation113_spill] sm:$0xff] }
 0x3b0   : > { %v4351_v34 = vpop.eup %4350  ;;  %4370 = vpow2.f32 %v2005_v22  ;;  %v2273_v10 = vmul.f32 1.442695, %v2203_v60  ;;  %v2275_v38 = vmul.f32 1.442695, %v2204_v18  ;;  %2693 = vperm.xlu0 %4196, %v6133_v61   ;;  %v2011_v20 = vmul.f32 1.442695, %v7130_v54 }
 0x3b1   : > { %v4353_v13 = vpop.eup %4352  ;;  %4372 = vpow2.f32 %v2007_v42  ;;  %v2060_v11 = vpop.permute.xlu1 %2059  ;;  %v2013_v52 = vmul.f32 1.442695, %v7131_v31  ;;  %v1965_v22 = vsub.f32 %v7137_v59, %v7136_v1  ;;  %v7140_v36 = vsub.f32 %v7138_v45, %v7139_v46  ;;  %v7144_v54 = vld [vmem:[#allocation59_spill] sm:$0xff]  ;;  %v7152_v1 = vld [vmem:[#allocation122_spill] sm:$0xff]  ;;  %v7153_v59 = vld [vmem:[#allocation120_spill] sm:$0xff] }
 0x3b2   : > { %v6152_v43 = vpop.eup %4354  ;;  %4374 = vpow2.f32 %v2273_v10  ;;  %v2205_v2 = vsub.f32 %v5486_v56, %v2060_v11  ;;  %v2206_v33 = vsub.f32 %v5488_v17, %v2060_v11  ;;  %2698 = vperm.xlu1 %4197, %v6138_v32   ;;  %v6157_v5 = vadd.f32 %v4353_v13, %v4351_v34  ;;  %v7145_v11 = vld [vmem:[#allocation60_spill] sm:$0xff]  ;;  %v7154_v45 = vld [vmem:[#allocation61_spill] sm:$0xff] }
 0x3b3   : > { %v6159_v12 = vpop.eup %4356  ;;  %4376 = vpow2.f32 %v2275_v38  ;;  %v7132_v17 = vsub.f32 %v5946_v47, %v5956_v50  ;;  %v2017_v42 = vmul.f32 1.442695, %v7140_v36  ;;  %v2021_v31 = vmul.f32 1.442695, %v1965_v22  ;;  %v7155_v36 = vld [vmem:[#allocation62_spill] sm:$0xff] }
 0x3b4   : > { %v4359_v48 = vpop.eup %4358  ;;  %4378 = vpow2.f32 %v2009_v26  ;;  %v2277_v25 = vmul.f32 1.442695, %v2205_v2  ;;  %v2279_v28 = vmul.f32 1.442695, %v2206_v33  ;;  %2703 = vperm.xlu0 %4196, %v6143_v21   ;;  %v1968_v22 = vsub.f32 %v7153_v59, %v7152_v1 }
 0x3b5   : > { %v4361_v56 = vpop.eup %4360  ;;  %4380 = vpow2.f32 %v2011_v20  ;;  %v2015_v58 = vmul.f32 1.442695, %v7132_v17  ;;  %v2065_v8 = vpop.permute.xlu1 %2064  ;;  %v2838_v30 = vpack.c.bf16 %v4359_v48, %v4351_v34  ;;  %v7141_v34 = vld [vmem:[#allocation112_spill] sm:$0xff]  ;;  %v1970_v1 = vsub.f32 %v6021_v55, %v6032_v3 }
 0x3b6   : > { %v6168_v4 = vpop.eup %4362  ;;  %4382 = vpow2.f32 %v2277_v25  ;;  %v2207_v19 = vsub.f32 %v7133_v7, %v2065_v8  ;;  %v2208_v6 = vsub.f32 %v7134_v9, %v2065_v8  ;;  %2708 = vperm.xlu1 %4197, %v6152_v43   ;;  %v2839_v35 = vpack.c.bf16 %v4361_v56, %v4353_v13  ;;  %v7147_v25 = vld [vmem:[#allocation118_spill] sm:$0xff]  ;;  %v7149_v8 = vld [vmem:[#allocation121_spill] sm:$0xff] }
 0x3b7   : > { %v6173_v37 = vpop.eup %4364  ;;  %4384 = vpow2.f32 %v2279_v28  ;;  %v6177_v47 = vadd.f32 %v4361_v56, %v4359_v48  ;;  %v7143_v26 = vsub.f32 %v7141_v34, %v7142_v49  ;;  %v7148_v28 = vld [vmem:[#allocation116_spill] sm:$0xff]  ;;  %v1969_v34 = vsub.f32 %v6016_v62, %v6024_v14 }
 0x3b8   : > { %7135 = vst [vmem:[#allocation57_spill] sm:$0xff] %v6173_v37  ;;  %v4367_v50 = vpop.eup %4366  ;;  %4386 = vpow2.f32 %v2013_v52  ;;  %v2281_v27 = vmul.f32 1.442695, %v2207_v19  ;;  %v2283_v60 = vmul.f32 1.442695, %v2208_v6  ;;  %2966 = vmatprep.mubr.bf16.mxu0 %v2839_v35  ;;  %2713 = vperm.xlu0 %4196, %v6159_v12   ;;  %v1966_v56 = vsub.f32 %v7148_v28, %v7147_v25  ;;  %v7158_v14 = vld [vmem:[#allocation64_spill] sm:$0xff] }
 0x3b9   : > { %v4369_v18 = vpop.eup %4368  ;;  %4388 = vpow2.f32 %v2015_v58  ;;  %v2019_v10 = vmul.f32 1.442695, %v7143_v26  ;;  %2967 = vmatmul.mubr.bf16.vlgmr.msra.gmra.mrb[32].mxu0 %v2838_v30  ;;  %v2070_v38 = vpop.permute.xlu1 %2069  ;;  %v7150_v30 = vld [vmem:[#allocation119_spill] sm:$0xff]  ;;  %v2029_v25 = vmul.f32 1.442695, %v1969_v34 }
 0x3ba   : > { %v6186_v13 = vpop.eup %4370  ;;  %4390 = vpow2.f32 %v2281_v27  ;;  %v2209_v20 = vsub.f32 %v7144_v54, %v2070_v38  ;;  %v2210_v2 = vsub.f32 %v7145_v11, %v2070_v38  ;;  %2718 = vperm.xlu1 %4197, %v6168_v4   ;;  %v6191_v33 = vadd.f32 %v4369_v18, %v4367_v50  ;;  %v7160_v28 = vld [vmem:[#allocation63_spill] sm:$0xff] }
 0x3bb   : > { %v6193_v48 = vpop.eup %4372  ;;  %4392 = vpow2.f32 %v2283_v60  ;;  %v1967_v7 = vsub.f32 %v7150_v30, %v7149_v8  ;;  %v2023_v26 = vmul.f32 1.442695, %v1966_v56  ;;  %v7161_v30 = vld [vmem:[#allocation65_spill] sm:$0xff]  ;;  %v2031_v3 = vmul.f32 1.442695, %v1970_v1 }
 0x3bc   : > { %7146 = vst [vmem:[#allocation58_spill] sm:$0xff] %v6193_v48  ;;  %v4375_v52 = vpop.eup %4374  ;;  %4394 = vpow2.f32 %v2017_v42  ;;  %v2285_v17 = vmul.f32 1.442695, %v2209_v20  ;;  %2723 = vperm.xlu0 %4196, %v6173_v37   ;;  %v2287_v19 = vmul.f32 1.442695, %v2210_v2 }
 0x3bd   : > { %v4377_v58 = vpop.eup %4376  ;;  %4396 = vpow2.f32 %v2019_v10  ;;  %v2075_v9 = vpop.permute.xlu1 %2074  ;;  %v2840_v6 = vpack.c.bf16 %v4375_v52, %v4367_v50  ;;  %v2025_v20 = vmul.f32 1.442695, %v1967_v7  ;;  %v2027_v2 = vmul.f32 1.442695, %v1968_v22 }
 0x3be   : > { %v6200_v35 = vpop.eup %4378  ;;  %v2211_v46 = vsub.f32 %v7154_v45, %v2075_v9  ;;  %v2212_v42 = vsub.f32 %v7155_v36, %v2075_v9  ;;  %2728 = vperm.xlu1 %4197, %v6186_v13   ;;  %v2841_v27 = vpack.c.bf16 %v4377_v58, %v4369_v18  ;;  %4398 = vpow2.f32 %v2021_v31 }
 0x3bf   : > { %7151 = vst [vmem:[#allocation117_spill] sm:$0xff] %v6200_v35  ;;  %v6207_v60 = vpop.eup %4380  ;;  %v6211_v49 = vadd.f32 %v4377_v58, %v4375_v52  ;;  %4400 = vpow2.f32 %v2285_v17 }
 0x3c0   : > { %7156 = vst [vmem:[#allocation115_spill] sm:$0xff] %v6207_v60  ;;  %v4383_v50 = vpop.eup %4382  ;;  %v2289_v10 = vmul.f32 1.442695, %v2211_v46  ;;  %v2291_v38 = vmul.f32 1.442695, %v2212_v42  ;;  %2974 = vmatprep.mubr.bf16.mxu0 %v2841_v27  ;;  %2733 = vperm.xlu0 %4196, %v6193_v48   ;;  %4402 = vpow2.f32 %v2287_v19  ;;  %v7162_v19 = vld [vmem:[#allocation66_spill] sm:$0xff]  ;;  %v1971_v27 = vsub.f32 %v6044_v29, %v6052_v15 }
 0x3c1   : > { %v4385_v54 = vpop.eup %4384  ;;  %2975 = vmatmul.mubr.bf16.gmra.mrb[36].mxu0 %v2840_v6  ;;  %v2080_v18 = vpop.permute.xlu1 %2079 }
 0x3c2   : > { %v6214_v11 = vpop.eup %4386  ;;  %4404 = vpow2.f32 %v2289_v10  ;;  %v2214_v62 = vsub.f32 %v7158_v14, %v2080_v18  ;;  %2738 = vperm.xlu1 %4197, %v6200_v35   ;;  %v6218_v31 = vadd.f32 %v4385_v54, %v4383_v50  ;;  %v2213_v56 = vsub.f32 %v7160_v28, %v2080_v18 }
 0x3c3   : > { %7157 = vst [vmem:[#allocation111_spill] sm:$0xff] %v6214_v11  ;;  %v6220_v52 = vpop.eup %4388  ;;  %4406 = vpow2.f32 %v2291_v38  ;;  %v2085_v17 = vpop.permute.xlu0 %2084  ;;  %v7166_v38 = vld [vmem:[#allocation68_spill] sm:$0xff]  ;;  %v2033_v15 = vmul.f32 1.442695, %v1971_v27 }
 0x3c4   : > { %7159 = vst [vmem:[#allocation113_spill] sm:$0xff] %v6220_v52  ;;  %v4391_v58 = vpop.eup %4390  ;;  %4408 = vpow2.f32 %v2023_v26  ;;  %v2295_v8 = vmul.f32 1.442695, %v2214_v62  ;;  %v2215_v7 = vsub.f32 %v7161_v30, %v2085_v17  ;;  %v2216_v9 = vsub.f32 %v7162_v19, %v2085_v17  ;;  %2743 = vperm.xlu0 %4196, %v6207_v60   ;;  %v7194_v60 = vld [vmem:[#allocation89_spill] sm:$0xff] }
 0x3c5   : > { %v4393_v6 = vpop.eup %4392  ;;  %4410 = vpow2.f32 %v2025_v20  ;;  %v2842_v59 = vpack.c.bf16 %v4391_v58, %v4383_v50  ;;  %v2293_v34 = vmul.f32 1.442695, %v2213_v56  ;;  %v7169_v56 = vld [vmem:[#allocation70_spill] sm:$0xff] }
 0x3c6   : > { %v6228_v22 = vpop.eup %4394  ;;  %4412 = vpow2.f32 %v2027_v2  ;;  %v2297_v45 = vmul.f32 1.442695, %v2215_v7  ;;  %v2299_v46 = vmul.f32 1.442695, %v2216_v9  ;;  %2748 = vperm.xlu1 %4197, %v6214_v11   ;;  %v2843_v36 = vpack.c.bf16 %v4393_v6, %v4385_v54  ;;  %v7167_v2 = vld [vmem:[#allocation67_spill] sm:$0xff] }
 0x3c7   : > { %7163 = vst [vmem:[#allocation112_spill] sm:$0xff] %v6228_v22  ;;  %v6231_v42 = vpop.eup %4396  ;;  %4414 = vpow2.f32 %v2029_v25  ;;  %v6235_v26 = vadd.f32 %v4393_v6, %v4391_v58  ;;  %v7168_v25 = vld [vmem:[#allocation69_spill] sm:$0xff] }
 0x3c8   : > { %7164 = vst [vmem:[#allocation114_spill] sm:$0xff] %v6231_v42  ;;  %4416 = vpow2.f32 %v2295_v8  ;;  %2982 = vmatprep.mubr.bf16.mxu0 %v2843_v36  ;;  %2753 = vperm.xlu0 %4196, %v6220_v52   ;;  %v6238_v55 = vpop.eup %4398 }
 0x3c9   : > { %7165 = vst [vmem:[#allocation59_spill] sm:$0xff] %v6238_v55  ;;  %4418 = vpow2.f32 %v2299_v46  ;;  %2983 = vmatmul.mubr.bf16.gmra.mrb[40].mxu0 %v2842_v59  ;;  %v2090_v50 = vpop.permute.xlu1 %2089  ;;  %v6240_v10 = vpop.eup %4400 }
 0x3ca   : > { %4420 = vpow2.f32 %v2297_v45  ;;  %v2218_v54 = vsub.f32 %v7166_v38, %v2090_v50  ;;  %2758 = vperm.xlu1 %4197, %v6228_v22   ;;  %v6244_v29 = vpop.eup %4402  ;;  %v2217_v14 = vsub.f32 %v7167_v2, %v2090_v50  ;;  %v7175_v38 = vld [vmem:[#allocation71_spill] sm:$0xff]  ;;  %v7176_v2 = vld [vmem:[#allocation73_spill] sm:$0xff] }
 0x3cb   : > { %4422 = vpow2.f32 %v2293_v34  ;;  %v7174_v34 = vld [vmem:[#allocation72_spill] sm:$0xff] }
 0x3cc   : > { %v2095_v20 = vpop.permute.xlu0 %2094  ;;  %v4405_v18 = vpop.eup %4404  ;;  %v2303_v62 = vmul.f32 1.442695, %v2218_v54  ;;  %2763 = vperm.xlu0 %4196, %v6231_v42   ;;  %4424 = vpow2.f32 %v2031_v3  ;;  %v2301_v45 = vmul.f32 1.442695, %v2217_v14 }
 0x3cd   : > { %v2219_v28 = vsub.f32 %v7168_v25, %v2095_v20  ;;  %v2220_v17 = vsub.f32 %v7169_v56, %v2095_v20  ;;  %v4407_v58 = vpop.eup %4406  ;;  %v2844_v8 = vpack.c.bf16 %v4405_v18, %v6240_v10  ;;  %4426 = vpow2.f32 %v2033_v15 }
 0x3ce   : > { %v6251_v30 = vpop.eup %4408  ;;  %2768 = vperm.xlu1 %4197, %v6238_v55   ;;  %v2845_v9 = vpack.c.bf16 %v4407_v58, %v6244_v29  ;;  %v6257_v1 = vadd.f32 %v4407_v58, %v4405_v18  ;;  %4428 = vpow2.f32 %v2303_v62  ;;  %v7177_v62 = vld [vmem:[#allocation74_spill] sm:$0xff] }
 0x3cf   : > { %7170 = vst [vmem:[#allocation60_spill] sm:$0xff] %v6251_v30  ;;  %v2305_v7 = vmul.f32 1.442695, %v2219_v28  ;;  %v2307_v19 = vmul.f32 1.442695, %v2220_v17  ;;  %v6255_v6 = vpop.eup %4410 }
 0x3d0   : > { %7171 = vst [vmem:[#allocation118_spill] sm:$0xff] %v6255_v6  ;;  %v6259_v59 = vpop.eup %4412  ;;  %2990 = vmatprep.mubr.bf16.mxu0 %v2845_v9  ;;  %2773 = vperm.xlu0 %4196, %v6251_v30  }
 0x3d1   : > { %7172 = vst [vmem:[#allocation116_spill] sm:$0xff] %v6259_v59  ;;  %v6262_v46 = vpop.eup %4414  ;;  %4430 = vpow2.f32 %v2307_v19  ;;  %2991 = vmatmul.mubr.bf16.gmra.mrb[44].mxu0 %v2844_v8  ;;  %v2100_v36 = vpop.permute.xlu1 %2099 }
 0x3d2   : > { %7173 = vst [vmem:[#allocation121_spill] sm:$0xff] %v6262_v46  ;;  %v6264_v27 = vpop.eup %4416  ;;  %4432 = vpow2.f32 %v2305_v7  ;;  %v2222_v3 = vsub.f32 %v7174_v34, %v2100_v36  ;;  %2778 = vperm.xlu1 %4197, %v6255_v6   ;;  %v2221_v54 = vsub.f32 %v7175_v38, %v2100_v36  ;;  %v7180_v34 = vld [vmem:[#allocation76_spill] sm:$0xff]  ;;  %v7190_v6 = vld [vmem:[#allocation85_spill] sm:$0xff] }
 0x3d3   : > { %v6268_v50 = vpop.eup %4418  ;;  %v2105_v15 = vpop.permute.xlu0 %2104  ;;  %4434 = vpow2.f32 %v2301_v45 }
 0x3d4   : > { %v6271_v20 = vpop.eup %4420  ;;  %v2311_v18 = vmul.f32 1.442695, %v2222_v3  ;;  %v2223_v14 = vsub.f32 %v7176_v2, %v2105_v15  ;;  %v2224_v25 = vsub.f32 %v7177_v62, %v2105_v15  ;;  %2783 = vperm.xlu0 %4196, %v6259_v59   ;;  %v2847_v56 = vpack.c.bf16 %v6268_v50, %v6264_v27  ;;  %v7182_v62 = vld [vmem:[#allocation77_spill] sm:$0xff] }
 0x3d5   : > { %v6276_v28 = vpop.eup %4422  ;;  %v2309_v7 = vmul.f32 1.442695, %v2221_v54  ;;  %v7186_v59 = vld [vmem:[#allocation81_spill] sm:$0xff] }
 0x3d6   : > { %v2313_v17 = vmul.f32 1.442695, %v2223_v14  ;;  %v2315_v58 = vmul.f32 1.442695, %v2224_v25  ;;  %2788 = vperm.xlu1 %4197, %v6262_v46   ;;  %v6281_v8 = vpop.eup %4424  ;;  %2998 = vmatprep.mubr.bf16.mxu0 %v2847_v56  ;;  %v2846_v19 = vpack.c.bf16 %v6271_v20, %v6276_v28  ;;  %4436 = vpow2.f32 %v2311_v18  ;;  %v7181_v18 = vld [vmem:[#allocation75_spill] sm:$0xff]  ;;  %v7183_v56 = vld [vmem:[#allocation78_spill] sm:$0xff] }
 0x3d7   : > { %7178 = vst [vmem:[#allocation119_spill] sm:$0xff] %v6281_v8  ;;  %v6286_v9 = vpop.eup %4426 }
 0x3d8   : > { %2793 = vperm.xlu0 %4196, %v6281_v8   ;;  %7179 = vst [vmem:[#allocation122_spill] sm:$0xff] %v6286_v9  ;;  %4438 = vpow2.f32 %v2315_v58  ;;  %v6288_v36 = vpop.eup %4428 }
 0x3d9   : > { %2999 = vmatmul.mubr.bf16.gmra.mrb[48].mxu0 %v2846_v19  ;;  %v2110_v45 = vpop.permute.xlu1 %2109  ;;  %4440 = vpow2.f32 %v2313_v17 }
 0x3da   : > { %v2226_v3 = vsub.f32 %v7180_v34, %v2110_v45  ;;  %2798 = vperm.xlu1 %4197, %v6286_v9   ;;  %4442 = vpow2.f32 %v2309_v7  ;;  %v2225_v2 = vsub.f32 %v7181_v18, %v2110_v45 }
 0x3db   : > { %v6292_v38 = vpop.eup %4430  ;;  %v2115_v54 = vpop.permute.xlu0 %2114 }
 0x3dc   : > { %v6294_v15 = vpop.eup %4432  ;;  %v2319_v14 = vmul.f32 1.442695, %v2226_v3  ;;  %v2227_v25 = vsub.f32 %v7182_v62, %v2115_v54  ;;  %v2228_v58 = vsub.f32 %v7183_v56, %v2115_v54  ;;  %v2849_v17 = vpack.c.bf16 %v6292_v38, %v6288_v36  ;;  %v7184_v54 = vld [vmem:[#allocation80_spill] sm:$0xff]  ;;  %v7185_v56 = vld [vmem:[#allocation79_spill] sm:$0xff] }
 0x3dd   : > { %v6301_v19 = vpop.eup %4434  ;;  %v2317_v8 = vmul.f32 1.442695, %v2225_v2 }
 0x3de   : > { %v2321_v34 = vmul.f32 1.442695, %v2227_v25  ;;  %v2323_v23 = vmul.f32 1.442695, %v2228_v58  ;;  %3006 = vmatprep.mubr.bf16.mxu0 %v2849_v17  ;;  %v2848_v7 = vpack.c.bf16 %v6294_v15, %v6301_v19  ;;  %4444 = vpow2.f32 %v2319_v14  ;;  %v7187_v14 = vld [vmem:[#allocation82_spill] sm:$0xff] }
 0x3e0   : > { %4446 = vpow2.f32 %v2323_v23  ;;  %v6305_v3 = vpop.eup %4436 }
 0x3e1   : > { %3007 = vmatmul.mubr.bf16.gmra.mrb[52].mxu0 %v2848_v7  ;;  %v2120_v45 = vpop.permute.xlu1 %2119  ;;  %4448 = vpow2.f32 %v2321_v34 }
 0x3e2   : > { %v2230_v18 = vsub.f32 %v7184_v54, %v2120_v45  ;;  %v6308_v62 = vpop.eup %4438  ;;  %v2229_v9 = vsub.f32 %v7185_v56, %v2120_v45  ;;  %4450 = vpow2.f32 %v2317_v8 }
 0x3e3   : > { %v2125_v25 = vpop.permute.xlu0 %2124  ;;  %v6311_v58 = vpop.eup %4440  ;;  %v2851_v34 = vpack.c.bf16 %v6308_v62, %v6305_v3 }
 0x3e4   : > { %v2327_v17 = vmul.f32 1.442695, %v2230_v18  ;;  %v2231_v2 = vsub.f32 %v7186_v59, %v2125_v25  ;;  %v2232_v23 = vsub.f32 %v7187_v14, %v2125_v25  ;;  %v6315_v7 = vpop.eup %4442  ;;  %v2325_v30 = vmul.f32 1.442695, %v2229_v9  ;;  %v7188_v59 = vld [vmem:[#allocation84_spill] sm:$0xff]  ;;  %v7189_v9 = vld [vmem:[#allocation83_spill] sm:$0xff] }
 0x3e5   : > { %3014 = vmatprep.mubr.bf16.mxu0 %v2851_v34  ;;  %v2850_v45 = vpack.c.bf16 %v6311_v58, %v6315_v7 }
 0x3e6   : > { %v2329_v46 = vmul.f32 1.442695, %v2231_v2  ;;  %v2331_v54 = vmul.f32 1.442695, %v2232_v23  ;;  %4452 = vpow2.f32 %v2327_v17  ;;  %v7191_v17 = vld [vmem:[#allocation86_spill] sm:$0xff] }
 0x3e8   : > { %4454 = vpow2.f32 %v2331_v54  ;;  %v6321_v18 = vpop.eup %4444 }
 0x3e9   : > { %3015 = vmatmul.mubr.bf16.gmra.mrb[56].mxu0 %v2850_v45  ;;  %v2130_v8 = vpop.permute.xlu1 %2129  ;;  %4456 = vpow2.f32 %v2329_v46 }
 0x3ea   : > { %v2234_v56 = vsub.f32 %v7188_v59, %v2130_v8  ;;  %v6324_v25 = vpop.eup %4446  ;;  %4458 = vpow2.f32 %v2325_v30  ;;  %v2233_v23 = vsub.f32 %v7189_v9, %v2130_v8 }
 0x3eb   : > { %v2135_v14 = vpop.permute.xlu0 %2134  ;;  %v6326_v2 = vpop.eup %4448  ;;  %v2853_v45 = vpack.c.bf16 %v6324_v25, %v6321_v18 }
 0x3ec   : > { %v2335_v34 = vmul.f32 1.442695, %v2234_v56  ;;  %v2235_v42 = vsub.f32 %v7190_v6, %v2135_v14  ;;  %v2236_v54 = vsub.f32 %v7191_v17, %v2135_v14  ;;  %v6333_v55 = vpop.eup %4450  ;;  %v2333_v52 = vmul.f32 1.442695, %v2233_v23  ;;  %v7192_v6 = vld [vmem:[#allocation88_spill] sm:$0xff]  ;;  %v7193_v17 = vld [vmem:[#allocation87_spill] sm:$0xff] }
 0x3ed   : > { %3022 = vmatprep.mubr.bf16.mxu0 %v2853_v45  ;;  %v2852_v30 = vpack.c.bf16 %v6326_v2, %v6333_v55 }
 0x3ee   : > { %v2337_v46 = vmul.f32 1.442695, %v2235_v42  ;;  %v2339_v59 = vmul.f32 1.442695, %v2236_v54  ;;  %4460 = vpow2.f32 %v2335_v34  ;;  %v7195_v34 = vld [vmem:[#allocation90_spill] sm:$0xff] }
 0x3f0   : > { %4462 = vpow2.f32 %v2339_v59  ;;  %v6337_v56 = vpop.eup %4452 }
 0x3f1   : > { %3023 = vmatmul.mubr.bf16.gmra.mrb[60].mxu0 %v2852_v30  ;;  %v2140_v8 = vpop.permute.xlu1 %2139  ;;  %4464 = vpow2.f32 %v2337_v46 }
 0x3f2   : > { %v2238_v14 = vsub.f32 %v7192_v6, %v2140_v8  ;;  %v6340_v9 = vpop.eup %4454  ;;  %v2237_v22 = vsub.f32 %v7193_v17, %v2140_v8  ;;  %4466 = vpow2.f32 %v2333_v52 }
 0x3f3   : > { %v2145_v42 = vpop.permute.xlu0 %2144  ;;  %v6343_v54 = vpop.eup %4456  ;;  %v2855_v46 = vpack.c.bf16 %v6340_v9, %v6337_v56 }
 0x3f4   : > { %v2343_v45 = vmul.f32 1.442695, %v2238_v14  ;;  %v2239_v23 = vsub.f32 %v7194_v60, %v2145_v42  ;;  %v2240_v59 = vsub.f32 %v7195_v34, %v2145_v42  ;;  %v6347_v30 = vpop.eup %4458  ;;  %v2341_v48 = vmul.f32 1.442695, %v2237_v22  ;;  %v7196_v14 = vld [vmem:[#allocation92_spill] sm:$0xff] }
 0x3f5   : > { %3030 = vmatprep.mubr.bf16.mxu0 %v2855_v46  ;;  %v2854_v8 = vpack.c.bf16 %v6343_v54, %v6347_v30 }
 0x3f6   : > { %v2345_v11 = vmul.f32 1.442695, %v2239_v23  ;;  %v2347_v6 = vmul.f32 1.442695, %v2240_v59  ;;  %4468 = vpow2.f32 %v2343_v45  ;;  %v7198_v45 = vld [vmem:[#allocation93_spill] sm:$0xff] }
 0x3f7   : > { %2457 = vadd.xlane.f32.xlu0 %v6177_v47  ;;  %v7197_v47 = vld [vmem:[#allocation91_spill] sm:$0xff] }
 0x3f8   : > { %4470 = vpow2.f32 %v2347_v6  ;;  %v6354_v52 = vpop.eup %4460  ;;  %v7199_v6 = vld [vmem:[#allocation94_spill] sm:$0xff] }
 0x3f9   : > { %3031 = vmatmul.mubr.bf16.gmra.mrb[64].mxu0 %v2854_v8  ;;  %v2150_v60 = vpop.permute.xlu1 %2149  ;;  %4472 = vpow2.f32 %v2345_v11 }
 0x3fa   : > { %v2242_v17 = vsub.f32 %v7196_v14, %v2150_v60  ;;  %v6357_v42 = vpop.eup %4462  ;;  %4474 = vpow2.f32 %v2341_v48  ;;  %v2241_v34 = vsub.f32 %v7197_v47, %v2150_v60  ;;  %v7200_v47 = vld [vmem:[#allocation96_spill] sm:$0xff] }
 0x3fb   : > { %2460 = vadd.xlane.f32.xlu0 %v6191_v33  ;;  %v2155_v22 = vpop.permute.xlu0 %2154  ;;  %v6360_v23 = vpop.eup %4464  ;;  %v2857_v11 = vpack.c.bf16 %v6357_v42, %v6354_v52 }
 0x3fc   : > { %v2351_v59 = vmul.f32 1.442695, %v2242_v17  ;;  %v2243_v46 = vsub.f32 %v7198_v45, %v2155_v22  ;;  %v2244_v8 = vsub.f32 %v7199_v6, %v2155_v22  ;;  %v6367_v35 = vpop.eup %4466  ;;  %v2349_v48 = vmul.f32 1.442695, %v2241_v34  ;;  %v7202_v6 = vld [vmem:[#allocation97_spill] sm:$0xff] }
 0x3fd   : > { %3038 = vmatprep.mubr.bf16.mxu0 %v2857_v11  ;;  %v2856_v33 = vpack.c.bf16 %v6360_v23, %v6367_v35  ;;  %v2471_v17 = vadd.f32 %v6244_v29, %v6240_v10  ;;  %v7203_v10 = vld [vmem:[#allocation98_spill] sm:$0xff] }
 0x3fe   : > { %v2353_v14 = vmul.f32 1.442695, %v2243_v46  ;;  %v2355_v37 = vmul.f32 1.442695, %v2244_v8  ;;  %2454 = vadd.xlane.f32.xlu1 %v6157_v5  ;;  %4476 = vpow2.f32 %v2351_v59 }
 0x3ff   : > { %2466 = vadd.xlane.f32.xlu0 %v6218_v31  ;;  %v7201_v31 = vld [vmem:[#allocation95_spill] sm:$0xff] }
 0x400   : > { %4478 = vpow2.f32 %v2355_v37  ;;  %v6375_v22 = vpop.eup %4468 }
 0x401   : > { %3039 = vmatmul.mubr.bf16.gmra.mrb[68].mxu0 %v2856_v33  ;;  %v2160_v60 = vpop.permute.xlu1 %2159  ;;  %4480 = vpow2.f32 %v2353_v14 }
 0x402   : > { %v2246_v45 = vsub.f32 %v7200_v47, %v2160_v60  ;;  %2463 = vadd.xlane.f32.xlu1 %v6211_v49  ;;  %v6379_v5 = vpop.eup %4470  ;;  %v2245_v46 = vsub.f32 %v7201_v31, %v2160_v60  ;;  %4482 = vpow2.f32 %v2349_v48  ;;  %v2477_v49 = vadd.f32 %v6276_v28, %v6264_v27  ;;  %v7204_v27 = vld [vmem:[#allocation100_spill] sm:$0xff] }
 0x403   : > { %2472 = vadd.xlane.f32.xlu0 %v2471_v17  ;;  %v2165_v34 = vpop.permute.xlu0 %2164  ;;  %v6382_v59 = vpop.eup %4472  ;;  %v2859_v14 = vpack.c.bf16 %v6379_v5, %v6375_v22 }
 0x404   : > { %v2359_v37 = vmul.f32 1.442695, %v2246_v45  ;;  %v2247_v8 = vsub.f32 %v7202_v6, %v2165_v34  ;;  %v2248_v29 = vsub.f32 %v7203_v10, %v2165_v34  ;;  %v6386_v11 = vpop.eup %4474  ;;  %v2357_v17 = vmul.f32 1.442695, %v2245_v46  ;;  %v7205_v6 = vld [vmem:[#allocation99_spill] sm:$0xff] }
 0x405   : > { %3046 = vmatprep.mubr.bf16.mxu0 %v2859_v14  ;;  %v2858_v48 = vpack.c.bf16 %v6382_v59, %v6386_v11  ;;  %v2483_v45 = vadd.f32 %v6301_v19, %v6288_v36  ;;  %v2480_v34 = vadd.f32 %v6271_v20, %v6268_v50  ;;  %v7206_v19 = vld [vmem:[#allocation101_spill] sm:$0xff] }
 0x406   : > { %v2361_v33 = vmul.f32 1.442695, %v2247_v8  ;;  %v2363_v60 = vmul.f32 1.442695, %v2248_v29  ;;  %2469 = vadd.xlane.f32.xlu1 %v6235_v26  ;;  %4484 = vpow2.f32 %v2359_v37  ;;  %v7207_v29 = vld [vmem:[#allocation102_spill] sm:$0xff] }
 0x407   : > { %2478 = vadd.xlane.f32.xlu0 %v2477_v49  ;;  %v2489_v49 = vadd.f32 %v6315_v7, %v6305_v3  ;;  %v2495_v3 = vadd.f32 %v6333_v55, %v6321_v18  ;;  %v7210_v55 = vld [vmem:[#allocation105_spill] sm:$0xff] }
 0x408   : > { %4486 = vpow2.f32 %v2363_v60  ;;  %v6397_v31 = vpop.eup %4476 }
 0x409   : > { %3047 = vmatmul.mubr.bf16.gmra.mrb[72].mxu0 %v2858_v48  ;;  %v2170_v47 = vpop.permute.xlu1 %2169  ;;  %4488 = vpow2.f32 %v2361_v33  ;;  %v2486_v48 = vadd.f32 %v6294_v15, %v6292_v38  ;;  %v2492_v38 = vadd.f32 %v6311_v58, %v6308_v62  ;;  %v2498_v58 = vadd.f32 %v6326_v2, %v6324_v25  ;;  %v7213_v25 = vld [vmem:[#allocation107_spill] sm:$0xff] }
 0x40a   : > { %v2250_v28 = vsub.f32 %v7204_v27, %v2170_v47  ;;  %2475 = vadd.xlane.f32.xlu1 %v6257_v1  ;;  %v6401_v26 = vpop.eup %4478  ;;  %4490 = vpow2.f32 %v2357_v17  ;;  %v2249_v8 = vsub.f32 %v7205_v6, %v2170_v47 }
 0x40b   : > { %2484 = vadd.xlane.f32.xlu0 %v2483_v45  ;;  %v2175_v46 = vpop.permute.xlu0 %2174  ;;  %v6405_v37 = vpop.eup %4480  ;;  %v2861_v1 = vpack.c.bf16 %v6401_v26, %v6397_v31  ;;  %v7208_v45 = vld [vmem:[#allocation104_spill] sm:$0xff] }
 0x40c   : > { %v2367_v36 = vmul.f32 1.442695, %v2250_v28  ;;  %v2251_v10 = vsub.f32 %v7206_v19, %v2175_v46  ;;  %v2252_v14 = vsub.f32 %v7207_v29, %v2175_v46  ;;  %v6414_v33 = vpop.eup %4482  ;;  %v2365_v20 = vmul.f32 1.442695, %v2249_v8  ;;  %v7209_v46 = vld [vmem:[#allocation103_spill] sm:$0xff] }
 0x40d   : > { %3054 = vmatprep.mubr.bf16.mxu0 %v2861_v1  ;;  %v2860_v50 = vpack.c.bf16 %v6405_v37, %v6414_v33 }
 0x40e   : > { %v2369_v60 = vmul.f32 1.442695, %v2251_v10  ;;  %v2371_v17 = vmul.f32 1.442695, %v2252_v14  ;;  %2481 = vadd.xlane.f32.xlu1 %v2480_v34  ;;  %4492 = vpow2.f32 %v2367_v36  ;;  %v7211_v36 = vld [vmem:[#allocation106_spill] sm:$0xff]  ;;  %v2501_v14 = vadd.f32 %v6347_v30, %v6337_v56  ;;  %v7212_v56 = vld [vmem:[#allocation108_spill] sm:$0xff] }
 0x40f   : > { %2490 = vadd.xlane.f32.xlu0 %v2489_v49 }
 0x410   : > { %4494 = vpow2.f32 %v2371_v17  ;;  %v6422_v7 = vpop.eup %4484 }
 0x411   : > { %3055 = vmatmul.mubr.bf16.gmra.mrb[76].mxu0 %v2860_v50  ;;  %v2180_v47 = vpop.permute.xlu1 %2179  ;;  %4496 = vpow2.f32 %v2369_v60  ;;  %v2507_v50 = vadd.f32 %v6367_v35, %v6354_v52 }
 0x412   : > { %v2254_v27 = vsub.f32 %v7208_v45, %v2180_v47  ;;  %2487 = vadd.xlane.f32.xlu1 %v2486_v48  ;;  %v6425_v28 = vpop.eup %4486  ;;  %v2253_v34 = vsub.f32 %v7209_v46, %v2180_v47  ;;  %4498 = vpow2.f32 %v2365_v20  ;;  %v7214_v46 = vld [vmem:[#allocation109_spill] sm:$0xff] }
 0x413   : > { %2496 = vadd.xlane.f32.xlu0 %v2495_v3  ;;  %v2185_v6 = vpop.permute.xlu0 %2184  ;;  %v6430_v15 = vpop.eup %4488  ;;  %v2863_v29 = vpack.c.bf16 %v6425_v28, %v6422_v7  ;;  %v2504_v3 = vadd.f32 %v6343_v54, %v6340_v9  ;;  %v2510_v54 = vadd.f32 %v6360_v23, %v6357_v42  ;;  %v2522_v23 = vadd.f32 %v6405_v37, %v6401_v26 }
 0x414   : > { %v2375_v8 = vmul.f32 1.442695, %v2254_v27  ;;  %v2255_v18 = vsub.f32 %v7210_v55, %v2185_v6  ;;  %v2256_v19 = vsub.f32 %v7211_v36, %v2185_v6  ;;  %v4491_v10 = vpop.eup %4490  ;;  %v2373_v60 = vmul.f32 1.442695, %v2253_v34  ;;  %v7215_v6 = vld [vmem:[#allocation110_spill] sm:$0xff] }
 0x415   : > { %3062 = vmatprep.mubr.bf16.mxu0 %v2863_v29  ;;  %v2862_v62 = vpack.c.bf16 %v6430_v15, %v4491_v10 }
 0x416   : > { %v2377_v1 = vmul.f32 1.442695, %v2255_v18  ;;  %v2379_v49 = vmul.f32 1.442695, %v2256_v19  ;;  %2493 = vadd.xlane.f32.xlu1 %v2492_v38  ;;  %4500 = vpow2.f32 %v2375_v8  ;;  %v2513_v38 = vadd.f32 %v6386_v11, %v6375_v22 }
 0x417   : > { %2502 = vadd.xlane.f32.xlu0 %v2501_v14  ;;  %v2519_v19 = vadd.f32 %v6414_v33, %v6397_v31 }
 0x418   : > { %4502 = vpow2.f32 %v2379_v49  ;;  %v4493_v20 = vpop.eup %4492 }
 0x419   : > { %3063 = vmatmul.mubr.bf16.gmra.mrb[80].mxu0 %v2862_v62  ;;  %v2190_v17 = vpop.permute.xlu1 %2189  ;;  %4504 = vpow2.f32 %v2377_v1  ;;  %v2516_v1 = vadd.f32 %v6382_v59, %v6379_v5  ;;  %v2528_v59 = vadd.f32 %v6430_v15, %v6425_v28 }
 0x41a   : > { %v2258_v30 = vsub.f32 %v7212_v56, %v2190_v17  ;;  %2499 = vadd.xlane.f32.xlu1 %v2498_v58  ;;  %v4495_v48 = vpop.eup %4494  ;;  %4506 = vpow2.f32 %v2373_v60  ;;  %v2257_v2 = vsub.f32 %v7213_v25, %v2190_v17  ;;  %v2525_v60 = vadd.f32 %v4491_v10, %v6422_v7 }
 0x41b   : > { %2508 = vadd.xlane.f32.xlu0 %v2507_v50  ;;  %v2195_v47 = vpop.permute.xlu0 %2194  ;;  %v4497_v45 = vpop.eup %4496  ;;  %v2865_v52 = vpack.c.bf16 %v4495_v48, %v4493_v20  ;;  %v7216_v25 = vsub.f32 %v6049_v51, %v6060_v16 }
 0x41c   : > { %v2383_v27 = vmul.f32 1.442695, %v2258_v30  ;;  %v2259_v34 = vsub.f32 %v7214_v46, %v2195_v47  ;;  %v2260_v35 = vsub.f32 %v7215_v6, %v2195_v47  ;;  %v4499_v8 = vpop.eup %4498  ;;  %v2381_v9 = vmul.f32 1.442695, %v2257_v2 }
 0x41d   : > { %3070 = vmatprep.mubr.bf16.mxu0 %v2865_v52  ;;  %v2864_v36 = vpack.c.bf16 %v4497_v45, %v4499_v8  ;;  %v2531_v31 = vadd.f32 %v4499_v8, %v4493_v20  ;;  %v6464_v7 = vpop.permute.xlu1 %2653  ;;  %v2534_v37 = vadd.f32 %v4497_v45, %v4495_v48  ;;  %v2035_v2 = vmul.f32 1.442695, %v7216_v25 }
 0x41e   : > { %v2385_v55 = vmul.f32 1.442695, %v2259_v34  ;;  %v2387_v18 = vmul.f32 1.442695, %v2260_v35  ;;  %2505 = vadd.xlane.f32.xlu1 %v2504_v3  ;;  %4508 = vpow2.f32 %v2383_v27 }
 0x41f   : > { %2514 = vadd.xlane.f32.xlu0 %v2513_v38  ;;  %v6460_v17 = vpop.permute.xlu0 %2648 }
 0x420   : > { %4510 = vpow2.f32 %v2387_v18  ;;  %v4501_v29 = vpop.eup %4500 }
 0x421   : > { %3071 = vmatmul.mubr.bf16.gmra.mrb[84].mxu0 %v2864_v36  ;;  %4512 = vpow2.f32 %v2385_v55  ;;  %v6468_v30 = vpop.permute.xlu1 %2658 }
 0x422   : > { %2511 = vadd.xlane.f32.xlu1 %v2510_v54  ;;  %v4503_v22 = vpop.eup %4502  ;;  %4514 = vpow2.f32 %v2381_v9 }
 0x423   : > { %2520 = vadd.xlane.f32.xlu0 %v2519_v19  ;;  %v4505_v11 = vpop.eup %4504  ;;  %v2867_v14 = vpack.c.bf16 %v4503_v22, %v4501_v29  ;;  %v6466_v56 = vpop.permute.xlu0 %2663  ;;  %4516 = vpow2.f32 %v2035_v2 }
 0x424   : > { %v4507_v49 = vpop.eup %4506  ;;  %v2540_v47 = vadd.f32 %v4505_v11, %v4503_v22 }
 0x425   : > { %3078 = vmatprep.mubr.bf16.mxu0 %v2867_v14  ;;  %v2866_v42 = vpack.c.bf16 %v4505_v11, %v4507_v49  ;;  %v2537_v10 = vadd.f32 %v4507_v49, %v4501_v29  ;;  %v6472_v3 = vpop.permute.xlu1 %2668 }
 0x426   : > { %2517 = vadd.xlane.f32.xlu1 %v2516_v1 }
 0x427   : > { %2526 = vadd.xlane.f32.xlu0 %v2525_v60  ;;  %v6470_v28 = vpop.permute.xlu0 %2673  ;;  %v2390_v60 = vld [vmem:[#allocation5 + $0x8] sm:$0xff] }
 0x428   : > { %v4509_v33 = vpop.eup %4508 }
 0x429   : > { %3079 = vmatmul.mubr.bf16.gmra.mrb[88].mxu0 %v2866_v42  ;;  %v6479_v45 = vpop.permute.xlu1 %2678 }
 0x42a   : > { %2523 = vadd.xlane.f32.xlu1 %v2522_v23  ;;  %v4511_v62 = vpop.eup %4510  ;;  %v2422_v23 = vmul.f32 %v6071_v57, %v2390_v60  ;;  %v2395_v60 = vld [vmem:[#allocation5 + $0x30] sm:$0xff] }
 0x42b   : > { %2532 = vadd.xlane.f32.xlu0 %v2531_v31  ;;  %v4513_v58 = vpop.eup %4512  ;;  %v2869_v5 = vpack.c.bf16 %v4511_v62, %v4509_v33  ;;  %v6477_v48 = vpop.permute.xlu0 %2683 }
 0x42c   : > { %v4515_v50 = vpop.eup %4514  ;;  %v2546_v15 = vadd.f32 %v4513_v58, %v4511_v62 }
 0x42d   : > { %3086 = vmatprep.mubr.bf16.mxu0 %v2869_v5  ;;  %v2868_v26 = vpack.c.bf16 %v4513_v58, %v4515_v50  ;;  %v2543_v20 = vadd.f32 %v4515_v50, %v4509_v33  ;;  %v6483_v46 = vpop.permute.xlu1 %2688  ;;  %v6485_v34 = vpop.eup %4516  ;;  %v2391_v33 = vld [vmem:[#allocation5 + $0x10] sm:$0xff]  ;;  %v2393_v50 = vld [vmem:[#allocation5 + $0x20] sm:$0xff] }
 0x42e   : > { %2529 = vadd.xlane.f32.xlu1 %v2528_v59  ;;  %v2423_v5 = vmul.f32 %v6089_v40, %v2391_v33  ;;  %v2389_v59 = vld [vmem:[#allocation5] sm:$0xff]  ;;  %v2425_v57 = vmul.f32 %v6103_v63, %v2393_v50  ;;  %v2806_v40 = vmul.f32 0.0, %v6460_v17  ;;  %v2394_v50 = vld [vmem:[#allocation5 + $0x28] sm:$0xff] }
 0x42f   : > { %2538 = vadd.xlane.f32.xlu0 %v2537_v10  ;;  %v6481_v27 = vpop.permute.xlu0 %2693 }
 0x431   : > { %3087 = vmatmul.mubr.bf16.gmra.mrb[92].mxu0 %v2868_v26  ;;  %v6490_v35 = vpop.permute.xlu1 %2698 }
 0x432   : > { %2535 = vadd.xlane.f32.xlu1 %v2534_v37  ;;  %v2421_v37 = vmul.f32 %v6080_v44, %v2389_v59 }
 0x433   : > { %2544 = vadd.xlane.f32.xlu0 %v2543_v20  ;;  %v6488_v6 = vpop.permute.xlu0 %2703 }
 0x435   : > { %v6494_v16 = vpop.permute.xlu1 %2708 }
 0x436   : > { %2541 = vadd.xlane.f32.xlu1 %v2540_v47  ;;  %v2392_v47 = vld [vmem:[#allocation5 + $0x18] sm:$0xff] }
 0x437   : > { %v6492_v51 = vpop.permute.xlu0 %2713  ;;  %v2424_v44 = vmul.f32 %v6097_v39, %v2392_v47  ;;  %v2426_v39 = vmul.f32 %v6111_v24, %v2394_v50 }
 0x439   : > { %v6498_v38 = vpop.permute.xlu1 %2718 }
 0x43a   : > { %2547 = vadd.xlane.f32.xlu1 %v2546_v15 }
 0x43b   : > { %v6496_v52 = vpop.permute.xlu0 %2723 }
 0x43d   : > { %v6502_v55 = vpop.permute.xlu1 %2728 }
 0x43f   : > { %v6500_v8 = vpop.permute.xlu0 %2733 }
 0x441   : > { %v6506_v36 = vpop.permute.xlu1 %2738 }
 0x443   : > { %v6504_v18 = vpop.permute.xlu0 %2743 }
 0x445   : > { %v6510_v54 = vpop.permute.xlu1 %2748 }
 0x447   : > { %v6508_v9 = vpop.permute.xlu0 %2753 }
 0x449   : > { %2803 = vperm.xlu0 %4196, %v6485_v34   ;;  %v6514_v29 = vpop.permute.xlu1 %2758 }
 0x44b   : > { %v6512_v19 = vpop.permute.xlu0 %2763 }
 0x44d   : > { %v6518_v11 = vpop.permute.xlu1 %2768 }
 0x44f   : > { %v6516_v22 = vpop.permute.xlu0 %2773 }
 0x451   : > { %v6522_v1 = vpop.permute.xlu1 %2778 }
 0x453   : > { %v6520_v14 = vpop.permute.xlu0 %2783 }
 0x455   : > { %v6526_v42 = vpop.permute.xlu1 %2788 }
 0x457   : > { %v6524_v49 = vpop.permute.xlu0 %2793 }
 0x459   : > { %v6529_v58 = vpop.permute.xlu1 %2798 }
 0x484   : > { %v2458_v31 = vpop.xlane.xlu0 %2457 }
 0x485   : > { %v2550_v62 = vadd.f32 %v2458_v31, %v2422_v23 }
 0x487   : > { %2583 = vst.msk [vmem:[#allocation5 + $0x8] sm:$0xff] %vm1251_vm0, %v2550_v62 }
 0x488   : > { %v2461_v10 = vpop.xlane.xlu0 %2460 }
 0x489   : > { %v2551_v26 = vadd.f32 %v2461_v10, %v2423_v5  ;;  %v2427_v10 = vmul.f32 %v6117_v41, %v2395_v60  ;;  %v2396_v60 = vld [vmem:[#allocation5 + $0x38] sm:$0xff] }
 0x48b   : > { %2584 = vst.msk [vmem:[#allocation5 + $0x10] sm:$0xff] %vm1251_vm0, %v2551_v26  ;;  %v2455_v20 = vpop.xlane.xlu1 %2454  ;;  %v2807_v26 = vmul.f32 0.0, %v6464_v7 }
 0x48c   : > { %v3977_v15 = vpop.f32.mrb[32].mxu0  ;;  %v2549_v25 = vadd.f32 %v2455_v20, %v2421_v37  ;;  %v2467_v2 = vpop.xlane.xlu0 %2466 }
 0x48d   : > { %v3978_v23 = vpop.f32.mrb[33].mxu0  ;;  %v2553_v31 = vadd.f32 %v2467_v2, %v2425_v57  ;;  %v2397_v57 = vld [vmem:[#allocation5 + $0x40] sm:$0xff] }
 0x48e   : > { %v3195_v33 = vld [vmem:[#allocation5 + $0x8] sm:$0xff]  ;;  %2582 = vst.msk [vmem:[#allocation5] sm:$0xff] %vm1251_vm0, %v2549_v25  ;;  %v3979_v62 = vadd.f32 %v3978_v23, %v3977_v15  ;;  %v3980_v5 = vpop.f32.mrb[34].mxu0  ;;  %v2429_v41 = vmul.f32 %v6127_v0, %v2397_v57 }
 0x48f   : > { %4518 = vrcp.f32 %v3195_v33  ;;  %2586 = vst.msk [vmem:[#allocation5 + $0x20] sm:$0xff] %vm1251_vm0, %v2553_v31  ;;  %v3981_v63 = vpop.f32.mrb[35].mxu0  ;;  %v2464_v59 = vpop.xlane.xlu1 %2463  ;;  %v2399_v33 = vld [vmem:[#allocation5 + $0x50] sm:$0xff] }
 0x490   : > { %v3982_v37 = vadd.f32 %v3981_v63, %v3980_v5  ;;  %v2552_v20 = vadd.f32 %v2464_v59, %v2424_v44  ;;  %v2473_v17 = vpop.xlane.xlu0 %2472  ;;  %v6542_v2 = vadd.f32 %v3979_v62, %v2806_v40  ;;  %v2808_v44 = vmul.f32 0.0, %v6468_v30 }
 0x491   : > { %v2555_v15 = vadd.f32 %v2473_v17, %v2427_v10  ;;  %v2428_v10 = vmul.f32 %v6125_v53, %v2396_v60 }
 0x492   : > { %2585 = vst.msk [vmem:[#allocation5 + $0x18] sm:$0xff] %vm1251_vm0, %v2552_v20  ;;  %v6546_v47 = vadd.f32 %v3982_v37, %v2807_v26  ;;  %v3196_v63 = vld [vmem:[#allocation5 + $0x10] sm:$0xff]  ;;  %v2431_v26 = vmul.f32 %v6138_v32, %v2399_v33  ;;  %v2398_v37 = vld [vmem:[#allocation5 + $0x48] sm:$0xff]  ;;  %v2809_v20 = vmul.f32 0.0, %v6466_v56 }
 0x493   : > { %2588 = vst.msk [vmem:[#allocation5 + $0x30] sm:$0xff] %vm1251_vm0, %v2555_v15  ;;  %v2470_v25 = vpop.xlane.xlu1 %2469  ;;  %v2401_v15 = vld [vmem:[#allocation5 + $0x60] sm:$0xff]  ;;  %v2430_v32 = vmul.f32 %v6133_v61, %v2398_v37 }
 0x494   : > { %v3983_v7 = vpop.f32.mrb[36].mxu0  ;;  %v2554_v23 = vadd.f32 %v2470_v25, %v2426_v39  ;;  %v2479_v31 = vpop.xlane.xlu0 %2478 }
 0x495   : > { %v3194_v5 = vld [vmem:[#allocation5] sm:$0xff]  ;;  %v3984_v40 = vpop.f32.mrb[37].mxu0  ;;  %v2557_v62 = vadd.f32 %v2479_v31, %v2429_v41  ;;  %v2400_v31 = vld [vmem:[#allocation5 + $0x58] sm:$0xff] }
 0x496   : > { %4520 = vrcp.f32 %v3194_v5  ;;  %2587 = vst.msk [vmem:[#allocation5 + $0x28] sm:$0xff] %vm1251_vm0, %v2554_v23  ;;  %v3985_v24 = vadd.f32 %v3984_v40, %v3983_v7  ;;  %v3986_v59 = vpop.f32.mrb[38].mxu0  ;;  %v3198_v53 = vld [vmem:[#allocation5 + $0x20] sm:$0xff]  ;;  %v2433_v23 = vmul.f32 %v6152_v43, %v2401_v15 }
 0x497   : > { %2590 = vst.msk [vmem:[#allocation5 + $0x40] sm:$0xff] %vm1251_vm0, %v2557_v62  ;;  %v3987_v0 = vpop.f32.mrb[39].mxu0  ;;  %v2476_v50 = vpop.xlane.xlu1 %2475  ;;  %4522 = vrcp.f32 %v3196_v63  ;;  %v2403_v62 = vld [vmem:[#allocation5 + $0x70] sm:$0xff] }
 0x498   : > { %v3988_v17 = vadd.f32 %v3987_v0, %v3986_v59  ;;  %v2556_v57 = vadd.f32 %v2476_v50, %v2428_v10  ;;  %v2485_v30 = vpop.xlane.xlu0 %2484  ;;  %v6556_v39 = vadd.f32 %v3985_v24, %v2808_v44  ;;  %v2810_v59 = vmul.f32 0.0, %v6472_v3 }
 0x499   : > { %v4519_v25 = vpop.eup %4518  ;;  %v3197_v41 = vld [vmem:[#allocation5 + $0x18] sm:$0xff]  ;;  %v2559_v7 = vadd.f32 %v2485_v30, %v2431_v26  ;;  %v2432_v50 = vmul.f32 %v6143_v21, %v2400_v31  ;;  %v2435_v37 = vmul.f32 %v6168_v4, %v2403_v62 }
 0x49a   : > { %4524 = vrcp.f32 %v3197_v41  ;;  %2589 = vst.msk [vmem:[#allocation5 + $0x38] sm:$0xff] %vm1251_vm0, %v2556_v57  ;;  %3297 = vperm.xlu0 %4196, %v4519_v25   ;;  %v6560_v60 = vadd.f32 %v3988_v17, %v2809_v20  ;;  %v3200_v10 = vld [vmem:[#allocation5 + $0x30] sm:$0xff]  ;;  %v2402_v20 = vld [vmem:[#allocation5 + $0x68] sm:$0xff]  ;;  %v2811_v57 = vmul.f32 0.0, %v6470_v28  ;;  %v2405_v25 = vld [vmem:[#allocation5 + $0x80] sm:$0xff] }
 0x49b   : > { %2592 = vst.msk [vmem:[#allocation5 + $0x50] sm:$0xff] %vm1251_vm0, %v2559_v7  ;;  %v2482_v56 = vpop.xlane.xlu1 %2481  ;;  %4526 = vrcp.f32 %v3198_v53  ;;  %v2434_v4 = vmul.f32 %v6159_v12, %v2402_v20  ;;  %v2404_v31 = vld [vmem:[#allocation5 + $0x78] sm:$0xff]  ;;  %v2812_v12 = vmul.f32 0.0, %v6479_v45  ;;  %v7218_v20 = vld [vmem:[#allocation117_spill] sm:$0xff] }
 0x49c   : > { %v3989_v33 = vpop.f32.mrb[40].mxu0  ;;  %v2558_v5 = vadd.f32 %v2482_v56, %v2430_v32  ;;  %v2491_v40 = vpop.xlane.xlu0 %2490 }
 0x49d   : > { %v3199_v44 = vld [vmem:[#allocation5 + $0x28] sm:$0xff]  ;;  %v3990_v63 = vpop.f32.mrb[41].mxu0  ;;  %v2561_v24 = vadd.f32 %v2491_v40, %v2433_v23  ;;  %v2437_v23 = vmul.f32 %v6186_v13, %v2405_v25 }
 0x49e   : > { %4528 = vrcp.f32 %v3199_v44  ;;  %2591 = vst.msk [vmem:[#allocation5 + $0x48] sm:$0xff] %vm1251_vm0, %v2558_v5  ;;  %v3991_v61 = vadd.f32 %v3990_v63, %v3989_v33  ;;  %v3992_v0 = vpop.f32.mrb[42].mxu0  ;;  %v3202_v21 = vld [vmem:[#allocation5 + $0x40] sm:$0xff]  ;;  %v2407_v44 = vld [vmem:[#allocation5 + $0x90] sm:$0xff] }
 0x49f   : > { %2594 = vst.msk [vmem:[#allocation5 + $0x60] sm:$0xff] %vm1251_vm0, %v2561_v24  ;;  %v3993_v43 = vpop.f32.mrb[43].mxu0  ;;  %v2488_v26 = vpop.xlane.xlu1 %2487  ;;  %4530 = vrcp.f32 %v3200_v10 }
 0x4a0   : > { %v4521_v17 = vpop.eup %4520  ;;  %v3994_v30 = vadd.f32 %v3993_v43, %v3992_v0  ;;  %v2560_v3 = vadd.f32 %v2488_v26, %v2432_v50  ;;  %v2497_v15 = vpop.xlane.xlu0 %2496  ;;  %v6570_v41 = vadd.f32 %v3991_v61, %v2810_v59  ;;  %v7217_v0 = vld [vmem:[#allocation57_spill] sm:$0xff] }
 0x4a1   : > { %v3201_v7 = vld [vmem:[#allocation5 + $0x38] sm:$0xff]  ;;  %v2563_v53 = vadd.f32 %v2497_v15, %v2435_v37  ;;  %3292 = vperm.xlu1 %4197, %v4521_v17   ;;  %v4523_v56 = vpop.eup %4522  ;;  %v2436_v50 = vmul.f32 %v7217_v0, %v2404_v31  ;;  %v2439_v17 = vmul.f32 %v7218_v20, %v2407_v44  ;;  %v2814_v0 = vmul.f32 0.0, %v6483_v46 }
 0x4a2   : > { %4532 = vrcp.f32 %v3201_v7  ;;  %2593 = vst.msk [vmem:[#allocation5 + $0x58] sm:$0xff] %vm1251_vm0, %v2560_v3  ;;  %v6574_v32 = vadd.f32 %v3994_v30, %v2811_v57  ;;  %v3204_v10 = vld [vmem:[#allocation5 + $0x50] sm:$0xff]  ;;  %v2406_v57 = vld [vmem:[#allocation5 + $0x88] sm:$0xff]  ;;  %v2813_v3 = vmul.f32 0.0, %v6477_v48  ;;  %v2409_v7 = vld [vmem:[#allocation5 + $0xa0] sm:$0xff] }
 0x4a3   : > { %2596 = vst.msk [vmem:[#allocation5 + $0x70] sm:$0xff] %vm1251_vm0, %v2563_v53  ;;  %v2494_v28 = vpop.xlane.xlu1 %2493  ;;  %4534 = vrcp.f32 %v3202_v21 }
 0x4a4   : > { %v4525_v33 = vpop.eup %4524  ;;  %v3995_v5 = vpop.f32.mrb[44].mxu0  ;;  %v2562_v40 = vadd.f32 %v2494_v28, %v2434_v4  ;;  %v7219_v28 = vld [vmem:[#allocation58_spill] sm:$0xff] }
 0x4a5   : > { %v2503_v62 = vpop.xlane.xlu0 %2502  ;;  %v3203_v63 = vld [vmem:[#allocation5 + $0x48] sm:$0xff]  ;;  %v3996_v24 = vpop.f32.mrb[45].mxu0  ;;  %3307 = vperm.xlu0 %4196, %v4525_v33   ;;  %3302 = vperm.xlu1 %4197, %v4523_v56  }
 0x4a6   : > { %v2565_v59 = vadd.f32 %v2503_v62, %v2437_v23  ;;  %4536 = vrcp.f32 %v3203_v63  ;;  %2595 = vst.msk [vmem:[#allocation5 + $0x68] sm:$0xff] %vm1251_vm0, %v2562_v40  ;;  %v3997_v61 = vadd.f32 %v3996_v24, %v3995_v5  ;;  %v3998_v13 = vpop.f32.mrb[46].mxu0  ;;  %v4527_v43 = vpop.eup %4526  ;;  %v3206_v56 = vld [vmem:[#allocation5 + $0x60] sm:$0xff]  ;;  %v2438_v23 = vmul.f32 %v7219_v28, %v2406_v57  ;;  %v7220_v5 = vld [vmem:[#allocation111_spill] sm:$0xff] }
 0x4a7   : > { %v3999_v26 = vpop.f32.mrb[47].mxu0  ;;  %v2500_v37 = vpop.xlane.xlu1 %2499  ;;  %4538 = vrcp.f32 %v3204_v10  ;;  %v2441_v40 = vmul.f32 %v7220_v5, %v2409_v7  ;;  %v2408_v62 = vld [vmem:[#allocation5 + $0x98] sm:$0xff]  ;;  %v2815_v7 = vmul.f32 0.0, %v6481_v27  ;;  %v7223_v5 = vld [vmem:[#allocation113_spill] sm:$0xff] }
 0x4a8   : > { %2598 = vst.msk [vmem:[#allocation5 + $0x80] sm:$0xff] %vm1251_vm0, %v2565_v59  ;;  %v4529_v30 = vpop.eup %4528  ;;  %v4000_v45 = vadd.f32 %v3999_v26, %v3998_v13  ;;  %v2564_v15 = vadd.f32 %v2500_v37, %v2436_v50  ;;  %v6584_v53 = vadd.f32 %v3997_v61, %v2812_v12  ;;  %v2411_v12 = vld [vmem:[#allocation5 + $0xb0] sm:$0xff]  ;;  %v7221_v37 = vld [vmem:[#allocation115_spill] sm:$0xff] }
 0x4a9   : > { %v2509_v25 = vpop.xlane.xlu0 %2508  ;;  %v3205_v21 = vld [vmem:[#allocation5 + $0x58] sm:$0xff]  ;;  %3317 = vperm.xlu0 %4196, %v4529_v30   ;;  %3312 = vperm.xlu1 %4197, %v4527_v43   ;;  %v4531_v48 = vpop.eup %4530  ;;  %v2440_v20 = vmul.f32 %v7221_v37, %v2408_v62  ;;  %v2816_v37 = vmul.f32 0.0, %v6490_v35 }
 0x4aa   : > { %v2567_v4 = vadd.f32 %v2509_v25, %v2439_v17  ;;  %4540 = vrcp.f32 %v3205_v21  ;;  %2597 = vst.msk [vmem:[#allocation5 + $0x78] sm:$0xff] %vm1251_vm0, %v2564_v15  ;;  %v6588_v31 = vadd.f32 %v4000_v45, %v2813_v3  ;;  %v3208_v50 = vld [vmem:[#allocation5 + $0x70] sm:$0xff]  ;;  %v7222_v3 = vld [vmem:[#allocation112_spill] sm:$0xff]  ;;  %v2410_v15 = vld [vmem:[#allocation5 + $0xa8] sm:$0xff] }
 0x4ab   : > { %v2506_v33 = vpop.xlane.xlu1 %2505  ;;  %4542 = vrcp.f32 %v3206_v56  ;;  %v2443_v45 = vmul.f32 %v7222_v3, %v2411_v12  ;;  %v2413_v56 = vld [vmem:[#allocation5 + $0xc0] sm:$0xff] }
 0x4ac   : > { %2600 = vst.msk [vmem:[#allocation5 + $0x90] sm:$0xff] %vm1251_vm0, %v2567_v4  ;;  %v4533_v44 = vpop.eup %4532  ;;  %v4001_v63 = vpop.f32.mrb[48].mxu0  ;;  %v2566_v24 = vadd.f32 %v2506_v33, %v2438_v23 }
 0x4ad   : > { %v2515_v59 = vpop.xlane.xlu0 %2514  ;;  %v3207_v10 = vld [vmem:[#allocation5 + $0x68] sm:$0xff]  ;;  %v4002_v61 = vpop.f32.mrb[49].mxu0  ;;  %3327 = vperm.xlu0 %4196, %v4533_v44   ;;  %3322 = vperm.xlu1 %4197, %v4531_v48  }
 0x4ae   : > { %v2569_v13 = vadd.f32 %v2515_v59, %v2441_v40  ;;  %4544 = vrcp.f32 %v3207_v10  ;;  %2599 = vst.msk [vmem:[#allocation5 + $0x88] sm:$0xff] %vm1251_vm0, %v2566_v24  ;;  %v4003_v43 = vadd.f32 %v4002_v61, %v4001_v63  ;;  %v4004_v26 = vpop.f32.mrb[50].mxu0  ;;  %v4535_v17 = vpop.eup %4534  ;;  %v2442_v40 = vmul.f32 %v7223_v5, %v2410_v15  ;;  %v7224_v63 = vld [vmem:[#allocation59_spill] sm:$0xff] }
 0x4af   : > { %v4005_v57 = vpop.f32.mrb[51].mxu0  ;;  %v2512_v30 = vpop.xlane.xlu1 %2511  ;;  %4546 = vrcp.f32 %v3208_v50  ;;  %v3210_v33 = vld [vmem:[#allocation5 + $0x80] sm:$0xff]  ;;  %v2445_v24 = vmul.f32 %v7224_v63, %v2413_v56  ;;  %v2412_v59 = vld [vmem:[#allocation5 + $0xb8] sm:$0xff]  ;;  %v2817_v56 = vmul.f32 0.0, %v6488_v6 }
 0x4b0   : > { %2602 = vst.msk [vmem:[#allocation5 + $0xa0] sm:$0xff] %vm1251_vm0, %v2569_v13  ;;  %v4537_v25 = vpop.eup %4536  ;;  %v4006_v46 = vadd.f32 %v4005_v57, %v4004_v26  ;;  %v2568_v21 = vadd.f32 %v2512_v30, %v2440_v20  ;;  %v6598_v28 = vadd.f32 %v4003_v43, %v2814_v0  ;;  %v2415_v0 = vld [vmem:[#allocation5 + $0xd0] sm:$0xff]  ;;  %v7227_v63 = vld [vmem:[#allocation60_spill] sm:$0xff] }
 0x4b1   : > { %v2521_v4 = vpop.xlane.xlu0 %2520  ;;  %v3209_v23 = vld [vmem:[#allocation5 + $0x78] sm:$0xff]  ;;  %3337 = vperm.xlu0 %4196, %v4537_v25   ;;  %3332 = vperm.xlu1 %4197, %v4535_v17   ;;  %v4539_v27 = vpop.eup %4538  ;;  %v7225_v30 = vld [vmem:[#allocation114_spill] sm:$0xff] }
 0x4b2   : > { %v2571_v48 = vadd.f32 %v2521_v4, %v2443_v45  ;;  %4548 = vrcp.f32 %v3209_v23  ;;  %2601 = vst.msk [vmem:[#allocation5 + $0x98] sm:$0xff] %vm1251_vm0, %v2568_v21  ;;  %v6602_v62 = vadd.f32 %v4006_v46, %v2815_v7  ;;  %v2444_v3 = vmul.f32 %v7225_v30, %v2412_v59  ;;  %v7226_v7 = vld [vmem:[#allocation118_spill] sm:$0xff]  ;;  %v2414_v21 = vld [vmem:[#allocation5 + $0xc8] sm:$0xff] }
 0x4b3   : > { %v2518_v44 = vpop.xlane.xlu1 %2517  ;;  %4550 = vrcp.f32 %v3210_v33  ;;  %v3212_v20 = vld [vmem:[#allocation5 + $0x90] sm:$0xff]  ;;  %v2447_v46 = vmul.f32 %v7226_v7, %v2415_v0  ;;  %v2417_v33 = vld [vmem:[#allocation5 + $0xe0] sm:$0xff]  ;;  %v2818_v30 = vmul.f32 0.0, %v6494_v16 }
 0x4b4   : > { %2604 = vst.msk [vmem:[#allocation5 + $0xb0] sm:$0xff] %vm1251_vm0, %v2571_v48  ;;  %v4541_v12 = vpop.eup %4540  ;;  %v4007_v10 = vpop.f32.mrb[52].mxu0  ;;  %v2570_v61 = vadd.f32 %v2518_v44, %v2442_v40 }
 0x4b5   : > { %v2527_v13 = vpop.xlane.xlu0 %2526  ;;  %v3211_v50 = vld [vmem:[#allocation5 + $0x88] sm:$0xff]  ;;  %v4008_v43 = vpop.f32.mrb[53].mxu0  ;;  %3347 = vperm.xlu0 %4196, %v4541_v12   ;;  %3342 = vperm.xlu1 %4197, %v4539_v27  }
 0x4b6   : > { %v2573_v26 = vadd.f32 %v2527_v13, %v2445_v24  ;;  %4552 = vrcp.f32 %v3211_v50  ;;  %2603 = vst.msk [vmem:[#allocation5 + $0xa8] sm:$0xff] %vm1251_vm0, %v2570_v61  ;;  %v4009_v17 = vadd.f32 %v4008_v43, %v4007_v10  ;;  %v4010_v57 = vpop.f32.mrb[54].mxu0  ;;  %v4543_v45 = vpop.eup %4542  ;;  %v2446_v24 = vmul.f32 %v7227_v63, %v2414_v21  ;;  %v7228_v10 = vld [vmem:[#allocation121_spill] sm:$0xff]  ;;  %v2416_v13 = vld [vmem:[#allocation5 + $0xd8] sm:$0xff] }
 0x4b7   : > { %v4011_v15 = vpop.f32.mrb[55].mxu0  ;;  %v2524_v25 = vpop.xlane.xlu1 %2523  ;;  %4554 = vrcp.f32 %v3212_v20  ;;  %v3214_v44 = vld [vmem:[#allocation5 + $0xa0] sm:$0xff]  ;;  %v2449_v61 = vmul.f32 %v7228_v10, %v2417_v33  ;;  %v2819_v33 = vmul.f32 0.0, %v6492_v51 }
 0x4b8   : > { %2606 = vst.msk [vmem:[#allocation5 + $0xc0] sm:$0xff] %vm1251_vm0, %v2573_v26  ;;  %v4545_v4 = vpop.eup %4544  ;;  %v4012_v35 = vadd.f32 %v4011_v15, %v4010_v57  ;;  %v2572_v23 = vadd.f32 %v2524_v25, %v2444_v3  ;;  %v6612_v5 = vadd.f32 %v4009_v17, %v2816_v37  ;;  %v2419_v37 = vld [vmem:[#allocation5 + $0xf0] sm:$0xff]  ;;  %v7229_v25 = vld [vmem:[#allocation116_spill] sm:$0xff] }
 0x4b9   : > { %v2533_v48 = vpop.xlane.xlu0 %2532  ;;  %v3213_v40 = vld [vmem:[#allocation5 + $0x98] sm:$0xff]  ;;  %3357 = vperm.xlu0 %4196, %v4545_v4   ;;  %3352 = vperm.xlu1 %4197, %v4543_v45   ;;  %v4547_v6 = vpop.eup %4546  ;;  %v2448_v7 = vmul.f32 %v7229_v25, %v2416_v13 }
 0x4ba   : > { %v2575_v27 = vadd.f32 %v2533_v48, %v2447_v46  ;;  %4556 = vrcp.f32 %v3213_v40  ;;  %2605 = vst.msk [vmem:[#allocation5 + $0xb8] sm:$0xff] %vm1251_vm0, %v2572_v23  ;;  %v6616_v59 = vadd.f32 %v4012_v35, %v2817_v56  ;;  %v7230_v56 = vld [vmem:[#allocation122_spill] sm:$0xff]  ;;  %v2418_v23 = vld [vmem:[#allocation5 + $0xe8] sm:$0xff] }
 0x4bb   : > { %v2530_v12 = vpop.xlane.xlu1 %2529  ;;  %4558 = vrcp.f32 %v3214_v44  ;;  %v3216_v3 = vld [vmem:[#allocation5 + $0xb0] sm:$0xff]  ;;  %v2451_v35 = vmul.f32 %v7230_v56, %v2419_v37 }
 0x4bc   : > { %2608 = vst.msk [vmem:[#allocation5 + $0xd0] sm:$0xff] %vm1251_vm0, %v2575_v27  ;;  %v4549_v0 = vpop.eup %4548  ;;  %v4013_v50 = vpop.f32.mrb[56].mxu0  ;;  %v2574_v43 = vadd.f32 %v2530_v12, %v2446_v24  ;;  %v7231_v12 = vld [vmem:[#allocation119_spill] sm:$0xff] }
 0x4bd   : > { %v2539_v26 = vpop.xlane.xlu0 %2538  ;;  %v3215_v20 = vld [vmem:[#allocation5 + $0xa8] sm:$0xff]  ;;  %v4014_v17 = vpop.f32.mrb[57].mxu0  ;;  %3367 = vperm.xlu0 %4196, %v4549_v0   ;;  %3362 = vperm.xlu1 %4197, %v4547_v6   ;;  %v2450_v10 = vmul.f32 %v7231_v12, %v2418_v23  ;;  %v2420_v0 = vld [vmem:[#allocation5 + $0xf8] sm:$0xff] }
 0x4be   : > { %v2577_v57 = vadd.f32 %v2539_v26, %v2449_v61  ;;  %4560 = vrcp.f32 %v3215_v20  ;;  %2607 = vst.msk [vmem:[#allocation5 + $0xc8] sm:$0xff] %vm1251_vm0, %v2574_v43  ;;  %v4015_v45 = vadd.f32 %v4014_v17, %v4013_v50  ;;  %v4016_v15 = vpop.f32.mrb[58].mxu0  ;;  %v4551_v46 = vpop.eup %4550  ;;  %v2820_v17 = vmul.f32 0.0, %v6498_v38 }
 0x4bf   : > { %v4017_v21 = vpop.f32.mrb[59].mxu0  ;;  %v2536_v4 = vpop.xlane.xlu1 %2535  ;;  %4562 = vrcp.f32 %v3216_v3  ;;  %v3218_v6 = vld [vmem:[#allocation5 + $0xc0] sm:$0xff] }
 0x4c0   : > { %2610 = vst.msk [vmem:[#allocation5 + $0xe0] sm:$0xff] %vm1251_vm0, %v2577_v57  ;;  %v4553_v48 = vpop.eup %4552  ;;  %v4018_v16 = vadd.f32 %v4017_v21, %v4016_v15  ;;  %v2576_v40 = vadd.f32 %v2536_v4, %v2448_v7  ;;  %v6626_v44 = vadd.f32 %v4015_v45, %v2818_v30  ;;  %v2452_v45 = vmul.f32 %v6485_v34, %v2420_v0 }
 0x4c1   : > { %v2545_v27 = vpop.xlane.xlu0 %2544  ;;  %v3217_v63 = vld [vmem:[#allocation5 + $0xb8] sm:$0xff]  ;;  %3377 = vperm.xlu0 %4196, %v4553_v48   ;;  %3372 = vperm.xlu1 %4197, %v4551_v46   ;;  %v4555_v13 = vpop.eup %4554  ;;  %v2821_v21 = vmul.f32 0.0, %v6496_v52 }
 0x4c2   : > { %v2579_v24 = vadd.f32 %v2545_v27, %v2451_v35  ;;  %4564 = vrcp.f32 %v3217_v63  ;;  %2609 = vst.msk [vmem:[#allocation5 + $0xd8] sm:$0xff] %vm1251_vm0, %v2576_v40  ;;  %v6630_v61 = vadd.f32 %v4018_v16, %v2819_v33  ;;  %v2822_v27 = vmul.f32 0.0, %v6502_v55 }
 0x4c3   : > { %v2542_v51 = vpop.xlane.xlu1 %2541  ;;  %4566 = vrcp.f32 %v3218_v6  ;;  %v3220_v57 = vld [vmem:[#allocation5 + $0xd0] sm:$0xff] }
 0x4c4   : > { %2612 = vst.msk [vmem:[#allocation5 + $0xf0] sm:$0xff] %vm1251_vm0, %v2579_v24  ;;  %v4557_v50 = vpop.eup %4556  ;;  %v4019_v43 = vpop.f32.mrb[60].mxu0  ;;  %v2578_v26 = vadd.f32 %v2542_v51, %v2450_v10  ;;  %v2823_v51 = vmul.f32 0.0, %v6500_v8 }
 0x4c5   : > { %v3219_v37 = vld [vmem:[#allocation5 + $0xc8] sm:$0xff]  ;;  %v4020_v20 = vpop.f32.mrb[61].mxu0  ;;  %3387 = vperm.xlu0 %4196, %v4557_v50   ;;  %3382 = vperm.xlu1 %4197, %v4555_v13   ;;  %v4559_v15 = vpop.eup %4558 }
 0x4c6   : > { %4568 = vrcp.f32 %v3219_v37  ;;  %2611 = vst.msk [vmem:[#allocation5 + $0xe8] sm:$0xff] %vm1251_vm0, %v2578_v26  ;;  %v4021_v30 = vadd.f32 %v4020_v20, %v4019_v43  ;;  %v4022_v3 = vpop.f32.mrb[62].mxu0 }
 0x4c7   : > { %v4023_v25 = vpop.f32.mrb[63].mxu0  ;;  %v2548_v7 = vpop.xlane.xlu1 %2547  ;;  %4570 = vrcp.f32 %v3220_v57  ;;  %v3222_v23 = vld [vmem:[#allocation5 + $0xe0] sm:$0xff]  ;;  %v2824_v57 = vmul.f32 0.0, %v6506_v36  ;;  %v2826_v36 = vmul.f32 0.0, %v6510_v54 }
 0x4c8   : > { %v4561_v46 = vpop.eup %4560  ;;  %v4024_v4 = vadd.f32 %v4023_v25, %v4022_v3  ;;  %v2580_v56 = vadd.f32 %v2548_v7, %v2452_v45  ;;  %v6637_v35 = vadd.f32 %v4021_v30, %v2820_v17  ;;  %v2825_v25 = vmul.f32 0.0, %v6504_v18 }
 0x4c9   : > { %v3221_v38 = vld [vmem:[#allocation5 + $0xd8] sm:$0xff]  ;;  %3397 = vperm.xlu0 %4196, %v4561_v46   ;;  %3392 = vperm.xlu1 %4197, %v4559_v15   ;;  %v4563_v34 = vpop.eup %4562  ;;  %v2827_v18 = vmul.f32 0.0, %v6508_v9 }
 0x4ca   : > { %4572 = vrcp.f32 %v3221_v38  ;;  %2613 = vst.msk [vmem:[#allocation5 + $0xf8] sm:$0xff] %vm1251_vm0, %v2580_v56  ;;  %v6640_v48 = vadd.f32 %v4024_v4, %v2821_v21 }
 0x4cb   : > { %4574 = vrcp.f32 %v3222_v23  ;;  %v3224_v63 = vld [vmem:[#allocation5 + $0xf0] sm:$0xff] }
 0x4cc   : > { %v4565_v33 = vpop.eup %4564  ;;  %v4025_v16 = vpop.f32.mrb[64].mxu0 }
 0x4cd   : > { %v3223_v40 = vld [vmem:[#allocation5 + $0xe8] sm:$0xff]  ;;  %v4026_v52 = vpop.f32.mrb[65].mxu0  ;;  %3407 = vperm.xlu0 %4196, %v4565_v33   ;;  %3402 = vperm.xlu1 %4197, %v4563_v34   ;;  %v4567_v12 = vpop.eup %4566 }
 0x4ce   : > { %4576 = vrcp.f32 %v3223_v40  ;;  %v4027_v24 = vadd.f32 %v4026_v52, %v4025_v16  ;;  %v4028_v6 = vpop.f32.mrb[66].mxu0 }
 0x4cf   : > { %v4029_v10 = vpop.f32.mrb[67].mxu0  ;;  %4578 = vrcp.f32 %v3224_v63 }
 0x4d0   : > { %v4569_v13 = vpop.eup %4568  ;;  %v4030_v0 = vadd.f32 %v4029_v10, %v4028_v6  ;;  %v6644_v50 = vadd.f32 %v4027_v24, %v2822_v27  ;;  %v2828_v6 = vmul.f32 0.0, %v6514_v29 }
 0x4d1   : > { %v3225_v43 = vld [vmem:[#allocation5 + $0xf8] sm:$0xff]  ;;  %3417 = vperm.xlu0 %4196, %v4569_v13   ;;  %3412 = vperm.xlu1 %4197, %v4567_v12   ;;  %v4571_v55 = vpop.eup %4570 }
 0x4d2   : > { %4580 = vrcp.f32 %v3225_v43  ;;  %v6646_v26 = vadd.f32 %v4030_v0, %v2823_v51  ;;  %v2829_v51 = vmul.f32 0.0, %v6512_v19 }
 0x4d4   : > { %v4573_v37 = vpop.eup %4572  ;;  %v4031_v20 = vpop.f32.mrb[68].mxu0 }
 0x4d5   : > { %v4032_v17 = vpop.f32.mrb[69].mxu0  ;;  %3427 = vperm.xlu0 %4196, %v4573_v37   ;;  %3422 = vperm.xlu1 %4197, %v4571_v55   ;;  %v4575_v3 = vpop.eup %4574  ;;  %v2830_v37 = vmul.f32 0.0, %v6518_v11 }
 0x4d6   : > { %v4033_v30 = vadd.f32 %v4032_v17, %v4031_v20  ;;  %v4034_v8 = vpop.f32.mrb[70].mxu0 }
 0x4d7   : > { %v4035_v45 = vpop.f32.mrb[71].mxu0 }
 0x4d8   : > { %v4577_v15 = vpop.eup %4576  ;;  %v4036_v7 = vadd.f32 %v4035_v45, %v4034_v8  ;;  %v6650_v46 = vadd.f32 %v4033_v30, %v2824_v57  ;;  %v2831_v30 = vmul.f32 0.0, %v6516_v22 }
 0x4d9   : > { %3437 = vperm.xlu0 %4196, %v4577_v15   ;;  %3432 = vperm.xlu1 %4197, %v4575_v3   ;;  %v4579_v4 = vpop.eup %4578  ;;  %v2832_v15 = vmul.f32 0.0, %v6522_v1  ;;  %v2834_v1 = vmul.f32 0.0, %v6526_v42  ;;  %v7237_v42 = vld [vmem:[#allocation32_spill] sm:$0xff] }
 0x4da   : > { %v6652_v21 = vadd.f32 %v4036_v7, %v2825_v25 }
 0x4dc   : > { %v4581_v56 = vpop.eup %4580  ;;  %v4037_v38 = vpop.f32.mrb[72].mxu0 }
 0x4dd   : > { %v4038_v23 = vpop.f32.mrb[73].mxu0  ;;  %3447 = vperm.xlu0 %4196, %v4581_v56   ;;  %3442 = vperm.xlu1 %4197, %v4579_v4   ;;  %v7232_v56 = vld [vmem:[#allocation48_spill] sm:$0xff] }
 0x4de   : > { %v4039_v34 = vadd.f32 %v4038_v23, %v4037_v38  ;;  %v4040_v33 = vpop.f32.mrb[74].mxu0  ;;  %v7233_v38 = vld [vmem:[#allocation26_spill] sm:$0xff]  ;;  %v2833_v23 = vmul.f32 0.0, %v6520_v14  ;;  %v2835_v14 = vmul.f32 0.0, %v6524_v49 }
 0x4df   : > { %v4041_v16 = vpop.f32.mrb[75].mxu0  ;;  %v843_v11 = vadd.f32 %v7233_v38, %v7232_v56 }
 0x4e0   : > { %v4042_v40 = vadd.f32 %v4041_v16, %v4040_v33  ;;  %v6656_v52 = vadd.f32 %v4039_v34, %v2826_v36 }
 0x4e1   : > { %v3843_v33 = vmul.f32 -1.442695, %v843_v11 }
 0x4e2   : > { %v6658_v27 = vadd.f32 %v4042_v40, %v2827_v18  ;;  %v7234_v40 = vld [vmem:[#allocation24_spill] sm:$0xff] }
 0x4e3   : > { %4582 = vpow2.f32 %v3843_v33 }
 0x4e4   : > { %v4043_v63 = vpop.f32.mrb[76].mxu0 }
 0x4e5   : > { %v4044_v24 = vpop.f32.mrb[77].mxu0 }
 0x4e6   : > { %v4045_v12 = vadd.f32 %v4044_v24, %v4043_v63  ;;  %v4046_v10 = vpop.f32.mrb[78].mxu0  ;;  %v839_v63 = vadd.f32 %v7234_v40, %v7232_v56 }
 0x4e7   : > { %v4047_v13 = vpop.f32.mrb[79].mxu0 }
 0x4e8   : > { %v4048_v54 = vadd.f32 %v4047_v13, %v4046_v10  ;;  %v6662_v0 = vadd.f32 %v4045_v12, %v2828_v6  ;;  %v7235_v12 = vld [vmem:[#allocation28_spill] sm:$0xff] }
 0x4e9   : > { %v849_v10 = vadd.f32 %v7235_v12, %v7232_v56  ;;  %v7241_v12 = vld [vmem:[#allocation25_spill] sm:$0xff] }
 0x4ea   : > { %v6664_v43 = vadd.f32 %v4048_v54, %v2829_v51 }
 0x4ec   : > { %v4049_v9 = vpop.f32.mrb[80].mxu0 }
 0x4ed   : > { %v4050_v55 = vpop.f32.mrb[81].mxu0  ;;  %v4583_v40 = vpop.eup %4582 }
 0x4ee   : > { %v4051_v20 = vadd.f32 %v4050_v55, %v4049_v9  ;;  %v4052_v17 = vpop.f32.mrb[82].mxu0  ;;  %v3842_v9 = vmul.f32 -1.442695, %v839_v63 }
 0x4ef   : > { %v4053_v57 = vpop.f32.mrb[83].mxu0 }
 0x4f0   : > { %v4054_v29 = vadd.f32 %v4053_v57, %v4052_v17  ;;  %v6668_v8 = vadd.f32 %v4051_v20, %v2830_v37  ;;  %v3844_v37 = vmul.f32 -1.442695, %v849_v10  ;;  %v7236_v20 = vld [vmem:[#allocation30_spill] sm:$0xff]  ;;  %v859_v57 = vadd.f32 %v7237_v42, %v7232_v56 }
 0x4f1   : > { %v853_v17 = vadd.f32 %v7236_v20, %v7232_v56  ;;  %4584 = vpow2.f32 %v3842_v9  ;;  %v919_v10 = vadd.f32 %v7241_v12, %v7232_v56  ;;  %v7243_v9 = vld [vmem:[#allocation40_spill] sm:$0xff] }
 0x4f2   : > { %v6670_v3 = vadd.f32 %v4054_v29, %v2831_v30  ;;  %v2804_v29 = vpop.permute.xlu0 %2803  ;;  %4586 = vpow2.f32 %v3844_v37  ;;  %v879_v37 = vadd.f32 %v7243_v9, %v7232_v56  ;;  %v7249_v9 = vld [vmem:[#allocation53_spill] sm:$0xff] }
 0x4f3   : > { %v2837_v33 = vmul.f32 0.0, %v2804_v29 }
 0x4f4   : > { %v4055_v19 = vpop.f32.mrb[84].mxu0 }
 0x4f5   : > { %v4056_v45 = vpop.f32.mrb[85].mxu0 }
 0x4f6   : > { %v4057_v25 = vadd.f32 %v4056_v45, %v4055_v19  ;;  %v4058_v7 = vpop.f32.mrb[86].mxu0  ;;  %v2836_v45 = vmul.f32 0.0, %v6529_v58 }
 0x4f7   : > { %v4059_v4 = vpop.f32.mrb[87].mxu0 }
 0x4f8   : > { %v4060_v36 = vadd.f32 %v4059_v4, %v4058_v7  ;;  %v6676_v34 = vadd.f32 %v4057_v25, %v2832_v15  ;;  %v3845_v25 = vmul.f32 -1.442695, %v853_v17  ;;  %v3846_v7 = vmul.f32 -1.442695, %v859_v57  ;;  %v7238_v4 = vld [vmem:[#allocation34_spill] sm:$0xff] }
 0x4f9   : > { %v863_v38 = vadd.f32 %v7238_v4, %v7232_v56  ;;  %v7244_v17 = vld [vmem:[#allocation42_spill] sm:$0xff] }
 0x4fa   : > { %v6678_v22 = vadd.f32 %v4060_v36, %v2833_v23  ;;  %v7239_v23 = vld [vmem:[#allocation36_spill] sm:$0xff]  ;;  %4588 = vpow2.f32 %v3845_v25  ;;  %v883_v42 = vadd.f32 %v7244_v17, %v7232_v56 }
 0x4fb   : > { %v869_v36 = vadd.f32 %v7239_v23, %v7232_v56  ;;  %v3847_v58 = vmul.f32 -1.442695, %v863_v38  ;;  %4590 = vpow2.f32 %v3846_v7  ;;  %v4585_v57 = vpop.eup %4584  ;;  %v7246_v7 = vld [vmem:[#allocation46_spill] sm:$0xff] }
 0x4fc   : > { %v4061_v16 = vpop.f32.mrb[88].mxu0  ;;  %v4587_v29 = vpop.eup %4586  ;;  %v3851_v25 = vmul.f32 -1.442695, %v883_v42  ;;  %v893_v4 = vadd.f32 %v7246_v7, %v7232_v56  ;;  %v1123_v38 = vadd.f32 1.0, %v4585_v57  ;;  %v7250_v57 = vld [vmem:[#allocation55_spill] sm:$0xff]  ;;  %v7251_v7 = vld [vmem:[#allocation29_spill] sm:$0xff] }
 0x4fd   : > { %v4062_v18 = vpop.f32.mrb[89].mxu0  ;;  %4592 = vpow2.f32 %v3847_v58  ;;  %v1125_v23 = vadd.f32 1.0, %v4587_v29 }
 0x4fe   : > { %v4063_v24 = vadd.f32 %v4062_v18, %v4061_v16  ;;  %v4064_v6 = vpop.f32.mrb[90].mxu0  ;;  %v3853_v58 = vmul.f32 -1.442695, %v893_v4  ;;  %v929_v4 = vadd.f32 %v7251_v7, %v7232_v56 }
 0x4ff   : > { %v4065_v13 = vpop.f32.mrb[91].mxu0 }
 0x500   : > { %v4066_v51 = vadd.f32 %v4065_v13, %v4064_v6  ;;  %v6686_v54 = vadd.f32 %v4063_v24, %v2834_v1  ;;  %v7240_v1 = vld [vmem:[#allocation38_spill] sm:$0xff]  ;;  %v3848_v6 = vmul.f32 -1.442695, %v869_v36  ;;  %v1124_v13 = vadd.f32 1.0, %v4583_v40 }
 0x501   : > { %v873_v24 = vadd.f32 %v7240_v1, %v7232_v56  ;;  %v7248_v1 = vld [vmem:[#allocation51_spill] sm:$0xff] }
 0x502   : > { %v6688_v55 = vadd.f32 %v4066_v51, %v2835_v14  ;;  %v7242_v14 = vld [vmem:[#allocation27_spill] sm:$0xff]  ;;  %4594 = vpow2.f32 %v3848_v6 }
 0x503   : > { %v923_v51 = vadd.f32 %v7242_v14, %v7232_v56  ;;  %v3849_v20 = vmul.f32 -1.442695, %v873_v24  ;;  %4596 = vrcp.f32 %v1124_v13  ;;  %v903_v24 = vadd.f32 %v7248_v1, %v7232_v56 }
 0x504   : > { %v4067_v30 = vpop.f32.mrb[92].mxu0 }
 0x505   : > { %v4068_v19 = vpop.f32.mrb[93].mxu0  ;;  %4598 = vpow2.f32 %v3849_v20  ;;  %v3855_v42 = vmul.f32 -1.442695, %v903_v24  ;;  %v3860_v24 = vmul.f32 -1.442695, %v929_v4 }
 0x506   : > { %v4069_v49 = vadd.f32 %v4068_v19, %v4067_v30  ;;  %v4070_v15 = vpop.f32.mrb[94].mxu0  ;;  %v3858_v30 = vmul.f32 -1.442695, %v919_v10  ;;  %v3859_v19 = vmul.f32 -1.442695, %v923_v51 }
 0x507   : > { %v4071_v11 = vpop.f32.mrb[95].mxu0 }
 0x508   : > { %v4072_v16 = vadd.f32 %v4071_v11, %v4070_v15  ;;  %v6699_v18 = vadd.f32 %v4069_v49, %v2836_v45  ;;  %v3850_v45 = vmul.f32 -1.442695, %v879_v37  ;;  %v7245_v49 = vld [vmem:[#allocation44_spill] sm:$0xff]  ;;  %4600 = vpow2.f32 %v3858_v30  ;;  %v4589_v11 = vpop.eup %4588 }
 0x509   : > { %v889_v15 = vadd.f32 %v7245_v49, %v7232_v56  ;;  %4602 = vpow2.f32 %v3859_v19  ;;  %v4591_v36 = vpop.eup %4590  ;;  %v1126_v6 = vadd.f32 1.0, %v4589_v11  ;;  %v909_v37 = vadd.f32 %v7249_v9, %v7232_v56 }
 0x50a   : > { %v6701_v63 = vadd.f32 %v4072_v16, %v2837_v33  ;;  %4604 = vpow2.f32 %v3850_v45  ;;  %v7247_v16 = vld [vmem:[#allocation49_spill] sm:$0xff]  ;;  %v4593_v12 = vpop.eup %4592  ;;  %v1127_v10 = vadd.f32 1.0, %v4591_v36  ;;  %v913_v30 = vadd.f32 %v7250_v57, %v7232_v56 }
 0x50b   : > { %v3852_v33 = vmul.f32 -1.442695, %v889_v15  ;;  %v899_v40 = vadd.f32 %v7247_v16, %v7232_v56  ;;  %4606 = vpow2.f32 %v3851_v25  ;;  %v1128_v29 = vadd.f32 1.0, %v4593_v12  ;;  %v7252_v16 = vld [vmem:[#allocation31_spill] sm:$0xff] }
 0x50c   : > { %4608 = vrcp.f32 %v1123_v38  ;;  %v4595_v14 = vpop.eup %4594  ;;  %v3856_v25 = vmul.f32 -1.442695, %v909_v37  ;;  %v3857_v38 = vmul.f32 -1.442695, %v913_v30 }
 0x50d   : > { %4610 = vrcp.f32 %v1125_v23  ;;  %v3854_v51 = vmul.f32 -1.442695, %v899_v40  ;;  %v4597_v17 = vpop.eup %4596  ;;  %v1129_v49 = vadd.f32 1.0, %v4595_v14  ;;  %v933_v40 = vadd.f32 %v7252_v16, %v7232_v56 }
 0x50e   : > { %4612 = vpow2.f32 %v3852_v33 }
 0x50f   : > { %4614 = vpow2.f32 %v3853_v58  ;;  %v4599_v45 = vpop.eup %4598 }
 0x510   : > { %4616 = vrcp.f32 %v1126_v6  ;;  %v1130_v23 = vadd.f32 1.0, %v4599_v45  ;;  %v7253_v6 = vld [vmem:[#allocation33_spill] sm:$0xff] }
 0x511   : > { %4618 = vrcp.f32 %v1127_v10  ;;  %v939_v12 = vadd.f32 %v7253_v6, %v7232_v56  ;;  %v7256_v6 = vld [vmem:[#allocation39_spill] sm:$0xff] }
 0x512   : > { %v6726_v15 = vpop.eup %4600  ;;  %4620 = vpow2.f32 %v3854_v51 }
 0x513   : > { %4622 = vpow2.f32 %v3855_v42  ;;  %v3861_v42 = vmul.f32 -1.442695, %v933_v40  ;;  %v3862_v45 = vmul.f32 -1.442695, %v939_v12  ;;  %v953_v12 = vadd.f32 %v7256_v6, %v7232_v56 }
 0x514   : > { %4624 = vrcp.f32 %v1128_v29 }
 0x515   : > { %4626 = vrcp.f32 %v1129_v49  ;;  %v7255_v49 = vld [vmem:[#allocation37_spill] sm:$0xff] }
 0x516   : > { %4628 = vpow2.f32 %v3856_v25  ;;  %v949_v25 = vadd.f32 %v7255_v49, %v7232_v56 }
 0x517   : > { %4630 = vpow2.f32 %v3857_v38 }
 0x518   : > { %4632 = vrcp.f32 %v1130_v23 }
 0x519   : > { %v3298_v13 = vpop.permute.xlu0 %3297 }
 0x51a   : > { %v3451_v20 = vmul.f32 %v3298_v13, %v6546_v47  ;;  %v6734_v47 = vpop.eup %4602  ;;  %4634 = vpow2.f32 %v3860_v24  ;;  %v3864_v24 = vmul.f32 -1.442695, %v949_v25 }
 0x51b   : > { %v4605_v11 = vpop.eup %4604 }
 0x51c   : > { %v3515_v19 = vmul.f32 %v4597_v17, %v3451_v20  ;;  %v4607_v33 = vpop.eup %4606  ;;  %v1131_v13 = vadd.f32 1.0, %v4605_v11 }
 0x51d   : > { %v4609_v1 = vpop.eup %4608  ;;  %v1132_v9 = vadd.f32 1.0, %v4607_v33 }
 0x51e   : > { %3547 = vst [vmem:[%s6731_s29 + $0x8] sm:$0xff] %v3515_v19  ;;  %v4611_v10 = vpop.eup %4610  ;;  %4636 = vrcp.f32 %v1131_v13 }
 0x51f   : > { %v4613_v51 = vpop.eup %4612  ;;  %4638 = vrcp.f32 %v1132_v9 }
 0x520   : > { %v3293_v36 = vpop.permute.xlu1 %3292  ;;  %v4615_v17 = vpop.eup %4614  ;;  %v1133_v4 = vadd.f32 1.0, %v4613_v51  ;;  %4640 = vpow2.f32 %v3861_v42 }
 0x521   : > { %v3450_v58 = vmul.f32 %v3293_v36, %v6542_v2  ;;  %v7254_v2 = vld [vmem:[#allocation35_spill] sm:$0xff]  ;;  %v4617_v19 = vpop.eup %4616  ;;  %v1134_v36 = vadd.f32 1.0, %v4615_v17  ;;  %4642 = vpow2.f32 %v3862_v45 }
 0x522   : > { %v943_v57 = vadd.f32 %v7254_v2, %v7232_v56  ;;  %v4619_v7 = vpop.eup %4618  ;;  %4644 = vrcp.f32 %v1133_v4 }
 0x523   : > { %v3514_v14 = vmul.f32 %v4609_v1, %v3450_v58  ;;  %v4621_v23 = vpop.eup %4620  ;;  %4646 = vrcp.f32 %v1134_v36 }
 0x524   : > { %v3303_v37 = vpop.permute.xlu1 %3302  ;;  %v3308_v20 = vpop.permute.xlu0 %3307  ;;  %v1135_v13 = vadd.f32 1.0, %v4621_v23  ;;  %v1139_v23 = vadd.f32 1.0, %v6726_v15 }
 0x525   : > { %3546 = vst [vmem:[%s6731_s29] sm:$0xff] %v3514_v14  ;;  %v3452_v30 = vmul.f32 %v3303_v37, %v6556_v39  ;;  %v3453_v29 = vmul.f32 %v3308_v20, %v6560_v60  ;;  %v4623_v16 = vpop.eup %4622  ;;  %v3863_v60 = vmul.f32 -1.442695, %v943_v57  ;;  %v3865_v57 = vmul.f32 -1.442695, %v953_v12 }
 0x526   : > { %v4625_v1 = vpop.eup %4624  ;;  %v1136_v37 = vadd.f32 1.0, %v4623_v16 }
 0x527   : > { %v3516_v38 = vmul.f32 %v4611_v10, %v3452_v30  ;;  %v3517_v11 = vmul.f32 %v4617_v19, %v3453_v29  ;;  %v4627_v10 = vpop.eup %4626  ;;  %4648 = vpow2.f32 %v3863_v60  ;;  %v7257_v30 = vld [vmem:[#allocation41_spill] sm:$0xff]  ;;  %v7258_v19 = vld [vmem:[#allocation43_spill] sm:$0xff] }
 0x528   : > { %v3313_v33 = vpop.permute.xlu1 %3312  ;;  %v3318_v39 = vpop.permute.xlu0 %3317  ;;  %4650 = vpow2.f32 %v3864_v24  ;;  %v959_v29 = vadd.f32 %v7257_v30, %v7232_v56  ;;  %v963_v45 = vadd.f32 %v7258_v19, %v7232_v56  ;;  %v7260_v24 = vld [vmem:[#allocation47_spill] sm:$0xff] }
 0x529   : > { %3548 = vst [vmem:[%s6731_s29 + $0x10] sm:$0xff] %v3516_v38  ;;  %3549 = vst [vmem:[%s6731_s29 + $0x18] sm:$0xff] %v3517_v11  ;;  %v3454_v40 = vmul.f32 %v3313_v33, %v6570_v41  ;;  %v3455_v58 = vmul.f32 %v3318_v39, %v6574_v32  ;;  %v4629_v9 = vpop.eup %4628  ;;  %4652 = vrcp.f32 %v1135_v13  ;;  %v973_v15 = vadd.f32 %v7260_v24, %v7232_v56 }
 0x52a   : > { %v4631_v17 = vpop.eup %4630  ;;  %v1137_v49 = vadd.f32 1.0, %v4629_v9  ;;  %4654 = vrcp.f32 %v1136_v37  ;;  %v3866_v16 = vmul.f32 -1.442695, %v959_v29  ;;  %v3867_v60 = vmul.f32 -1.442695, %v963_v45 }
 0x52b   : > { %v3518_v14 = vmul.f32 %v4619_v7, %v3454_v40  ;;  %v3519_v51 = vmul.f32 %v4625_v1, %v3455_v58  ;;  %v4633_v2 = vpop.eup %4632  ;;  %4656 = vpow2.f32 %v3865_v57  ;;  %v7259_v40 = vld [vmem:[#allocation45_spill] sm:$0xff] }
 0x52c   : > { %v3323_v20 = vpop.permute.xlu1 %3322  ;;  %v3328_v41 = vpop.permute.xlu0 %3327  ;;  %v969_v58 = vadd.f32 %v7259_v40, %v7232_v56  ;;  %4658 = vrcp.f32 %v1137_v49  ;;  %v7261_v49 = vld [vmem:[#allocation50_spill] sm:$0xff] }
 0x52d   : > { %3550 = vst [vmem:[%s6731_s29 + $0x20] sm:$0xff] %v3518_v14  ;;  %3551 = vst [vmem:[%s6731_s29 + $0x28] sm:$0xff] %v3519_v51  ;;  %v3456_v32 = vmul.f32 %v3323_v20, %v6584_v53  ;;  %v3457_v42 = vmul.f32 %v3328_v41, %v6588_v31  ;;  %v4635_v4 = vpop.eup %4634  ;;  %v1138_v53 = vadd.f32 1.0, %v4631_v17  ;;  %v3869_v17 = vmul.f32 -1.442695, %v973_v15 }
 0x52e   : > { %v4637_v11 = vpop.eup %4636  ;;  %v1141_v51 = vadd.f32 1.0, %v4635_v4  ;;  %v3868_v56 = vmul.f32 -1.442695, %v969_v58 }
 0x52f   : > { %v3520_v25 = vmul.f32 %v4627_v10, %v3456_v32  ;;  %v3521_v7 = vmul.f32 %v4633_v2, %v3457_v42  ;;  %v4639_v39 = vpop.eup %4638  ;;  %4660 = vrcp.f32 %v1138_v53 }
 0x530   : > { %v3333_v38 = vpop.permute.xlu1 %3332  ;;  %v3338_v31 = vpop.permute.xlu0 %3337  ;;  %4662 = vrcp.f32 %v1139_v23 }
 0x531   : > { %3552 = vst [vmem:[%s6731_s29 + $0x30] sm:$0xff] %v3520_v25  ;;  %3553 = vst [vmem:[%s6731_s29 + $0x38] sm:$0xff] %v3521_v7  ;;  %v3458_v36 = vmul.f32 %v3333_v38, %v6598_v28  ;;  %v3459_v33 = vmul.f32 %v3338_v31, %v6602_v62  ;;  %v4641_v1 = vpop.eup %4640  ;;  %v1140_v28 = vadd.f32 1.0, %v6734_v47  ;;  %4664 = vpow2.f32 %v3866_v16  ;;  %v7262_v7 = vld [vmem:[#allocation52_spill] sm:$0xff] }
 0x532   : > { %v4643_v10 = vpop.eup %4642  ;;  %4666 = vpow2.f32 %v3867_v60  ;;  %v1142_v2 = vadd.f32 1.0, %v4641_v1  ;;  %v3870_v25 = vmul.f32 -1.442695, %v7261_v49  ;;  %v3871_v4 = vmul.f32 -1.442695, %v7262_v7  ;;  %v7263_v60 = vld [vmem:[#allocation54_spill] sm:$0xff] }
 0x533   : > { %v3522_v6 = vmul.f32 %v4637_v11, %v3458_v36  ;;  %v3523_v12 = vmul.f32 %v4639_v39, %v3459_v33  ;;  %v4645_v14 = vpop.eup %4644  ;;  %4668 = vrcp.f32 %v1140_v28  ;;  %v3872_v40 = vmul.f32 -1.442695, %v7263_v60  ;;  %v7264_v1 = vld [vmem:[#allocation56_spill] sm:$0xff] }
 0x534   : > { %v3343_v62 = vpop.permute.xlu1 %3342  ;;  %v3348_v13 = vpop.permute.xlu0 %3347  ;;  %4670 = vrcp.f32 %v1141_v51  ;;  %v3873_v24 = vmul.f32 -1.442695, %v7264_v1 }
 0x535   : > { %3554 = vst [vmem:[%s6731_s29 + $0x40] sm:$0xff] %v3522_v6  ;;  %3555 = vst [vmem:[%s6731_s29 + $0x48] sm:$0xff] %v3523_v12  ;;  %v3460_v9 = vmul.f32 %v3343_v62, %v6612_v5  ;;  %v3461_v37 = vmul.f32 %v3348_v13, %v6616_v59  ;;  %v4647_v20 = vpop.eup %4646  ;;  %v1143_v5 = vadd.f32 1.0, %v4643_v10  ;;  %4672 = vpow2.f32 %v3868_v56 }
 0x536   : > { %v4649_v41 = vpop.eup %4648  ;;  %4674 = vpow2.f32 %v3869_v17 }
 0x537   : > { %v3524_v47 = vmul.f32 %v4645_v14, %v3460_v9  ;;  %v3525_v32 = vmul.f32 %v4647_v20, %v3461_v37  ;;  %v4651_v42 = vpop.eup %4650  ;;  %4676 = vrcp.f32 %v1142_v2  ;;  %v1144_v11 = vadd.f32 1.0, %v4649_v41 }
 0x538   : > { %v3353_v57 = vpop.permute.xlu1 %3352  ;;  %v3358_v30 = vpop.permute.xlu0 %3357  ;;  %4678 = vrcp.f32 %v1143_v5 }
 0x539   : > { %v4653_v29 = vpop.eup %4652  ;;  %3556 = vst [vmem:[%s6731_s29 + $0x50] sm:$0xff] %v3524_v47  ;;  %3557 = vst [vmem:[%s6731_s29 + $0x58] sm:$0xff] %v3525_v32  ;;  %v3462_v59 = vmul.f32 %v3353_v57, %v6626_v44  ;;  %v3463_v19 = vmul.f32 %v3358_v30, %v6630_v61  ;;  %v1145_v44 = vadd.f32 1.0, %v4651_v42  ;;  %4680 = vpow2.f32 %v3870_v25 }
 0x53a   : > { %v4655_v45 = vpop.eup %4654  ;;  %4682 = vpow2.f32 %v3871_v4 }
 0x53b   : > { %v3526_v53 = vmul.f32 %v4653_v29, %v3462_v59  ;;  %v3527_v38 = vmul.f32 %v4655_v45, %v3463_v19  ;;  %v4657_v31 = vpop.eup %4656  ;;  %4684 = vrcp.f32 %v1144_v11 }
 0x53c   : > { %v3363_v23 = vpop.permute.xlu1 %3362  ;;  %v3368_v36 = vpop.permute.xlu0 %3367  ;;  %v1146_v10 = vadd.f32 1.0, %v4657_v31  ;;  %4686 = vrcp.f32 %v1145_v44 }
 0x53d   : > { %v4659_v33 = vpop.eup %4658  ;;  %3558 = vst [vmem:[%s6731_s29 + $0x60] sm:$0xff] %v3526_v53  ;;  %3559 = vst [vmem:[%s6731_s29 + $0x68] sm:$0xff] %v3527_v38  ;;  %v3464_v61 = vmul.f32 %v3363_v23, %v6637_v35  ;;  %v3465_v39 = vmul.f32 %v3368_v36, %v6640_v48  ;;  %4688 = vpow2.f32 %v3872_v40 }
 0x53e   : > { %v4661_v16 = vpop.eup %4660  ;;  %4690 = vpow2.f32 %v3873_v24 }
 0x53f   : > { %v4663_v58 = vpop.eup %4662  ;;  %v3528_v15 = vmul.f32 %v4659_v33, %v3464_v61  ;;  %v3529_v6 = vmul.f32 %v4661_v16, %v3465_v39  ;;  %4692 = vrcp.f32 %v1146_v10 }
 0x540   : > { %v4665_v12 = vpop.eup %4664  ;;  %v3373_v28 = vpop.permute.xlu1 %3372 }
 0x541   : > { %v3378_v62 = vpop.permute.xlu0 %3377  ;;  %v4667_v35 = vpop.eup %4666  ;;  %3560 = vst [vmem:[%s6731_s29 + $0x70] sm:$0xff] %v3528_v15  ;;  %3561 = vst [vmem:[%s6731_s29 + $0x78] sm:$0xff] %v3529_v6  ;;  %v3466_v48 = vmul.f32 %v3373_v28, %v6644_v50  ;;  %v1147_v9 = vadd.f32 1.0, %v4665_v12 }
 0x542   : > { %v3467_v13 = vmul.f32 %v3378_v62, %v6646_v26  ;;  %v4669_v14 = vpop.eup %4668  ;;  %v1148_v41 = vadd.f32 1.0, %v4667_v35 }
 0x543   : > { %v4671_v51 = vpop.eup %4670  ;;  %v3530_v37 = vmul.f32 %v4663_v58, %v3466_v48  ;;  %4694 = vrcp.f32 %v1147_v9 }
 0x544   : > { %v3531_v20 = vmul.f32 %v4669_v14, %v3467_v13  ;;  %v4673_v56 = vpop.eup %4672  ;;  %v3383_v17 = vpop.permute.xlu1 %3382  ;;  %4696 = vrcp.f32 %v1148_v41 }
 0x545   : > { %v3388_v47 = vpop.permute.xlu0 %3387  ;;  %v4675_v32 = vpop.eup %4674  ;;  %3562 = vst [vmem:[%s6731_s29 + $0x80] sm:$0xff] %v3530_v37  ;;  %v3468_v50 = vmul.f32 %v3383_v17, %v6650_v46  ;;  %v1149_v57 = vadd.f32 1.0, %v4673_v56 }
 0x546   : > { %3563 = vst [vmem:[%s6731_s29 + $0x88] sm:$0xff] %v3531_v20  ;;  %v3469_v26 = vmul.f32 %v3388_v47, %v6652_v21  ;;  %v4677_v42 = vpop.eup %4676  ;;  %v1150_v59 = vadd.f32 1.0, %v4675_v32 }
 0x547   : > { %v4679_v2 = vpop.eup %4678  ;;  %v3532_v30 = vmul.f32 %v4671_v51, %v3468_v50  ;;  %4698 = vrcp.f32 %v1149_v57 }
 0x548   : > { %v3533_v29 = vmul.f32 %v4677_v42, %v3469_v26  ;;  %v4681_v5 = vpop.eup %4680  ;;  %v3393_v19 = vpop.permute.xlu1 %3392  ;;  %4700 = vrcp.f32 %v1150_v59 }
 0x549   : > { %v3398_v45 = vpop.permute.xlu0 %3397  ;;  %v4683_v49 = vpop.eup %4682  ;;  %3564 = vst [vmem:[%s6731_s29 + $0x90] sm:$0xff] %v3532_v30  ;;  %v3470_v46 = vmul.f32 %v3393_v19, %v6656_v52  ;;  %v1151_v4 = vadd.f32 1.0, %v4681_v5 }
 0x54a   : > { %3565 = vst [vmem:[%s6731_s29 + $0x98] sm:$0xff] %v3533_v29  ;;  %v3471_v21 = vmul.f32 %v3398_v45, %v6658_v27  ;;  %v4685_v25 = vpop.eup %4684  ;;  %v1152_v11 = vadd.f32 1.0, %v4683_v49 }
 0x54b   : > { %v4687_v7 = vpop.eup %4686  ;;  %v3534_v53 = vmul.f32 %v4679_v2, %v3470_v46  ;;  %4702 = vrcp.f32 %v1151_v4 }
 0x54c   : > { %v3535_v38 = vmul.f32 %v4685_v25, %v3471_v21  ;;  %v4689_v31 = vpop.eup %4688  ;;  %v3403_v23 = vpop.permute.xlu1 %3402  ;;  %4704 = vrcp.f32 %v1152_v11 }
 0x54d   : > { %v3408_v36 = vpop.permute.xlu0 %3407  ;;  %v4691_v33 = vpop.eup %4690  ;;  %3566 = vst [vmem:[%s6731_s29 + $0xa0] sm:$0xff] %v3534_v53  ;;  %v3472_v52 = vmul.f32 %v3403_v23, %v6662_v0  ;;  %v1153_v61 = vadd.f32 1.0, %v4689_v31 }
 0x54e   : > { %3567 = vst [vmem:[%s6731_s29 + $0xa8] sm:$0xff] %v3535_v38  ;;  %v3473_v27 = vmul.f32 %v3408_v36, %v6664_v43  ;;  %v4693_v44 = vpop.eup %4692  ;;  %v1154_v60 = vadd.f32 1.0, %v4691_v33 }
 0x54f   : > { %v3536_v39 = vmul.f32 %v4687_v7, %v3472_v52  ;;  %v4695_v1 = vpop.eup %4694  ;;  %4706 = vrcp.f32 %v1153_v61 }
 0x550   : > { %v3537_v16 = vmul.f32 %v4693_v44, %v3473_v27  ;;  %v3413_v40 = vpop.permute.xlu1 %3412  ;;  %v4697_v15 = vpop.eup %4696  ;;  %4708 = vrcp.f32 %v1154_v60 }
 0x551   : > { %v3418_v58 = vpop.permute.xlu0 %3417  ;;  %3568 = vst [vmem:[%s6731_s29 + $0xb0] sm:$0xff] %v3536_v39  ;;  %v3474_v24 = vmul.f32 %v3413_v40, %v6668_v8  ;;  %v4699_v28 = vpop.eup %4698 }
 0x552   : > { %3569 = vst [vmem:[%s6731_s29 + $0xb8] sm:$0xff] %v3537_v16  ;;  %v3475_v0 = vmul.f32 %v3418_v58, %v6670_v3  ;;  %v4701_v35 = vpop.eup %4700 }
 0x553   : > { %v3538_v43 = vmul.f32 %v4695_v1, %v3474_v24 }
 0x554   : > { %v3539_v6 = vmul.f32 %v4697_v15, %v3475_v0  ;;  %v3423_v12 = vpop.permute.xlu1 %3422 }
 0x555   : > { %v3428_v10 = vpop.permute.xlu0 %3427  ;;  %3570 = vst [vmem:[%s6731_s29 + $0xc0] sm:$0xff] %v3538_v43  ;;  %v3476_v62 = vmul.f32 %v3423_v12, %v6676_v34  ;;  %v4703_v51 = vpop.eup %4702 }
 0x556   : > { %3571 = vst [vmem:[%s6731_s29 + $0xc8] sm:$0xff] %v3539_v6  ;;  %v3477_v8 = vmul.f32 %v3428_v10, %v6678_v22  ;;  %v4705_v20 = vpop.eup %4704 }
 0x557   : > { %v3540_v3 = vmul.f32 %v4699_v28, %v3476_v62 }
 0x558   : > { %v3541_v48 = vmul.f32 %v4701_v35, %v3477_v8  ;;  %v3433_v13 = vpop.permute.xlu1 %3432 }
 0x559   : > { %v3438_v14 = vpop.permute.xlu0 %3437  ;;  %3572 = vst [vmem:[%s6731_s29 + $0xd0] sm:$0xff] %v3540_v3  ;;  %v3478_v9 = vmul.f32 %v3433_v13, %v6686_v54  ;;  %v4707_v17 = vpop.eup %4706 }
 0x55a   : > { %3573 = vst [vmem:[%s6731_s29 + $0xd8] sm:$0xff] %v3541_v48  ;;  %v3479_v37 = vmul.f32 %v3438_v14, %v6688_v55  ;;  %v4709_v55 = vpop.eup %4708 }
 0x55b   : > { %v3542_v34 = vmul.f32 %v4703_v51, %v3478_v9 }
 0x55c   : > { %v3543_v22 = vmul.f32 %v4705_v20, %v3479_v37  ;;  %v3443_v56 = vpop.permute.xlu1 %3442 }
 0x55d   : > { %v3448_v41 = vpop.permute.xlu0 %3447  ;;  %3574 = vst [vmem:[%s6731_s29 + $0xe0] sm:$0xff] %v3542_v34  ;;  %v3480_v47 = vmul.f32 %v3443_v56, %v6699_v18 }
 0x55e   : > { %3575 = vst [vmem:[%s6731_s29 + $0xe8] sm:$0xff] %v3543_v22  ;;  %v3481_v54 = vmul.f32 %v3448_v41, %v6701_v63 }
 0x55f   : > { %v3544_v32 = vmul.f32 %v4707_v17, %v3480_v47 }
 0x560   : > { %v3545_v50 = vmul.f32 %v4709_v55, %v3481_v54 }
 0x561   : > { %3576 = vst [vmem:[%s6731_s29 + $0xf0] sm:$0xff] %v3544_v32 }
 0x562   : > { %3577 = vst [vmem:[%s6731_s29 + $0xf8] sm:$0xff] %v3545_v50 }
 0x563   : > { %4841 = shalt.err (!%p4838_p6)
}
 0x564   : > { %s4842_s24 = scalar_lea.hbm %s6825_s21, 4096  ;;  %s4846_s26 = scalar_lea.hbm %s6883_s5, 8192 }
 0x565   : > { %p4843_p3 = scmp.ne.s32.totalorder %s6825_s21, %s4842_s24  ;;  %p4847_p12 = scmp.lt.u32.totalorder %s6825_s21, %s6883_s5 }
 0x566   : > { %p4848_p1 = scmp.lt.u32.totalorder %s4846_s26, %s4842_s24  ;;  %p4850_p13 = scmp.lt.u32.totalorder %s4842_s24, %s6825_s21 }
 0x567   : > { %p4844_p9 = pnand %p4843_p3, %p7265_p11 }
 0x568   : > { %p4849_p2 = por %p4848_p1, %p4847_p12 }
 0x569   : > { %p4845_p8 = pneg %p4844_p9 }
 0x56a   : > { %p4851_p0 = por %p4850_p13, %p4849_p2 }
 0x56c   : > { %p4852_p5 = pnand %p4851_p0, %p4845_p8 }
 0x56e   : > { %4855 = shalt.err (!%p4852_p5)
}
 0x56f   : > { %s4930_s17 = smov 128   ;;  %s4931_s15 = smov 256  }
 0x570   : > { %s4932_s22 = smov 8  }
 0x571   : > { %4115 = dma.vmem_to_hbm [thread:$0]  (%p7265_p11), %s6827_s2, 4096, %s6825_s21, %s3579_s14, %s4930_s17, %s4931_s15, %s4932_s22  }
 0x572 PF: > { %s7266_s11 = sld [smem:[#allocation21_spill]]  ;;  %s3609_s29 = sand.u32 1, %s4898_s18  }
 0x573   : > { %p7267_p10 = scmp.ne.s32.totalorder %s6998_s12, 0  ;;  %s3610_s7 = scalar_lea.sflag [#allocation9], %s3609_s29 }
 0x578   : > { %p7268_p7 = scmp.ge.s32.totalorder %s7266_s11, 2 }
 0x57a   : > { %p4132_p4 = pnand %p7268_p7, %p7267_p10 }
 0x57c   : > { %4893 = dma.done.wait (!%p4132_p4), %s3610_s7, 4096  }
 0x57d   : > { %4895 = vsyncadd (!%p4132_p4), %s3610_s7, 4294963200  ;;  %s25_s23 = sadd.s32 1, %s7266_s11   ;;  %s7269_s6 = sld [smem:[#allocation23_spill]] }
 0x57e   : > { %p22_p6 = scmp.ge.s32.totalorder %s25_s23, 4   ;;  %s7270_s21 = sld [smem:[#allocation20_spill]] }
 0x57f   : > { %s7271_s22 = sld [smem:[#allocation22_spill]]  ;;  %s7272_s18 = smov %s4902_s19 }
 0x580   : > { %s7273_s19 = smov %s4906_s20  ;;  %24 = sbr.rel (!%p22_p6) target bundleno = 12 (0xc), region = 126 }
 0x583   : > { %s7274_s20 = smov %s7269_s6 }
 0x587   :  { %3615 = vsyncpa [#allocation8], 1 }
 0x588   :  { %3617 = vsyncpa [#allocation8 + $0x1], 1 }
 0x589   :  { %3618 = vsyncpa [#allocation11], 1 }
 0x58a   :  { %3620 = vsyncpa [#allocation11 + $0x1], 1 }
 0x58b   :  { %3621 = vsyncpa [#allocation14], 1 }
 0x58c   :  { %3623 = vsyncpa [#allocation14 + $0x1], 1 }
 0x58d   :  { %3624 = vsyncpa [#allocation9], 1 }
 0x58e   :  { %3626 = vsyncpa [#allocation9 + $0x1], 1 }

</bundles_post_ra>
